<compile_context>
chip_gen: v7x
topology: tpu7x:2x2x1
jax: 0.10.0
libtpu: 0.0.40
codegen_flags: <defaults>
</compile_context>

<pallas_src>
import functools
import math

import jax
import jax.numpy as jnp
import numpy as np
from jax.experimental import pallas as pl
from jax.experimental.pallas import tpu as pltpu

_LN_EPS = 1e-6          # nn.LayerNorm(d_model, eps=1e-6)
_MASK_FILL = -1e18      # PreSumm MHA masked_fill value


def _layernorm(x, gamma, beta, eps=_LN_EPS):
    """nn.LayerNorm over the last dim (biased variance), f32 math."""
    mu = jnp.mean(x, axis=-1, keepdims=True)
    xc = x - mu
    var = jnp.mean(xc * xc, axis=-1, keepdims=True)
    return xc * jax.lax.rsqrt(var + eps) * gamma + beta


def _gelu(x):
    """PreSumm gelu (tanh approximation) -- tanh maps to the EUP slot."""
    c = math.sqrt(2.0 / math.pi)
    return 0.5 * x * (1.0 + jnp.tanh(c * (x + 0.044715 * x * x * x)))


def _encoder_layer_kernel(x_full_ref, x_tile_ref, bias_ref, slab_ref,
                          wq_ref, wkv_ref, wo_ref,
                          w1_ref, b1_ref, w2_ref, b2_ref,
                          o_ref, *, heads, tk, apply_input_layernorm):
    """One (batch, q-tile) grid step: flash-style self-attention + residual + FFN."""
    n, d = x_full_ref.shape[1], x_full_ref.shape[2]
    tq = x_tile_ref.shape[1]
    dh = d // heads
    nk = n // tk
    scale = 1.0 / math.sqrt(dh)
    bf16 = jnp.bfloat16
    f32 = jnp.float32

    slab = slab_ref[...]                               # (8, d) f32, packed params
    ln1_g, ln1_b = slab[0:1, :], slab[1:2, :]
    ln2_g, ln2_b = slab[2:3, :], slab[3:4, :]
    bq, bk, bv, bo = slab[4:5, :], slab[5:6, :], slab[6:7, :], slab[7:8, :]

    x_full = x_full_ref[0]                             # (n, d)  f32 (for K/V)
    x_tile = x_tile_ref[0]                             # (tq, d) f32 (Q + residual)
    bias = bias_ref[0]                                 # (1, n)  f32 additive pad mask

    if apply_input_layernorm:                          # iter != 0 path
        xn_full = _layernorm(x_full, ln1_g, ln1_b)
        xn_tile = _layernorm(x_tile, ln1_g, ln1_b)
    else:                                              # iter == 0 path
        xn_full, xn_tile = x_full, x_tile

    # bf16 MXU operands, f32 accumulation everywhere below.
    xn_full_b = xn_full.astype(bf16)
    xn_tile_b = xn_tile.astype(bf16)

    # --- Multi-headed self-attention (q = k = v = input_norm) ---------------
    attn = jnp.zeros((tq, d), f32)
    for h in range(heads):                             # static unroll over heads
        # Per-head projections: Q only for the q-tile rows; K/V (fused weight)
        # for the full sequence (recomputed per q-tile step; cheap vs. (h,n,n)).
        q_h = jnp.dot(xn_tile_b, wq_ref[h], preferred_element_type=f32)
        q_h = (q_h + bq[:, h * dh:(h + 1) * dh]) * scale          # (tq, dh) f32
        q_h_b = q_h.astype(bf16)

        kv_h = jnp.dot(xn_full_b, wkv_ref[h], preferred_element_type=f32)  # (n, 2*dh)
        k_h_b = (kv_h[:, :dh] + bk[:, h * dh:(h + 1) * dh]).astype(bf16)   # (n, dh)
        v_h_b = (kv_h[:, dh:] + bv[:, h * dh:(h + 1) * dh]).astype(bf16)   # (n, dh)

        # Online softmax over key tiles: never materialize (tq, n) scores.
        # TODO(synk): for very long n switch this static unroll to lax.fori_loop /
        # pltpu.emit_pipeline with VMEM-resident K/V.
        m_i = jnp.full((tq, 1), -1e30, f32)
        l_i = jnp.zeros((tq, 1), f32)
        acc = jnp.zeros((tq, dh), f32)
        for ki in range(nk):
            ks = ki * tk
            # scores (tq, tk): NT matmul on bf16 operands, f32 accumulate.
            s = jax.lax.dot_general(q_h_b, k_h_b[ks:ks + tk, :],
                                    (((1,), (1,)), ((), ())),
                                    preferred_element_type=f32)
            s = s + bias[:, ks:ks + tk]                # f32 add AFTER the matmul
            m_new = jnp.maximum(m_i, jnp.max(s, axis=-1, keepdims=True))
            alpha = jnp.exp(m_i - m_new)
            p = jnp.exp(s - m_new)
            l_i = alpha * l_i + jnp.sum(p, axis=-1, keepdims=True)
            acc = alpha * acc + jnp.dot(p.astype(bf16), v_h_b[ks:ks + tk, :],
                                        preferred_element_type=f32)
            m_i = m_new

        ctx_h = acc * pl.reciprocal(l_i, approx=True)  # (tq, dh); approx recip on a
                                                       # (tq,1) vector only -> ~1e-3
        # Fold the head-concat into the output projection: no transpose/reshape.
        attn = attn + jnp.dot(ctx_h.astype(bf16), wo_ref[h],
                              preferred_element_type=f32)

    res = attn + bo + x_tile                           # dropout == identity (eval)

    # --- PositionwiseFeedForward: LN -> w1 -> gelu -> w2 -> + residual ------
    ff = _layernorm(res, ln2_g, ln2_b)
    ff = jnp.dot(ff.astype(bf16), w1_ref[...], preferred_element_type=f32) + b1_ref[...]
    ff = _gelu(ff)
    ff = jnp.dot(ff.astype(bf16), w2_ref[...], preferred_element_type=f32) + b2_ref[...]

    # TODO(synk): emit bf16 here if the downstream stack tolerates it (halves vst/HBM).
    o_ref[0] = (ff + res).astype(o_ref.dtype)


def transformer_encoder_layer(iter_, query, inputs, mask, params, *, heads,
                              tq=None, tk=None):
    """Pallas forward of TransformerEncoderLayer (eval mode, dropout=identity)."""
    del query                                   # unused by the module's forward
    B, n, d = inputs.shape
    assert d % heads == 0
    dh = d // heads
    d_ff = params["w1"].shape[1]

    # Query / key tile sizes (multiples of the 256 MXU edge at production sizes).
    if tq is None:
        tq = n if n <= 256 else 256
    if tk is None:
        tk = n if n <= 512 else 512
    assert n % tq == 0 and n % tk == 0
    num_q = n // tq

    f32, bf16 = jnp.float32, jnp.bfloat16

    # mask: True == padding -> additive -1e18 f32 bias (added after the bf16
    # scores matmul so it never saturates a bf16 value).
    attn_bias = jnp.where(mask, _MASK_FILL, 0.0).astype(f32).reshape(B, 1, n)

    # Pack params into kernel layout: bf16 weights, per-head Q / fused KV /
    # per-head O (so no head split/concat transposes inside the kernel), and a
    # single (8, d) f32 slab for LN params + biases.
    # TODO(synk): in production keep these packed & bf16 in HBM instead of
    # re-packing on every call.
    wq3 = jnp.transpose(params["wq"].reshape(d, heads, dh), (1, 0, 2)).astype(bf16)
    wk3 = jnp.transpose(params["wk"].reshape(d, heads, dh), (1, 0, 2))
    wv3 = jnp.transpose(params["wv"].reshape(d, heads, dh), (1, 0, 2))
    wkv3 = jnp.concatenate([wk3, wv3], axis=-1).astype(bf16)        # (H, d, 2*dh)
    wo3 = params["wo"].reshape(heads, dh, d).astype(bf16)           # (H, dh, d)
    w1 = params["w1"].astype(bf16)
    w2 = params["w2"].astype(bf16)
    slab = jnp.concatenate([params["ln1_g"], params["ln1_b"],
                            params["ln2_g"], params["ln2_b"],
                            params["bq"], params["bk"],
                            params["bv"], params["bo"]], axis=0).astype(f32)  # (8, d)
    b1 = params["b1"].astype(f32)
    b2 = params["b2"].astype(f32)

    kernel = functools.partial(_encoder_layer_kernel, heads=heads, tk=tk,
                               apply_input_layernorm=(iter_ != 0))

    # Explicit scoped-VMEM budget, sized per generation with headroom
    # (physical: 128 MiB on v5e/v6e, 64 MiB on v7x; defaults are only 16/32 MiB).
    try:
        vmem_cap = pltpu.get_tpu_info().vmem_capacity_bytes
    except Exception:
        vmem_cap = 64 * 1024 * 1024
    vmem_limit = max(32 * 1024 * 1024, min(int(vmem_cap * 3 // 4), 100 * 1024 * 1024))

    def run(weight_mode):
        def wspec(shape):
            zeros = (0,) * len(shape)
            if weight_mode is None:
                return pl.BlockSpec(shape, lambda b, qi: zeros)
            # Constant index_map -> single-buffer the resident weights.
            return pl.BlockSpec(shape, lambda b, qi: zeros, pipeline_mode=weight_mode)

        grid_spec = pltpu.PrefetchScalarGridSpec(
            num_scalar_prefetch=0,
            grid=(B, num_q),
            in_specs=[
                pl.BlockSpec((1, n, d), lambda b, qi: (b, 0, 0)),     # x (full seq, K/V)
                pl.BlockSpec((1, tq, d), lambda b, qi: (b, qi, 0)),   # x (q tile, Q+residual)
                pl.BlockSpec((1, 1, n), lambda b, qi: (b, 0, 0)),     # additive pad mask
                wspec((8, d)),                                        # LN params + biases
                wspec((heads, d, dh)),                                # wq  (per head)
                wspec((heads, d, 2 * dh)),                            # w_kv (fused, per head)
                wspec((heads, dh, d)),                                # wo  (per head)
                wspec((d, d_ff)), wspec((1, d_ff)),                   # w1 / b1
                wspec((d_ff, d)), wspec((1, d)),                      # w2 / b2
            ],
            out_specs=pl.BlockSpec((1, tq, d), lambda b, qi: (b, qi, 0)),
        )
        return pl.pallas_call(
            kernel,
            out_shape=jax.ShapeDtypeStruct((B, n, d), jnp.float32),
            grid_spec=grid_spec,
            compiler_params=pltpu.CompilerParams(
                dimension_semantics=("parallel", "parallel"),
                vmem_limit_bytes=vmem_limit),
        )(inputs, inputs, attn_bias, slab, wq3, wkv3, wo3, w1, b1, w2, b2)

    try:
        return run(pl.Buffered(1))
    except Exception:
        # TODO(synk): pl.Buffered(1) rejected by this jax version -> fall back to
        # default double-buffering of the (constant-index) weight blocks.
        return run(None)


def reference_forward(iter_, query, inputs, mask, params, *, heads):
    """Pure-JAX f32 mirror of the PyTorch forward (eval mode)."""
    del query
    B, n, d = inputs.shape
    dh = d // heads
    x = inputs
    xn = _layernorm(x, params["ln1_g"], params["ln1_b"]) if iter_ != 0 else x
    q = xn @ params["wq"] + params["bq"]
    k = xn @ params["wk"] + params["bk"]
    v = xn @ params["wv"] + params["bv"]

    def split(t):                                   # (B,n,d) -> (B,heads,n,dh)
        return jnp.transpose(t.reshape(B, n, heads, dh), (0, 2, 1, 3))

    qh = split(q) / math.sqrt(dh)
    kh, vh = split(k), split(v)
    scores = jnp.einsum('bhqd,bhkd->bhqk', qh, kh)
    scores = jnp.where(mask[:, None, None, :], _MASK_FILL, scores)  # masked_fill
    attn = jax.nn.softmax(scores, axis=-1)
    ctx = jnp.einsum('bhqk,bhkd->bhqd', attn, vh)
    ctx = jnp.transpose(ctx, (0, 2, 1, 3)).reshape(B, n, d)
    res = ctx @ params["wo"] + params["bo"] + x
    ff = _layernorm(res, params["ln2_g"], params["ln2_b"])
    ff = _gelu(ff @ params["w1"] + params["b1"])
    return ff @ params["w2"] + params["b2"] + res


def init_params(key, d_model, d_ff):
    """torch.nn.Linear-style init (uniform +/- 1/sqrt(fan_in)); weights stored
    pre-transposed as (in, out).  LayerNorm uses torch defaults (ones/zeros)."""
    ks = jax.random.split(key, 12)
    bm = 1.0 / math.sqrt(d_model)
    bf = 1.0 / math.sqrt(d_ff)
    u = lambda k, shape, b: jax.random.uniform(k, shape, jnp.float32, -b, b)
    return dict(
        wq=u(ks[0], (d_model, d_model), bm), bq=u(ks[1], (1, d_model), bm),
        wk=u(ks[2], (d_model, d_model), bm), bk=u(ks[3], (1, d_model), bm),
        wv=u(ks[4], (d_model, d_model), bm), bv=u(ks[5], (1, d_model), bm),
        wo=u(ks[6], (d_model, d_model), bm), bo=u(ks[7], (1, d_model), bm),
        w1=u(ks[8], (d_model, d_ff), bm),    b1=u(ks[9], (1, d_ff), bm),
        w2=u(ks[10], (d_ff, d_model), bf),   b2=u(ks[11], (1, d_model), bf),
        ln1_g=jnp.ones((1, d_model), jnp.float32),
        ln1_b=jnp.zeros((1, d_model), jnp.float32),
        ln2_g=jnp.ones((1, d_model), jnp.float32),
        ln2_b=jnp.zeros((1, d_model), jnp.float32),
    )


if __name__ == "__main__":
    # Small correctness-only shapes (see header note about benchmarking sizes).
    B, n, d_model, heads, d_ff = 2, 16, 32, 4, 64

    key = jax.random.PRNGKey(0)
    k_in, k_par = jax.random.split(key, 2)

    inputs = jax.random.normal(k_in, (B, n, d_model), jnp.float32)
    query = inputs                              # ignored by the module's forward
    lengths = jnp.array([n, n - 4])
    mask = jnp.arange(n)[None, :] >= lengths[:, None]   # True = padding

    params = init_params(k_par, d_model, d_ff)

    for it in (0, 1):                            # exercise both iter paths
        out = transformer_encoder_layer(it, query, inputs, mask, params,
                                        heads=heads)
        out = jax.block_until_ready(out)
        ref = reference_forward(it, query, inputs, mask, params, heads=heads)
        # Tolerance covers bf16 MXU operands (f32 accumulate) and the EUP
        # approximate reciprocal in the softmax normalize.
        np.testing.assert_allclose(np.asarray(out), np.asarray(ref),
                                   rtol=3e-2, atol=3e-2)

    print("KERNEL_OK")
</pallas_src>

<mosaic_0001>
module attributes {stable_mosaic.version = 11 : i64} {
  func.func @_encoder_layer_kernel(%arg0: i32, %arg1: i32, %arg2: memref<1x16x32xf32, #tpu.memory_space<vmem>>, %arg3: memref<1x16x32xf32, #tpu.memory_space<vmem>>, %arg4: memref<1x1x16xf32, #tpu.memory_space<vmem>>, %arg5: memref<8x32xf32, #tpu.memory_space<vmem>>, %arg6: memref<4x32x8xbf16, #tpu.memory_space<vmem>>, %arg7: memref<4x32x16xbf16, #tpu.memory_space<vmem>>, %arg8: memref<4x8x32xbf16, #tpu.memory_space<vmem>>, %arg9: memref<32x64xbf16, #tpu.memory_space<vmem>>, %arg10: memref<1x64xf32, #tpu.memory_space<vmem>>, %arg11: memref<64x32xbf16, #tpu.memory_space<vmem>>, %arg12: memref<1x32xf32, #tpu.memory_space<vmem>>, %arg13: memref<1x16x32xf32, #tpu.memory_space<vmem>>) attributes {dimension_semantics = [#tpu.dimension_semantics<parallel>, #tpu.dimension_semantics<parallel>], iteration_bounds = array<i64: 2, 1>, scalar_prefetch = 0 : i64, scratch_operands = 0 : i64, tpu.core_type = #tpu.core_type<tc>, window_params = [{transform_indices = @transform_0, window_bounds = array<i64: 1, 16, 32>}, {transform_indices = @transform_1, window_bounds = array<i64: 1, 16, 32>}, {transform_indices = @transform_2, window_bounds = array<i64: 1, 1, 16>}, {pipeline_mode = #tpu.pipeline_mode<synchronous>, transform_indices = @transform_3, window_bounds = array<i64: 8, 32>}, {pipeline_mode = #tpu.pipeline_mode<synchronous>, transform_indices = @transform_4, window_bounds = array<i64: 4, 32, 8>}, {pipeline_mode = #tpu.pipeline_mode<synchronous>, transform_indices = @transform_5, window_bounds = array<i64: 4, 32, 16>}, {pipeline_mode = #tpu.pipeline_mode<synchronous>, transform_indices = @transform_6, window_bounds = array<i64: 4, 8, 32>}, {pipeline_mode = #tpu.pipeline_mode<synchronous>, transform_indices = @transform_7, window_bounds = array<i64: 32, 64>}, {pipeline_mode = #tpu.pipeline_mode<synchronous>, transform_indices = @transform_8, window_bounds = array<i64: 1, 64>}, {pipeline_mode = #tpu.pipeline_mode<synchronous>, transform_indices = @transform_9, window_bounds = array<i64: 64, 32>}, {pipeline_mode = #tpu.pipeline_mode<synchronous>, transform_indices = @transform_10, window_bounds = array<i64: 1, 32>}, {transform_indices = @transform_11, window_bounds = array<i64: 1, 16, 32>}]} {
    %c0 = arith.constant 0 : index
    %c0_0 = arith.constant 0 : index
    %0 = vector.load %arg5[%c0, %c0_0] : memref<8x32xf32, #tpu.memory_space<vmem>>, vector<8x32xf32>
    %1 = vector.extract_strided_slice %0 {offsets = [2, 0], sizes = [1, 32], strides = [1, 1]} : vector<8x32xf32> to vector<1x32xf32>
    %2 = vector.extract_strided_slice %0 {offsets = [3, 0], sizes = [1, 32], strides = [1, 1]} : vector<8x32xf32> to vector<1x32xf32>
    %3 = vector.extract_strided_slice %0 {offsets = [4, 0], sizes = [1, 32], strides = [1, 1]} : vector<8x32xf32> to vector<1x32xf32>
    %4 = vector.extract_strided_slice %0 {offsets = [5, 0], sizes = [1, 32], strides = [1, 1]} : vector<8x32xf32> to vector<1x32xf32>
    %5 = vector.extract_strided_slice %0 {offsets = [6, 0], sizes = [1, 32], strides = [1, 1]} : vector<8x32xf32> to vector<1x32xf32>
    %6 = vector.extract_strided_slice %0 {offsets = [7, 0], sizes = [1, 32], strides = [1, 1]} : vector<8x32xf32> to vector<1x32xf32>
    %c0_1 = arith.constant 0 : index
    %c0_2 = arith.constant 0 : index
    %c0_3 = arith.constant 0 : index
    %7 = vector.load %arg2[%c0_1, %c0_2, %c0_3] : memref<1x16x32xf32, #tpu.memory_space<vmem>>, vector<1x16x32xf32>
    %8 = vector.shape_cast %7 : vector<1x16x32xf32> to vector<16x32xf32>
    %c0_4 = arith.constant 0 : index
    %c0_5 = arith.constant 0 : index
    %c0_6 = arith.constant 0 : index
    %9 = vector.load %arg3[%c0_4, %c0_5, %c0_6] : memref<1x16x32xf32, #tpu.memory_space<vmem>>, vector<1x16x32xf32>
    %10 = vector.shape_cast %9 : vector<1x16x32xf32> to vector<16x32xf32>
    %c0_7 = arith.constant 0 : index
    %c0_8 = arith.constant 0 : index
    %c0_9 = arith.constant 0 : index
    %11 = vector.load %arg4[%c0_7, %c0_8, %c0_9] : memref<1x1x16xf32, #tpu.memory_space<vmem>>, vector<1x1x16xf32>
    %12 = vector.shape_cast %11 : vector<1x1x16xf32> to vector<1x16xf32>
    %13 = arith.truncf %8 : vector<16x32xf32> to vector<16x32xbf16>
    %14 = arith.truncf %10 : vector<16x32xf32> to vector<16x32xbf16>
    %cst = arith.constant 0.000000e+00 : f32
    %15 = vector.broadcast %cst : f32 to vector<16x32xf32>
    %c0_10 = arith.constant 0 : index
    %c0_11 = arith.constant 0 : index
    %c0_12 = arith.constant 0 : index
    %16 = vector.load %arg6[%c0_10, %c0_11, %c0_12] : memref<4x32x8xbf16, #tpu.memory_space<vmem>>, vector<1x32x8xbf16>
    %17 = vector.shape_cast %16 : vector<1x32x8xbf16> to vector<32x8xbf16>
    %cst_13 = arith.constant dense<0.000000e+00> : vector<16x8xf32>
    %18 = tpu.matmul %14, %17, %cst_13 {dimension_numbers = #tpu.dot_dimension_numbers<[1], [0], [0], [1], [0, 0, 1, 1], [], []>} : vector<16x32xbf16>, vector<32x8xbf16>, vector<16x8xf32> -> vector<16x8xf32>
    %19 = vector.extract_strided_slice %3 {offsets = [0, 0], sizes = [1, 8], strides = [1, 1]} : vector<1x32xf32> to vector<1x8xf32>
    %20 = vector.broadcast %19 : vector<1x8xf32> to vector<16x8xf32>
    %21 = arith.addf %18, %20 : vector<16x8xf32>
    %cst_14 = arith.constant 0.353553385 : f32
    %22 = vector.broadcast %cst_14 : f32 to vector<16x8xf32>
    %23 = arith.mulf %21, %22 : vector<16x8xf32>
    %24 = arith.truncf %23 : vector<16x8xf32> to vector<16x8xbf16>
    %c0_15 = arith.constant 0 : index
    %c0_16 = arith.constant 0 : index
    %c0_17 = arith.constant 0 : index
    %25 = vector.load %arg7[%c0_15, %c0_16, %c0_17] : memref<4x32x16xbf16, #tpu.memory_space<vmem>>, vector<1x32x16xbf16>
    %26 = vector.shape_cast %25 : vector<1x32x16xbf16> to vector<32x16xbf16>
    %cst_18 = arith.constant dense<0.000000e+00> : vector<16x16xf32>
    %27 = tpu.matmul %13, %26, %cst_18 {dimension_numbers = #tpu.dot_dimension_numbers<[1], [0], [0], [1], [0, 0, 1, 1], [], []>} : vector<16x32xbf16>, vector<32x16xbf16>, vector<16x16xf32> -> vector<16x16xf32>
    %28 = vector.extract_strided_slice %27 {offsets = [0, 0], sizes = [16, 8], strides = [1, 1]} : vector<16x16xf32> to vector<16x8xf32>
    %29 = vector.extract_strided_slice %4 {offsets = [0, 0], sizes = [1, 8], strides = [1, 1]} : vector<1x32xf32> to vector<1x8xf32>
    %30 = vector.broadcast %29 : vector<1x8xf32> to vector<16x8xf32>
    %31 = arith.addf %28, %30 : vector<16x8xf32>
    %32 = arith.truncf %31 : vector<16x8xf32> to vector<16x8xbf16>
    %33 = vector.extract_strided_slice %27 {offsets = [0, 8], sizes = [16, 8], strides = [1, 1]} : vector<16x16xf32> to vector<16x8xf32>
    %34 = vector.extract_strided_slice %5 {offsets = [0, 0], sizes = [1, 8], strides = [1, 1]} : vector<1x32xf32> to vector<1x8xf32>
    %35 = vector.broadcast %34 : vector<1x8xf32> to vector<16x8xf32>
    %36 = arith.addf %33, %35 : vector<16x8xf32>
    %37 = arith.truncf %36 : vector<16x8xf32> to vector<16x8xbf16>
    %cst_19 = arith.constant -1.000000e+30 : f32
    %38 = vector.broadcast %cst_19 : f32 to vector<16x1xf32>
    %cst_20 = arith.constant 0.000000e+00 : f32
    %39 = vector.broadcast %cst_20 : f32 to vector<16x1xf32>
    %cst_21 = arith.constant 0.000000e+00 : f32
    %40 = vector.broadcast %cst_21 : f32 to vector<16x8xf32>
    %cst_22 = arith.constant dense<0.000000e+00> : vector<16x16xf32>
    %41 = tpu.matmul %24, %32, %cst_22 {dimension_numbers = #tpu.dot_dimension_numbers<[1], [1], [0], [0], [0, 0, 1, 0], [], []>} : vector<16x8xbf16>, vector<16x8xbf16>, vector<16x16xf32> -> vector<16x16xf32>
    %42 = vector.broadcast %12 : vector<1x16xf32> to vector<16x16xf32>
    %43 = arith.addf %41, %42 : vector<16x16xf32>
    %cst_23 = arith.constant dense<0xFF800000> : vector<16xf32>
    %44 = vector.multi_reduction <maximumf>, %43, %cst_23 [1] : vector<16x16xf32> to vector<16xf32>
    %45 = vector.shape_cast %44 : vector<16xf32> to vector<16x1xf32>
    %46 = arith.maximumf %38, %45 : vector<16x1xf32>
    %47 = arith.subf %38, %46 : vector<16x1xf32>
    %48 = math.exp %47 : vector<16x1xf32>
    %49 = vector.broadcast %46 : vector<16x1xf32> to vector<16x16xf32>
    %50 = arith.subf %43, %49 : vector<16x16xf32>
    %51 = math.exp %50 : vector<16x16xf32>
    %52 = arith.mulf %48, %39 : vector<16x1xf32>
    %cst_24 = arith.constant dense<0.000000e+00> : vector<16xf32>
    %53 = vector.multi_reduction <add>, %51, %cst_24 [1] : vector<16x16xf32> to vector<16xf32>
    %54 = vector.shape_cast %53 : vector<16xf32> to vector<16x1xf32>
    %55 = arith.addf %52, %54 : vector<16x1xf32>
    %56 = vector.broadcast %48 : vector<16x1xf32> to vector<16x8xf32>
    %57 = arith.mulf %56, %40 : vector<16x8xf32>
    %58 = arith.truncf %51 : vector<16x16xf32> to vector<16x16xbf16>
    %cst_25 = arith.constant dense<0.000000e+00> : vector<16x8xf32>
    %59 = tpu.matmul %58, %37, %cst_25 {dimension_numbers = #tpu.dot_dimension_numbers<[1], [0], [0], [1], [0, 0, 1, 1], [], []>} : vector<16x16xbf16>, vector<16x8xbf16>, vector<16x8xf32> -> vector<16x8xf32>
    %60 = arith.addf %57, %59 : vector<16x8xf32>
    %61 = tpu.reciprocal %55 {approx = true} : vector<16x1xf32> -> vector<16x1xf32>
    %62 = vector.broadcast %61 : vector<16x1xf32> to vector<16x8xf32>
    %63 = arith.mulf %60, %62 : vector<16x8xf32>
    %64 = arith.truncf %63 : vector<16x8xf32> to vector<16x8xbf16>
    %c0_26 = arith.constant 0 : index
    %c0_27 = arith.constant 0 : index
    %c0_28 = arith.constant 0 : index
    %65 = vector.load %arg8[%c0_26, %c0_27, %c0_28] : memref<4x8x32xbf16, #tpu.memory_space<vmem>>, vector<1x8x32xbf16>
    %66 = vector.shape_cast %65 : vector<1x8x32xbf16> to vector<8x32xbf16>
    %cst_29 = arith.constant dense<0.000000e+00> : vector<16x32xf32>
    %67 = tpu.matmul %64, %66, %cst_29 {dimension_numbers = #tpu.dot_dimension_numbers<[1], [0], [0], [1], [0, 0, 1, 1], [], []>} : vector<16x8xbf16>, vector<8x32xbf16>, vector<16x32xf32> -> vector<16x32xf32>
    %68 = arith.addf %15, %67 : vector<16x32xf32>
    %c1 = arith.constant 1 : index
    %c0_30 = arith.constant 0 : index
    %c0_31 = arith.constant 0 : index
    %69 = vector.load %arg6[%c1, %c0_30, %c0_31] : memref<4x32x8xbf16, #tpu.memory_space<vmem>>, vector<1x32x8xbf16>
    %70 = vector.shape_cast %69 : vector<1x32x8xbf16> to vector<32x8xbf16>
    %cst_32 = arith.constant dense<0.000000e+00> : vector<16x8xf32>
    %71 = tpu.matmul %14, %70, %cst_32 {dimension_numbers = #tpu.dot_dimension_numbers<[1], [0], [0], [1], [0, 0, 1, 1], [], []>} : vector<16x32xbf16>, vector<32x8xbf16>, vector<16x8xf32> -> vector<16x8xf32>
    %72 = vector.extract_strided_slice %3 {offsets = [0, 8], sizes = [1, 8], strides = [1, 1]} : vector<1x32xf32> to vector<1x8xf32>
    %73 = vector.broadcast %72 : vector<1x8xf32> to vector<16x8xf32>
    %74 = arith.addf %71, %73 : vector<16x8xf32>
    %cst_33 = arith.constant 0.353553385 : f32
    %75 = vector.broadcast %cst_33 : f32 to vector<16x8xf32>
    %76 = arith.mulf %74, %75 : vector<16x8xf32>
    %77 = arith.truncf %76 : vector<16x8xf32> to vector<16x8xbf16>
    %c1_34 = arith.constant 1 : index
    %c0_35 = arith.constant 0 : index
    %c0_36 = arith.constant 0 : index
    %78 = vector.load %arg7[%c1_34, %c0_35, %c0_36] : memref<4x32x16xbf16, #tpu.memory_space<vmem>>, vector<1x32x16xbf16>
    %79 = vector.shape_cast %78 : vector<1x32x16xbf16> to vector<32x16xbf16>
    %cst_37 = arith.constant dense<0.000000e+00> : vector<16x16xf32>
    %80 = tpu.matmul %13, %79, %cst_37 {dimension_numbers = #tpu.dot_dimension_numbers<[1], [0], [0], [1], [0, 0, 1, 1], [], []>} : vector<16x32xbf16>, vector<32x16xbf16>, vector<16x16xf32> -> vector<16x16xf32>
    %81 = vector.extract_strided_slice %80 {offsets = [0, 0], sizes = [16, 8], strides = [1, 1]} : vector<16x16xf32> to vector<16x8xf32>
    %82 = vector.extract_strided_slice %4 {offsets = [0, 8], sizes = [1, 8], strides = [1, 1]} : vector<1x32xf32> to vector<1x8xf32>
    %83 = vector.broadcast %82 : vector<1x8xf32> to vector<16x8xf32>
    %84 = arith.addf %81, %83 : vector<16x8xf32>
    %85 = arith.truncf %84 : vector<16x8xf32> to vector<16x8xbf16>
    %86 = vector.extract_strided_slice %80 {offsets = [0, 8], sizes = [16, 8], strides = [1, 1]} : vector<16x16xf32> to vector<16x8xf32>
    %87 = vector.extract_strided_slice %5 {offsets = [0, 8], sizes = [1, 8], strides = [1, 1]} : vector<1x32xf32> to vector<1x8xf32>
    %88 = vector.broadcast %87 : vector<1x8xf32> to vector<16x8xf32>
    %89 = arith.addf %86, %88 : vector<16x8xf32>
    %90 = arith.truncf %89 : vector<16x8xf32> to vector<16x8xbf16>
    %cst_38 = arith.constant -1.000000e+30 : f32
    %91 = vector.broadcast %cst_38 : f32 to vector<16x1xf32>
    %cst_39 = arith.constant 0.000000e+00 : f32
    %92 = vector.broadcast %cst_39 : f32 to vector<16x1xf32>
    %cst_40 = arith.constant 0.000000e+00 : f32
    %93 = vector.broadcast %cst_40 : f32 to vector<16x8xf32>
    %cst_41 = arith.constant dense<0.000000e+00> : vector<16x16xf32>
    %94 = tpu.matmul %77, %85, %cst_41 {dimension_numbers = #tpu.dot_dimension_numbers<[1], [1], [0], [0], [0, 0, 1, 0], [], []>} : vector<16x8xbf16>, vector<16x8xbf16>, vector<16x16xf32> -> vector<16x16xf32>
    %95 = vector.broadcast %12 : vector<1x16xf32> to vector<16x16xf32>
    %96 = arith.addf %94, %95 : vector<16x16xf32>
    %cst_42 = arith.constant dense<0xFF800000> : vector<16xf32>
    %97 = vector.multi_reduction <maximumf>, %96, %cst_42 [1] : vector<16x16xf32> to vector<16xf32>
    %98 = vector.shape_cast %97 : vector<16xf32> to vector<16x1xf32>
    %99 = arith.maximumf %91, %98 : vector<16x1xf32>
    %100 = arith.subf %91, %99 : vector<16x1xf32>
    %101 = math.exp %100 : vector<16x1xf32>
    %102 = vector.broadcast %99 : vector<16x1xf32> to vector<16x16xf32>
    %103 = arith.subf %96, %102 : vector<16x16xf32>
    %104 = math.exp %103 : vector<16x16xf32>
    %105 = arith.mulf %101, %92 : vector<16x1xf32>
    %cst_43 = arith.constant dense<0.000000e+00> : vector<16xf32>
    %106 = vector.multi_reduction <add>, %104, %cst_43 [1] : vector<16x16xf32> to vector<16xf32>
    %107 = vector.shape_cast %106 : vector<16xf32> to vector<16x1xf32>
    %108 = arith.addf %105, %107 : vector<16x1xf32>
    %109 = vector.broadcast %101 : vector<16x1xf32> to vector<16x8xf32>
    %110 = arith.mulf %109, %93 : vector<16x8xf32>
    %111 = arith.truncf %104 : vector<16x16xf32> to vector<16x16xbf16>
    %cst_44 = arith.constant dense<0.000000e+00> : vector<16x8xf32>
    %112 = tpu.matmul %111, %90, %cst_44 {dimension_numbers = #tpu.dot_dimension_numbers<[1], [0], [0], [1], [0, 0, 1, 1], [], []>} : vector<16x16xbf16>, vector<16x8xbf16>, vector<16x8xf32> -> vector<16x8xf32>
    %113 = arith.addf %110, %112 : vector<16x8xf32>
    %114 = tpu.reciprocal %108 {approx = true} : vector<16x1xf32> -> vector<16x1xf32>
    %115 = vector.broadcast %114 : vector<16x1xf32> to vector<16x8xf32>
    %116 = arith.mulf %113, %115 : vector<16x8xf32>
    %117 = arith.truncf %116 : vector<16x8xf32> to vector<16x8xbf16>
    %c1_45 = arith.constant 1 : index
    %c0_46 = arith.constant 0 : index
    %c0_47 = arith.constant 0 : index
    %118 = vector.load %arg8[%c1_45, %c0_46, %c0_47] : memref<4x8x32xbf16, #tpu.memory_space<vmem>>, vector<1x8x32xbf16>
    %119 = vector.shape_cast %118 : vector<1x8x32xbf16> to vector<8x32xbf16>
    %cst_48 = arith.constant dense<0.000000e+00> : vector<16x32xf32>
    %120 = tpu.matmul %117, %119, %cst_48 {dimension_numbers = #tpu.dot_dimension_numbers<[1], [0], [0], [1], [0, 0, 1, 1], [], []>} : vector<16x8xbf16>, vector<8x32xbf16>, vector<16x32xf32> -> vector<16x32xf32>
    %121 = arith.addf %68, %120 : vector<16x32xf32>
    %c2 = arith.constant 2 : index
    %c0_49 = arith.constant 0 : index
    %c0_50 = arith.constant 0 : index
    %122 = vector.load %arg6[%c2, %c0_49, %c0_50] : memref<4x32x8xbf16, #tpu.memory_space<vmem>>, vector<1x32x8xbf16>
    %123 = vector.shape_cast %122 : vector<1x32x8xbf16> to vector<32x8xbf16>
    %cst_51 = arith.constant dense<0.000000e+00> : vector<16x8xf32>
    %124 = tpu.matmul %14, %123, %cst_51 {dimension_numbers = #tpu.dot_dimension_numbers<[1], [0], [0], [1], [0, 0, 1, 1], [], []>} : vector<16x32xbf16>, vector<32x8xbf16>, vector<16x8xf32> -> vector<16x8xf32>
    %125 = vector.extract_strided_slice %3 {offsets = [0, 16], sizes = [1, 8], strides = [1, 1]} : vector<1x32xf32> to vector<1x8xf32>
    %126 = vector.broadcast %125 : vector<1x8xf32> to vector<16x8xf32>
    %127 = arith.addf %124, %126 : vector<16x8xf32>
    %cst_52 = arith.constant 0.353553385 : f32
    %128 = vector.broadcast %cst_52 : f32 to vector<16x8xf32>
    %129 = arith.mulf %127, %128 : vector<16x8xf32>
    %130 = arith.truncf %129 : vector<16x8xf32> to vector<16x8xbf16>
    %c2_53 = arith.constant 2 : index
    %c0_54 = arith.constant 0 : index
    %c0_55 = arith.constant 0 : index
    %131 = vector.load %arg7[%c2_53, %c0_54, %c0_55] : memref<4x32x16xbf16, #tpu.memory_space<vmem>>, vector<1x32x16xbf16>
    %132 = vector.shape_cast %131 : vector<1x32x16xbf16> to vector<32x16xbf16>
    %cst_56 = arith.constant dense<0.000000e+00> : vector<16x16xf32>
    %133 = tpu.matmul %13, %132, %cst_56 {dimension_numbers = #tpu.dot_dimension_numbers<[1], [0], [0], [1], [0, 0, 1, 1], [], []>} : vector<16x32xbf16>, vector<32x16xbf16>, vector<16x16xf32> -> vector<16x16xf32>
    %134 = vector.extract_strided_slice %133 {offsets = [0, 0], sizes = [16, 8], strides = [1, 1]} : vector<16x16xf32> to vector<16x8xf32>
    %135 = vector.extract_strided_slice %4 {offsets = [0, 16], sizes = [1, 8], strides = [1, 1]} : vector<1x32xf32> to vector<1x8xf32>
    %136 = vector.broadcast %135 : vector<1x8xf32> to vector<16x8xf32>
    %137 = arith.addf %134, %136 : vector<16x8xf32>
    %138 = arith.truncf %137 : vector<16x8xf32> to vector<16x8xbf16>
    %139 = vector.extract_strided_slice %133 {offsets = [0, 8], sizes = [16, 8], strides = [1, 1]} : vector<16x16xf32> to vector<16x8xf32>
    %140 = vector.extract_strided_slice %5 {offsets = [0, 16], sizes = [1, 8], strides = [1, 1]} : vector<1x32xf32> to vector<1x8xf32>
    %141 = vector.broadcast %140 : vector<1x8xf32> to vector<16x8xf32>
    %142 = arith.addf %139, %141 : vector<16x8xf32>
    %143 = arith.truncf %142 : vector<16x8xf32> to vector<16x8xbf16>
    %cst_57 = arith.constant -1.000000e+30 : f32
    %144 = vector.broadcast %cst_57 : f32 to vector<16x1xf32>
    %cst_58 = arith.constant 0.000000e+00 : f32
    %145 = vector.broadcast %cst_58 : f32 to vector<16x1xf32>
    %cst_59 = arith.constant 0.000000e+00 : f32
    %146 = vector.broadcast %cst_59 : f32 to vector<16x8xf32>
    %cst_60 = arith.constant dense<0.000000e+00> : vector<16x16xf32>
    %147 = tpu.matmul %130, %138, %cst_60 {dimension_numbers = #tpu.dot_dimension_numbers<[1], [1], [0], [0], [0, 0, 1, 0], [], []>} : vector<16x8xbf16>, vector<16x8xbf16>, vector<16x16xf32> -> vector<16x16xf32>
    %148 = vector.broadcast %12 : vector<1x16xf32> to vector<16x16xf32>
    %149 = arith.addf %147, %148 : vector<16x16xf32>
    %cst_61 = arith.constant dense<0xFF800000> : vector<16xf32>
    %150 = vector.multi_reduction <maximumf>, %149, %cst_61 [1] : vector<16x16xf32> to vector<16xf32>
    %151 = vector.shape_cast %150 : vector<16xf32> to vector<16x1xf32>
    %152 = arith.maximumf %144, %151 : vector<16x1xf32>
    %153 = arith.subf %144, %152 : vector<16x1xf32>
    %154 = math.exp %153 : vector<16x1xf32>
    %155 = vector.broadcast %152 : vector<16x1xf32> to vector<16x16xf32>
    %156 = arith.subf %149, %155 : vector<16x16xf32>
    %157 = math.exp %156 : vector<16x16xf32>
    %158 = arith.mulf %154, %145 : vector<16x1xf32>
    %cst_62 = arith.constant dense<0.000000e+00> : vector<16xf32>
    %159 = vector.multi_reduction <add>, %157, %cst_62 [1] : vector<16x16xf32> to vector<16xf32>
    %160 = vector.shape_cast %159 : vector<16xf32> to vector<16x1xf32>
    %161 = arith.addf %158, %160 : vector<16x1xf32>
    %162 = vector.broadcast %154 : vector<16x1xf32> to vector<16x8xf32>
    %163 = arith.mulf %162, %146 : vector<16x8xf32>
    %164 = arith.truncf %157 : vector<16x16xf32> to vector<16x16xbf16>
    %cst_63 = arith.constant dense<0.000000e+00> : vector<16x8xf32>
    %165 = tpu.matmul %164, %143, %cst_63 {dimension_numbers = #tpu.dot_dimension_numbers<[1], [0], [0], [1], [0, 0, 1, 1], [], []>} : vector<16x16xbf16>, vector<16x8xbf16>, vector<16x8xf32> -> vector<16x8xf32>
    %166 = arith.addf %163, %165 : vector<16x8xf32>
    %167 = tpu.reciprocal %161 {approx = true} : vector<16x1xf32> -> vector<16x1xf32>
    %168 = vector.broadcast %167 : vector<16x1xf32> to vector<16x8xf32>
    %169 = arith.mulf %166, %168 : vector<16x8xf32>
    %170 = arith.truncf %169 : vector<16x8xf32> to vector<16x8xbf16>
    %c2_64 = arith.constant 2 : index
    %c0_65 = arith.constant 0 : index
    %c0_66 = arith.constant 0 : index
    %171 = vector.load %arg8[%c2_64, %c0_65, %c0_66] : memref<4x8x32xbf16, #tpu.memory_space<vmem>>, vector<1x8x32xbf16>
    %172 = vector.shape_cast %171 : vector<1x8x32xbf16> to vector<8x32xbf16>
    %cst_67 = arith.constant dense<0.000000e+00> : vector<16x32xf32>
    %173 = tpu.matmul %170, %172, %cst_67 {dimension_numbers = #tpu.dot_dimension_numbers<[1], [0], [0], [1], [0, 0, 1, 1], [], []>} : vector<16x8xbf16>, vector<8x32xbf16>, vector<16x32xf32> -> vector<16x32xf32>
    %174 = arith.addf %121, %173 : vector<16x32xf32>
    %c3 = arith.constant 3 : index
    %c0_68 = arith.constant 0 : index
    %c0_69 = arith.constant 0 : index
    %175 = vector.load %arg6[%c3, %c0_68, %c0_69] : memref<4x32x8xbf16, #tpu.memory_space<vmem>>, vector<1x32x8xbf16>
    %176 = vector.shape_cast %175 : vector<1x32x8xbf16> to vector<32x8xbf16>
    %cst_70 = arith.constant dense<0.000000e+00> : vector<16x8xf32>
    %177 = tpu.matmul %14, %176, %cst_70 {dimension_numbers = #tpu.dot_dimension_numbers<[1], [0], [0], [1], [0, 0, 1, 1], [], []>} : vector<16x32xbf16>, vector<32x8xbf16>, vector<16x8xf32> -> vector<16x8xf32>
    %178 = vector.extract_strided_slice %3 {offsets = [0, 24], sizes = [1, 8], strides = [1, 1]} : vector<1x32xf32> to vector<1x8xf32>
    %179 = vector.broadcast %178 : vector<1x8xf32> to vector<16x8xf32>
    %180 = arith.addf %177, %179 : vector<16x8xf32>
    %cst_71 = arith.constant 0.353553385 : f32
    %181 = vector.broadcast %cst_71 : f32 to vector<16x8xf32>
    %182 = arith.mulf %180, %181 : vector<16x8xf32>
    %183 = arith.truncf %182 : vector<16x8xf32> to vector<16x8xbf16>
    %c3_72 = arith.constant 3 : index
    %c0_73 = arith.constant 0 : index
    %c0_74 = arith.constant 0 : index
    %184 = vector.load %arg7[%c3_72, %c0_73, %c0_74] : memref<4x32x16xbf16, #tpu.memory_space<vmem>>, vector<1x32x16xbf16>
    %185 = vector.shape_cast %184 : vector<1x32x16xbf16> to vector<32x16xbf16>
    %cst_75 = arith.constant dense<0.000000e+00> : vector<16x16xf32>
    %186 = tpu.matmul %13, %185, %cst_75 {dimension_numbers = #tpu.dot_dimension_numbers<[1], [0], [0], [1], [0, 0, 1, 1], [], []>} : vector<16x32xbf16>, vector<32x16xbf16>, vector<16x16xf32> -> vector<16x16xf32>
    %187 = vector.extract_strided_slice %186 {offsets = [0, 0], sizes = [16, 8], strides = [1, 1]} : vector<16x16xf32> to vector<16x8xf32>
    %188 = vector.extract_strided_slice %4 {offsets = [0, 24], sizes = [1, 8], strides = [1, 1]} : vector<1x32xf32> to vector<1x8xf32>
    %189 = vector.broadcast %188 : vector<1x8xf32> to vector<16x8xf32>
    %190 = arith.addf %187, %189 : vector<16x8xf32>
    %191 = arith.truncf %190 : vector<16x8xf32> to vector<16x8xbf16>
    %192 = vector.extract_strided_slice %186 {offsets = [0, 8], sizes = [16, 8], strides = [1, 1]} : vector<16x16xf32> to vector<16x8xf32>
    %193 = vector.extract_strided_slice %5 {offsets = [0, 24], sizes = [1, 8], strides = [1, 1]} : vector<1x32xf32> to vector<1x8xf32>
    %194 = vector.broadcast %193 : vector<1x8xf32> to vector<16x8xf32>
    %195 = arith.addf %192, %194 : vector<16x8xf32>
    %196 = arith.truncf %195 : vector<16x8xf32> to vector<16x8xbf16>
    %cst_76 = arith.constant -1.000000e+30 : f32
    %197 = vector.broadcast %cst_76 : f32 to vector<16x1xf32>
    %cst_77 = arith.constant 0.000000e+00 : f32
    %198 = vector.broadcast %cst_77 : f32 to vector<16x1xf32>
    %cst_78 = arith.constant 0.000000e+00 : f32
    %199 = vector.broadcast %cst_78 : f32 to vector<16x8xf32>
    %cst_79 = arith.constant dense<0.000000e+00> : vector<16x16xf32>
    %200 = tpu.matmul %183, %191, %cst_79 {dimension_numbers = #tpu.dot_dimension_numbers<[1], [1], [0], [0], [0, 0, 1, 0], [], []>} : vector<16x8xbf16>, vector<16x8xbf16>, vector<16x16xf32> -> vector<16x16xf32>
    %201 = vector.broadcast %12 : vector<1x16xf32> to vector<16x16xf32>
    %202 = arith.addf %200, %201 : vector<16x16xf32>
    %cst_80 = arith.constant dense<0xFF800000> : vector<16xf32>
    %203 = vector.multi_reduction <maximumf>, %202, %cst_80 [1] : vector<16x16xf32> to vector<16xf32>
    %204 = vector.shape_cast %203 : vector<16xf32> to vector<16x1xf32>
    %205 = arith.maximumf %197, %204 : vector<16x1xf32>
    %206 = arith.subf %197, %205 : vector<16x1xf32>
    %207 = math.exp %206 : vector<16x1xf32>
    %208 = vector.broadcast %205 : vector<16x1xf32> to vector<16x16xf32>
    %209 = arith.subf %202, %208 : vector<16x16xf32>
    %210 = math.exp %209 : vector<16x16xf32>
    %211 = arith.mulf %207, %198 : vector<16x1xf32>
    %cst_81 = arith.constant dense<0.000000e+00> : vector<16xf32>
    %212 = vector.multi_reduction <add>, %210, %cst_81 [1] : vector<16x16xf32> to vector<16xf32>
    %213 = vector.shape_cast %212 : vector<16xf32> to vector<16x1xf32>
    %214 = arith.addf %211, %213 : vector<16x1xf32>
    %215 = vector.broadcast %207 : vector<16x1xf32> to vector<16x8xf32>
    %216 = arith.mulf %215, %199 : vector<16x8xf32>
    %217 = arith.truncf %210 : vector<16x16xf32> to vector<16x16xbf16>
    %cst_82 = arith.constant dense<0.000000e+00> : vector<16x8xf32>
    %218 = tpu.matmul %217, %196, %cst_82 {dimension_numbers = #tpu.dot_dimension_numbers<[1], [0], [0], [1], [0, 0, 1, 1], [], []>} : vector<16x16xbf16>, vector<16x8xbf16>, vector<16x8xf32> -> vector<16x8xf32>
    %219 = arith.addf %216, %218 : vector<16x8xf32>
    %220 = tpu.reciprocal %214 {approx = true} : vector<16x1xf32> -> vector<16x1xf32>
    %221 = vector.broadcast %220 : vector<16x1xf32> to vector<16x8xf32>
    %222 = arith.mulf %219, %221 : vector<16x8xf32>
    %223 = arith.truncf %222 : vector<16x8xf32> to vector<16x8xbf16>
    %c3_83 = arith.constant 3 : index
    %c0_84 = arith.constant 0 : index
    %c0_85 = arith.constant 0 : index
    %224 = vector.load %arg8[%c3_83, %c0_84, %c0_85] : memref<4x8x32xbf16, #tpu.memory_space<vmem>>, vector<1x8x32xbf16>
    %225 = vector.shape_cast %224 : vector<1x8x32xbf16> to vector<8x32xbf16>
    %cst_86 = arith.constant dense<0.000000e+00> : vector<16x32xf32>
    %226 = tpu.matmul %223, %225, %cst_86 {dimension_numbers = #tpu.dot_dimension_numbers<[1], [0], [0], [1], [0, 0, 1, 1], [], []>} : vector<16x8xbf16>, vector<8x32xbf16>, vector<16x32xf32> -> vector<16x32xf32>
    %227 = arith.addf %174, %226 : vector<16x32xf32>
    %228 = vector.broadcast %6 : vector<1x32xf32> to vector<16x32xf32>
    %229 = arith.addf %227, %228 : vector<16x32xf32>
    %230 = arith.addf %229, %10 : vector<16x32xf32>
    %cst_87 = arith.constant dense<0.000000e+00> : vector<16xf32>
    %231 = vector.multi_reduction <add>, %230, %cst_87 [1] : vector<16x32xf32> to vector<16xf32>
    %232 = vector.shape_cast %231 : vector<16xf32> to vector<16x1xf32>
    %cst_88 = arith.constant 3.200000e+01 : f32
    %233 = vector.broadcast %cst_88 : f32 to vector<16x1xf32>
    %234 = arith.divf %232, %233 : vector<16x1xf32>
    %235 = vector.broadcast %234 : vector<16x1xf32> to vector<16x32xf32>
    %236 = arith.subf %230, %235 : vector<16x32xf32>
    %237 = arith.mulf %236, %236 : vector<16x32xf32>
    %cst_89 = arith.constant dense<0.000000e+00> : vector<16xf32>
    %238 = vector.multi_reduction <add>, %237, %cst_89 [1] : vector<16x32xf32> to vector<16xf32>
    %239 = vector.shape_cast %238 : vector<16xf32> to vector<16x1xf32>
    %cst_90 = arith.constant 3.200000e+01 : f32
    %240 = vector.broadcast %cst_90 : f32 to vector<16x1xf32>
    %241 = arith.divf %239, %240 : vector<16x1xf32>
    %cst_91 = arith.constant 9.99999997E-7 : f32
    %242 = vector.broadcast %cst_91 : f32 to vector<16x1xf32>
    %243 = arith.addf %241, %242 : vector<16x1xf32>
    %244 = math.rsqrt %243 : vector<16x1xf32>
    %245 = vector.broadcast %244 : vector<16x1xf32> to vector<16x32xf32>
    %246 = arith.mulf %236, %245 : vector<16x32xf32>
    %247 = vector.broadcast %1 : vector<1x32xf32> to vector<16x32xf32>
    %248 = arith.mulf %246, %247 : vector<16x32xf32>
    %249 = vector.broadcast %2 : vector<1x32xf32> to vector<16x32xf32>
    %250 = arith.addf %248, %249 : vector<16x32xf32>
    %251 = arith.truncf %250 : vector<16x32xf32> to vector<16x32xbf16>
    %c0_92 = arith.constant 0 : index
    %c0_93 = arith.constant 0 : index
    %252 = vector.load %arg9[%c0_92, %c0_93] : memref<32x64xbf16, #tpu.memory_space<vmem>>, vector<32x64xbf16>
    %cst_94 = arith.constant dense<0.000000e+00> : vector<16x64xf32>
    %253 = tpu.matmul %251, %252, %cst_94 {dimension_numbers = #tpu.dot_dimension_numbers<[1], [0], [0], [1], [0, 0, 1, 1], [], []>} : vector<16x32xbf16>, vector<32x64xbf16>, vector<16x64xf32> -> vector<16x64xf32>
    %c0_95 = arith.constant 0 : index
    %c0_96 = arith.constant 0 : index
    %254 = vector.load %arg10[%c0_95, %c0_96] : memref<1x64xf32, #tpu.memory_space<vmem>>, vector<1x64xf32>
    %255 = vector.broadcast %254 : vector<1x64xf32> to vector<16x64xf32>
    %256 = arith.addf %253, %255 : vector<16x64xf32>
    %cst_97 = arith.constant 5.000000e-01 : f32
    %257 = vector.broadcast %cst_97 : f32 to vector<16x64xf32>
    %258 = arith.mulf %257, %256 : vector<16x64xf32>
    %cst_98 = arith.constant 4.471500e-02 : f32
    %259 = vector.broadcast %cst_98 : f32 to vector<16x64xf32>
    %260 = arith.mulf %259, %256 : vector<16x64xf32>
    %261 = arith.mulf %260, %256 : vector<16x64xf32>
    %262 = arith.mulf %261, %256 : vector<16x64xf32>
    %263 = arith.addf %256, %262 : vector<16x64xf32>
    %cst_99 = arith.constant 0.797884583 : f32
    %264 = vector.broadcast %cst_99 : f32 to vector<16x64xf32>
    %265 = arith.mulf %264, %263 : vector<16x64xf32>
    %266 = math.tanh %265 : vector<16x64xf32>
    %cst_100 = arith.constant 1.000000e+00 : f32
    %267 = vector.broadcast %cst_100 : f32 to vector<16x64xf32>
    %268 = arith.addf %267, %266 : vector<16x64xf32>
    %269 = arith.mulf %258, %268 : vector<16x64xf32>
    %270 = arith.truncf %269 : vector<16x64xf32> to vector<16x64xbf16>
    %c0_101 = arith.constant 0 : index
    %c0_102 = arith.constant 0 : index
    %271 = vector.load %arg11[%c0_101, %c0_102] : memref<64x32xbf16, #tpu.memory_space<vmem>>, vector<64x32xbf16>
    %cst_103 = arith.constant dense<0.000000e+00> : vector<16x32xf32>
    %272 = tpu.matmul %270, %271, %cst_103 {dimension_numbers = #tpu.dot_dimension_numbers<[1], [0], [0], [1], [0, 0, 1, 1], [], []>} : vector<16x64xbf16>, vector<64x32xbf16>, vector<16x32xf32> -> vector<16x32xf32>
    %c0_104 = arith.constant 0 : index
    %c0_105 = arith.constant 0 : index
    %273 = vector.load %arg12[%c0_104, %c0_105] : memref<1x32xf32, #tpu.memory_space<vmem>>, vector<1x32xf32>
    %274 = vector.broadcast %273 : vector<1x32xf32> to vector<16x32xf32>
    %275 = arith.addf %272, %274 : vector<16x32xf32>
    %276 = arith.addf %275, %230 : vector<16x32xf32>
    %c0_106 = arith.constant 0 : index
    %c0_107 = arith.constant 0 : index
    %c0_108 = arith.constant 0 : index
    %277 = vector.load %arg13[%c0_106, %c0_107, %c0_108] : memref<1x16x32xf32, #tpu.memory_space<vmem>>, vector<1x16x32xf32>
    %278 = vector.shape_cast %277 : vector<1x16x32xf32> to vector<16x32xf32>
    %279 = vector.shape_cast %276 : vector<16x32xf32> to vector<1x16x32xf32>
    tpu.vector_store %arg13[%c0_106, %c0_107, %c0_108], %279 {strides = array<i32>} : memref<1x16x32xf32, #tpu.memory_space<vmem>>, vector<1x16x32xf32>,
    return
  }
  func.func @transform_0(%arg0: i32, %arg1: i32) -> (i32, i32, i32) {
    %c0_i32 = arith.constant 0 : i32
    %c0_i32_0 = arith.constant 0 : i32
    %c0_i32_1 = arith.constant 0 : i32
    return %arg0, %c0_i32, %c0_i32_0 : i32, i32, i32
  }
  func.func @transform_1(%arg0: i32, %arg1: i32) -> (i32, i32, i32) {
    %c0_i32 = arith.constant 0 : i32
    %c0_i32_0 = arith.constant 0 : i32
    return %arg0, %arg1, %c0_i32 : i32, i32, i32
  }
  func.func @transform_2(%arg0: i32, %arg1: i32) -> (i32, i32, i32) {
    %c0_i32 = arith.constant 0 : i32
    %c0_i32_0 = arith.constant 0 : i32
    %c0_i32_1 = arith.constant 0 : i32
    return %arg0, %c0_i32, %c0_i32_0 : i32, i32, i32
  }
  func.func @transform_3(%arg0: i32, %arg1: i32) -> (i32, i32) {
    %c0_i32 = arith.constant 0 : i32
    %c0_i32_0 = arith.constant 0 : i32
    %c0_i32_1 = arith.constant 0 : i32
    return %c0_i32, %c0_i32_0 : i32, i32
  }
  func.func @transform_4(%arg0: i32, %arg1: i32) -> (i32, i32, i32) {
    %c0_i32 = arith.constant 0 : i32
    %c0_i32_0 = arith.constant 0 : i32
    %c0_i32_1 = arith.constant 0 : i32
    %c0_i32_2 = arith.constant 0 : i32
    return %c0_i32, %c0_i32_0, %c0_i32_1 : i32, i32, i32
  }
  func.func @transform_5(%arg0: i32, %arg1: i32) -> (i32, i32, i32) {
    %c0_i32 = arith.constant 0 : i32
    %c0_i32_0 = arith.constant 0 : i32
    %c0_i32_1 = arith.constant 0 : i32
    %c0_i32_2 = arith.constant 0 : i32
    return %c0_i32, %c0_i32_0, %c0_i32_1 : i32, i32, i32
  }
  func.func @transform_6(%arg0: i32, %arg1: i32) -> (i32, i32, i32) {
    %c0_i32 = arith.constant 0 : i32
    %c0_i32_0 = arith.constant 0 : i32
    %c0_i32_1 = arith.constant 0 : i32
    %c0_i32_2 = arith.constant 0 : i32
    return %c0_i32, %c0_i32_0, %c0_i32_1 : i32, i32, i32
  }
  func.func @transform_7(%arg0: i32, %arg1: i32) -> (i32, i32) {
    %c0_i32 = arith.constant 0 : i32
    %c0_i32_0 = arith.constant 0 : i32
    %c0_i32_1 = arith.constant 0 : i32
    return %c0_i32, %c0_i32_0 : i32, i32
  }
  func.func @transform_8(%arg0: i32, %arg1: i32) -> (i32, i32) {
    %c0_i32 = arith.constant 0 : i32
    %c0_i32_0 = arith.constant 0 : i32
    %c0_i32_1 = arith.constant 0 : i32
    return %c0_i32, %c0_i32_0 : i32, i32
  }
  func.func @transform_9(%arg0: i32, %arg1: i32) -> (i32, i32) {
    %c0_i32 = arith.constant 0 : i32
    %c0_i32_0 = arith.constant 0 : i32
    %c0_i32_1 = arith.constant 0 : i32
    return %c0_i32, %c0_i32_0 : i32, i32
  }
  func.func @transform_10(%arg0: i32, %arg1: i32) -> (i32, i32) {
    %c0_i32 = arith.constant 0 : i32
    %c0_i32_0 = arith.constant 0 : i32
    %c0_i32_1 = arith.constant 0 : i32
    return %c0_i32, %c0_i32_0 : i32, i32
  }
  func.func @transform_11(%arg0: i32, %arg1: i32) -> (i32, i32, i32) {
    %c0_i32 = arith.constant 0 : i32
    %c0_i32_0 = arith.constant 0 : i32
    return %arg0, %arg1, %c0_i32 : i32, i32, i32
  }
}

module attributes {stable_mosaic.version = 11 : i64} {
  func.func @_encoder_layer_kernel(%arg0: i32, %arg1: i32, %arg2: memref<1x16x32xf32, #tpu.memory_space<vmem>>, %arg3: memref<1x16x32xf32, #tpu.memory_space<vmem>>, %arg4: memref<1x1x16xf32, #tpu.memory_space<vmem>>, %arg5: memref<8x32xf32, #tpu.memory_space<vmem>>, %arg6: memref<4x32x8xbf16, #tpu.memory_space<vmem>>, %arg7: memref<4x32x16xbf16, #tpu.memory_space<vmem>>, %arg8: memref<4x8x32xbf16, #tpu.memory_space<vmem>>, %arg9: memref<32x64xbf16, #tpu.memory_space<vmem>>, %arg10: memref<1x64xf32, #tpu.memory_space<vmem>>, %arg11: memref<64x32xbf16, #tpu.memory_space<vmem>>, %arg12: memref<1x32xf32, #tpu.memory_space<vmem>>, %arg13: memref<1x16x32xf32, #tpu.memory_space<vmem>>) attributes {dimension_semantics = [#tpu.dimension_semantics<parallel>, #tpu.dimension_semantics<parallel>], iteration_bounds = array<i64: 2, 1>, scalar_prefetch = 0 : i64, scratch_operands = 0 : i64, tpu.core_type = #tpu.core_type<tc>, window_params = [{transform_indices = @transform_0, window_bounds = array<i64: 1, 16, 32>}, {transform_indices = @transform_1, window_bounds = array<i64: 1, 16, 32>}, {transform_indices = @transform_2, window_bounds = array<i64: 1, 1, 16>}, {pipeline_mode = #tpu.pipeline_mode<synchronous>, transform_indices = @transform_3, window_bounds = array<i64: 8, 32>}, {pipeline_mode = #tpu.pipeline_mode<synchronous>, transform_indices = @transform_4, window_bounds = array<i64: 4, 32, 8>}, {pipeline_mode = #tpu.pipeline_mode<synchronous>, transform_indices = @transform_5, window_bounds = array<i64: 4, 32, 16>}, {pipeline_mode = #tpu.pipeline_mode<synchronous>, transform_indices = @transform_6, window_bounds = array<i64: 4, 8, 32>}, {pipeline_mode = #tpu.pipeline_mode<synchronous>, transform_indices = @transform_7, window_bounds = array<i64: 32, 64>}, {pipeline_mode = #tpu.pipeline_mode<synchronous>, transform_indices = @transform_8, window_bounds = array<i64: 1, 64>}, {pipeline_mode = #tpu.pipeline_mode<synchronous>, transform_indices = @transform_9, window_bounds = array<i64: 64, 32>}, {pipeline_mode = #tpu.pipeline_mode<synchronous>, transform_indices = @transform_10, window_bounds = array<i64: 1, 32>}, {transform_indices = @transform_11, window_bounds = array<i64: 1, 16, 32>}]} {
    %c0 = arith.constant 0 : index
    %c0_0 = arith.constant 0 : index
    %0 = vector.load %arg5[%c0, %c0_0] : memref<8x32xf32, #tpu.memory_space<vmem>>, vector<8x32xf32>
    %1 = vector.extract_strided_slice %0 {offsets = [2, 0], sizes = [1, 32], strides = [1, 1]} : vector<8x32xf32> to vector<1x32xf32>
    %2 = vector.extract_strided_slice %0 {offsets = [3, 0], sizes = [1, 32], strides = [1, 1]} : vector<8x32xf32> to vector<1x32xf32>
    %3 = vector.extract_strided_slice %0 {offsets = [4, 0], sizes = [1, 32], strides = [1, 1]} : vector<8x32xf32> to vector<1x32xf32>
    %4 = vector.extract_strided_slice %0 {offsets = [5, 0], sizes = [1, 32], strides = [1, 1]} : vector<8x32xf32> to vector<1x32xf32>
    %5 = vector.extract_strided_slice %0 {offsets = [6, 0], sizes = [1, 32], strides = [1, 1]} : vector<8x32xf32> to vector<1x32xf32>
    %6 = vector.extract_strided_slice %0 {offsets = [7, 0], sizes = [1, 32], strides = [1, 1]} : vector<8x32xf32> to vector<1x32xf32>
    %c0_1 = arith.constant 0 : index
    %c0_2 = arith.constant 0 : index
    %c0_3 = arith.constant 0 : index
    %7 = vector.load %arg2[%c0_1, %c0_2, %c0_3] : memref<1x16x32xf32, #tpu.memory_space<vmem>>, vector<1x16x32xf32>
    %8 = vector.shape_cast %7 : vector<1x16x32xf32> to vector<16x32xf32>
    %c0_4 = arith.constant 0 : index
    %c0_5 = arith.constant 0 : index
    %c0_6 = arith.constant 0 : index
    %9 = vector.load %arg3[%c0_4, %c0_5, %c0_6] : memref<1x16x32xf32, #tpu.memory_space<vmem>>, vector<1x16x32xf32>
    %10 = vector.shape_cast %9 : vector<1x16x32xf32> to vector<16x32xf32>
    %c0_7 = arith.constant 0 : index
    %c0_8 = arith.constant 0 : index
    %c0_9 = arith.constant 0 : index
    %11 = vector.load %arg4[%c0_7, %c0_8, %c0_9] : memref<1x1x16xf32, #tpu.memory_space<vmem>>, vector<1x1x16xf32>
    %12 = vector.shape_cast %11 : vector<1x1x16xf32> to vector<1x16xf32>
    %13 = arith.truncf %8 : vector<16x32xf32> to vector<16x32xbf16>
    %14 = arith.truncf %10 : vector<16x32xf32> to vector<16x32xbf16>
    %cst = arith.constant 0.000000e+00 : f32
    %15 = vector.broadcast %cst : f32 to vector<16x32xf32>
    %c0_10 = arith.constant 0 : index
    %c0_11 = arith.constant 0 : index
    %c0_12 = arith.constant 0 : index
    %16 = vector.load %arg6[%c0_10, %c0_11, %c0_12] : memref<4x32x8xbf16, #tpu.memory_space<vmem>>, vector<1x32x8xbf16>
    %17 = vector.shape_cast %16 : vector<1x32x8xbf16> to vector<32x8xbf16>
    %cst_13 = arith.constant dense<0.000000e+00> : vector<16x8xf32>
    %18 = tpu.matmul %14, %17, %cst_13 {dimension_numbers = #tpu.dot_dimension_numbers<[1], [0], [0], [1], [0, 0, 1, 1], [], []>} : vector<16x32xbf16>, vector<32x8xbf16>, vector<16x8xf32> -> vector<16x8xf32>
    %19 = vector.extract_strided_slice %3 {offsets = [0, 0], sizes = [1, 8], strides = [1, 1]} : vector<1x32xf32> to vector<1x8xf32>
    %20 = vector.broadcast %19 : vector<1x8xf32> to vector<16x8xf32>
    %21 = arith.addf %18, %20 : vector<16x8xf32>
    %cst_14 = arith.constant 0.353553385 : f32
    %22 = vector.broadcast %cst_14 : f32 to vector<16x8xf32>
    %23 = arith.mulf %21, %22 : vector<16x8xf32>
    %24 = arith.truncf %23 : vector<16x8xf32> to vector<16x8xbf16>
    %c0_15 = arith.constant 0 : index
    %c0_16 = arith.constant 0 : index
    %c0_17 = arith.constant 0 : index
    %25 = vector.load %arg7[%c0_15, %c0_16, %c0_17] : memref<4x32x16xbf16, #tpu.memory_space<vmem>>, vector<1x32x16xbf16>
    %26 = vector.shape_cast %25 : vector<1x32x16xbf16> to vector<32x16xbf16>
    %cst_18 = arith.constant dense<0.000000e+00> : vector<16x16xf32>
    %27 = tpu.matmul %13, %26, %cst_18 {dimension_numbers = #tpu.dot_dimension_numbers<[1], [0], [0], [1], [0, 0, 1, 1], [], []>} : vector<16x32xbf16>, vector<32x16xbf16>, vector<16x16xf32> -> vector<16x16xf32>
    %28 = vector.extract_strided_slice %27 {offsets = [0, 0], sizes = [16, 8], strides = [1, 1]} : vector<16x16xf32> to vector<16x8xf32>
    %29 = vector.extract_strided_slice %4 {offsets = [0, 0], sizes = [1, 8], strides = [1, 1]} : vector<1x32xf32> to vector<1x8xf32>
    %30 = vector.broadcast %29 : vector<1x8xf32> to vector<16x8xf32>
    %31 = arith.addf %28, %30 : vector<16x8xf32>
    %32 = arith.truncf %31 : vector<16x8xf32> to vector<16x8xbf16>
    %33 = vector.extract_strided_slice %27 {offsets = [0, 8], sizes = [16, 8], strides = [1, 1]} : vector<16x16xf32> to vector<16x8xf32>
    %34 = vector.extract_strided_slice %5 {offsets = [0, 0], sizes = [1, 8], strides = [1, 1]} : vector<1x32xf32> to vector<1x8xf32>
    %35 = vector.broadcast %34 : vector<1x8xf32> to vector<16x8xf32>
    %36 = arith.addf %33, %35 : vector<16x8xf32>
    %37 = arith.truncf %36 : vector<16x8xf32> to vector<16x8xbf16>
    %cst_19 = arith.constant -1.000000e+30 : f32
    %38 = vector.broadcast %cst_19 : f32 to vector<16x1xf32>
    %cst_20 = arith.constant 0.000000e+00 : f32
    %39 = vector.broadcast %cst_20 : f32 to vector<16x1xf32>
    %cst_21 = arith.constant 0.000000e+00 : f32
    %40 = vector.broadcast %cst_21 : f32 to vector<16x8xf32>
    %cst_22 = arith.constant dense<0.000000e+00> : vector<16x16xf32>
    %41 = tpu.matmul %24, %32, %cst_22 {dimension_numbers = #tpu.dot_dimension_numbers<[1], [1], [0], [0], [0, 0, 1, 0], [], []>} : vector<16x8xbf16>, vector<16x8xbf16>, vector<16x16xf32> -> vector<16x16xf32>
    %42 = vector.broadcast %12 : vector<1x16xf32> to vector<16x16xf32>
    %43 = arith.addf %41, %42 : vector<16x16xf32>
    %cst_23 = arith.constant dense<0xFF800000> : vector<16xf32>
    %44 = vector.multi_reduction <maximumf>, %43, %cst_23 [1] : vector<16x16xf32> to vector<16xf32>
    %45 = vector.shape_cast %44 : vector<16xf32> to vector<16x1xf32>
    %46 = arith.maximumf %38, %45 : vector<16x1xf32>
    %47 = arith.subf %38, %46 : vector<16x1xf32>
    %48 = math.exp %47 : vector<16x1xf32>
    %49 = vector.broadcast %46 : vector<16x1xf32> to vector<16x16xf32>
    %50 = arith.subf %43, %49 : vector<16x16xf32>
    %51 = math.exp %50 : vector<16x16xf32>
    %52 = arith.mulf %48, %39 : vector<16x1xf32>
    %cst_24 = arith.constant dense<0.000000e+00> : vector<16xf32>
    %53 = vector.multi_reduction <add>, %51, %cst_24 [1] : vector<16x16xf32> to vector<16xf32>
    %54 = vector.shape_cast %53 : vector<16xf32> to vector<16x1xf32>
    %55 = arith.addf %52, %54 : vector<16x1xf32>
    %56 = vector.broadcast %48 : vector<16x1xf32> to vector<16x8xf32>
    %57 = arith.mulf %56, %40 : vector<16x8xf32>
    %58 = arith.truncf %51 : vector<16x16xf32> to vector<16x16xbf16>
    %cst_25 = arith.constant dense<0.000000e+00> : vector<16x8xf32>
    %59 = tpu.matmul %58, %37, %cst_25 {dimension_numbers = #tpu.dot_dimension_numbers<[1], [0], [0], [1], [0, 0, 1, 1], [], []>} : vector<16x16xbf16>, vector<16x8xbf16>, vector<16x8xf32> -> vector<16x8xf32>
    %60 = arith.addf %57, %59 : vector<16x8xf32>
    %61 = tpu.reciprocal %55 {approx = true} : vector<16x1xf32> -> vector<16x1xf32>
    %62 = vector.broadcast %61 : vector<16x1xf32> to vector<16x8xf32>
    %63 = arith.mulf %60, %62 : vector<16x8xf32>
    %64 = arith.truncf %63 : vector<16x8xf32> to vector<16x8xbf16>
    %c0_26 = arith.constant 0 : index
    %c0_27 = arith.constant 0 : index
    %c0_28 = arith.constant 0 : index
    %65 = vector.load %arg8[%c0_26, %c0_27, %c0_28] : memref<4x8x32xbf16, #tpu.memory_space<vmem>>, vector<1x8x32xbf16>
    %66 = vector.shape_cast %65 : vector<1x8x32xbf16> to vector<8x32xbf16>
    %cst_29 = arith.constant dense<0.000000e+00> : vector<16x32xf32>
    %67 = tpu.matmul %64, %66, %cst_29 {dimension_numbers = #tpu.dot_dimension_numbers<[1], [0], [0], [1], [0, 0, 1, 1], [], []>} : vector<16x8xbf16>, vector<8x32xbf16>, vector<16x32xf32> -> vector<16x32xf32>
    %68 = arith.addf %15, %67 : vector<16x32xf32>
    %c1 = arith.constant 1 : index
    %c0_30 = arith.constant 0 : index
    %c0_31 = arith.constant 0 : index
    %69 = vector.load %arg6[%c1, %c0_30, %c0_31] : memref<4x32x8xbf16, #tpu.memory_space<vmem>>, vector<1x32x8xbf16>
    %70 = vector.shape_cast %69 : vector<1x32x8xbf16> to vector<32x8xbf16>
    %cst_32 = arith.constant dense<0.000000e+00> : vector<16x8xf32>
    %71 = tpu.matmul %14, %70, %cst_32 {dimension_numbers = #tpu.dot_dimension_numbers<[1], [0], [0], [1], [0, 0, 1, 1], [], []>} : vector<16x32xbf16>, vector<32x8xbf16>, vector<16x8xf32> -> vector<16x8xf32>
    %72 = vector.extract_strided_slice %3 {offsets = [0, 8], sizes = [1, 8], strides = [1, 1]} : vector<1x32xf32> to vector<1x8xf32>
    %73 = vector.broadcast %72 : vector<1x8xf32> to vector<16x8xf32>
    %74 = arith.addf %71, %73 : vector<16x8xf32>
    %cst_33 = arith.constant 0.353553385 : f32
    %75 = vector.broadcast %cst_33 : f32 to vector<16x8xf32>
    %76 = arith.mulf %74, %75 : vector<16x8xf32>
    %77 = arith.truncf %76 : vector<16x8xf32> to vector<16x8xbf16>
    %c1_34 = arith.constant 1 : index
    %c0_35 = arith.constant 0 : index
    %c0_36 = arith.constant 0 : index
    %78 = vector.load %arg7[%c1_34, %c0_35, %c0_36] : memref<4x32x16xbf16, #tpu.memory_space<vmem>>, vector<1x32x16xbf16>
    %79 = vector.shape_cast %78 : vector<1x32x16xbf16> to vector<32x16xbf16>
    %cst_37 = arith.constant dense<0.000000e+00> : vector<16x16xf32>
    %80 = tpu.matmul %13, %79, %cst_37 {dimension_numbers = #tpu.dot_dimension_numbers<[1], [0], [0], [1], [0, 0, 1, 1], [], []>} : vector<16x32xbf16>, vector<32x16xbf16>, vector<16x16xf32> -> vector<16x16xf32>
    %81 = vector.extract_strided_slice %80 {offsets = [0, 0], sizes = [16, 8], strides = [1, 1]} : vector<16x16xf32> to vector<16x8xf32>
    %82 = vector.extract_strided_slice %4 {offsets = [0, 8], sizes = [1, 8], strides = [1, 1]} : vector<1x32xf32> to vector<1x8xf32>
    %83 = vector.broadcast %82 : vector<1x8xf32> to vector<16x8xf32>
    %84 = arith.addf %81, %83 : vector<16x8xf32>
    %85 = arith.truncf %84 : vector<16x8xf32> to vector<16x8xbf16>
    %86 = vector.extract_strided_slice %80 {offsets = [0, 8], sizes = [16, 8], strides = [1, 1]} : vector<16x16xf32> to vector<16x8xf32>
    %87 = vector.extract_strided_slice %5 {offsets = [0, 8], sizes = [1, 8], strides = [1, 1]} : vector<1x32xf32> to vector<1x8xf32>
    %88 = vector.broadcast %87 : vector<1x8xf32> to vector<16x8xf32>
    %89 = arith.addf %86, %88 : vector<16x8xf32>
    %90 = arith.truncf %89 : vector<16x8xf32> to vector<16x8xbf16>
    %cst_38 = arith.constant -1.000000e+30 : f32
    %91 = vector.broadcast %cst_38 : f32 to vector<16x1xf32>
    %cst_39 = arith.constant 0.000000e+00 : f32
    %92 = vector.broadcast %cst_39 : f32 to vector<16x1xf32>
    %cst_40 = arith.constant 0.000000e+00 : f32
    %93 = vector.broadcast %cst_40 : f32 to vector<16x8xf32>
    %cst_41 = arith.constant dense<0.000000e+00> : vector<16x16xf32>
    %94 = tpu.matmul %77, %85, %cst_41 {dimension_numbers = #tpu.dot_dimension_numbers<[1], [1], [0], [0], [0, 0, 1, 0], [], []>} : vector<16x8xbf16>, vector<16x8xbf16>, vector<16x16xf32> -> vector<16x16xf32>
    %95 = vector.broadcast %12 : vector<1x16xf32> to vector<16x16xf32>
    %96 = arith.addf %94, %95 : vector<16x16xf32>
    %cst_42 = arith.constant dense<0xFF800000> : vector<16xf32>
    %97 = vector.multi_reduction <maximumf>, %96, %cst_42 [1] : vector<16x16xf32> to vector<16xf32>
    %98 = vector.shape_cast %97 : vector<16xf32> to vector<16x1xf32>
    %99 = arith.maximumf %91, %98 : vector<16x1xf32>
    %100 = arith.subf %91, %99 : vector<16x1xf32>
    %101 = math.exp %100 : vector<16x1xf32>
    %102 = vector.broadcast %99 : vector<16x1xf32> to vector<16x16xf32>
    %103 = arith.subf %96, %102 : vector<16x16xf32>
    %104 = math.exp %103 : vector<16x16xf32>
    %105 = arith.mulf %101, %92 : vector<16x1xf32>
    %cst_43 = arith.constant dense<0.000000e+00> : vector<16xf32>
    %106 = vector.multi_reduction <add>, %104, %cst_43 [1] : vector<16x16xf32> to vector<16xf32>
    %107 = vector.shape_cast %106 : vector<16xf32> to vector<16x1xf32>
    %108 = arith.addf %105, %107 : vector<16x1xf32>
    %109 = vector.broadcast %101 : vector<16x1xf32> to vector<16x8xf32>
    %110 = arith.mulf %109, %93 : vector<16x8xf32>
    %111 = arith.truncf %104 : vector<16x16xf32> to vector<16x16xbf16>
    %cst_44 = arith.constant dense<0.000000e+00> : vector<16x8xf32>
    %112 = tpu.matmul %111, %90, %cst_44 {dimension_numbers = #tpu.dot_dimension_numbers<[1], [0], [0], [1], [0, 0, 1, 1], [], []>} : vector<16x16xbf16>, vector<16x8xbf16>, vector<16x8xf32> -> vector<16x8xf32>
    %113 = arith.addf %110, %112 : vector<16x8xf32>
    %114 = tpu.reciprocal %108 {approx = true} : vector<16x1xf32> -> vector<16x1xf32>
    %115 = vector.broadcast %114 : vector<16x1xf32> to vector<16x8xf32>
    %116 = arith.mulf %113, %115 : vector<16x8xf32>
    %117 = arith.truncf %116 : vector<16x8xf32> to vector<16x8xbf16>
    %c1_45 = arith.constant 1 : index
    %c0_46 = arith.constant 0 : index
    %c0_47 = arith.constant 0 : index
    %118 = vector.load %arg8[%c1_45, %c0_46, %c0_47] : memref<4x8x32xbf16, #tpu.memory_space<vmem>>, vector<1x8x32xbf16>
    %119 = vector.shape_cast %118 : vector<1x8x32xbf16> to vector<8x32xbf16>
    %cst_48 = arith.constant dense<0.000000e+00> : vector<16x32xf32>
    %120 = tpu.matmul %117, %119, %cst_48 {dimension_numbers = #tpu.dot_dimension_numbers<[1], [0], [0], [1], [0, 0, 1, 1], [], []>} : vector<16x8xbf16>, vector<8x32xbf16>, vector<16x32xf32> -> vector<16x32xf32>
    %121 = arith.addf %68, %120 : vector<16x32xf32>
    %c2 = arith.constant 2 : index
    %c0_49 = arith.constant 0 : index
    %c0_50 = arith.constant 0 : index
    %122 = vector.load %arg6[%c2, %c0_49, %c0_50] : memref<4x32x8xbf16, #tpu.memory_space<vmem>>, vector<1x32x8xbf16>
    %123 = vector.shape_cast %122 : vector<1x32x8xbf16> to vector<32x8xbf16>
    %cst_51 = arith.constant dense<0.000000e+00> : vector<16x8xf32>
    %124 = tpu.matmul %14, %123, %cst_51 {dimension_numbers = #tpu.dot_dimension_numbers<[1], [0], [0], [1], [0, 0, 1, 1], [], []>} : vector<16x32xbf16>, vector<32x8xbf16>, vector<16x8xf32> -> vector<16x8xf32>
    %125 = vector.extract_strided_slice %3 {offsets = [0, 16], sizes = [1, 8], strides = [1, 1]} : vector<1x32xf32> to vector<1x8xf32>
    %126 = vector.broadcast %125 : vector<1x8xf32> to vector<16x8xf32>
    %127 = arith.addf %124, %126 : vector<16x8xf32>
    %cst_52 = arith.constant 0.353553385 : f32
    %128 = vector.broadcast %cst_52 : f32 to vector<16x8xf32>
    %129 = arith.mulf %127, %128 : vector<16x8xf32>
    %130 = arith.truncf %129 : vector<16x8xf32> to vector<16x8xbf16>
    %c2_53 = arith.constant 2 : index
    %c0_54 = arith.constant 0 : index
    %c0_55 = arith.constant 0 : index
    %131 = vector.load %arg7[%c2_53, %c0_54, %c0_55] : memref<4x32x16xbf16, #tpu.memory_space<vmem>>, vector<1x32x16xbf16>
    %132 = vector.shape_cast %131 : vector<1x32x16xbf16> to vector<32x16xbf16>
    %cst_56 = arith.constant dense<0.000000e+00> : vector<16x16xf32>
    %133 = tpu.matmul %13, %132, %cst_56 {dimension_numbers = #tpu.dot_dimension_numbers<[1], [0], [0], [1], [0, 0, 1, 1], [], []>} : vector<16x32xbf16>, vector<32x16xbf16>, vector<16x16xf32> -> vector<16x16xf32>
    %134 = vector.extract_strided_slice %133 {offsets = [0, 0], sizes = [16, 8], strides = [1, 1]} : vector<16x16xf32> to vector<16x8xf32>
    %135 = vector.extract_strided_slice %4 {offsets = [0, 16], sizes = [1, 8], strides = [1, 1]} : vector<1x32xf32> to vector<1x8xf32>
    %136 = vector.broadcast %135 : vector<1x8xf32> to vector<16x8xf32>
    %137 = arith.addf %134, %136 : vector<16x8xf32>
    %138 = arith.truncf %137 : vector<16x8xf32> to vector<16x8xbf16>
    %139 = vector.extract_strided_slice %133 {offsets = [0, 8], sizes = [16, 8], strides = [1, 1]} : vector<16x16xf32> to vector<16x8xf32>
    %140 = vector.extract_strided_slice %5 {offsets = [0, 16], sizes = [1, 8], strides = [1, 1]} : vector<1x32xf32> to vector<1x8xf32>
    %141 = vector.broadcast %140 : vector<1x8xf32> to vector<16x8xf32>
    %142 = arith.addf %139, %141 : vector<16x8xf32>
    %143 = arith.truncf %142 : vector<16x8xf32> to vector<16x8xbf16>
    %cst_57 = arith.constant -1.000000e+30 : f32
    %144 = vector.broadcast %cst_57 : f32 to vector<16x1xf32>
    %cst_58 = arith.constant 0.000000e+00 : f32
    %145 = vector.broadcast %cst_58 : f32 to vector<16x1xf32>
    %cst_59 = arith.constant 0.000000e+00 : f32
    %146 = vector.broadcast %cst_59 : f32 to vector<16x8xf32>
    %cst_60 = arith.constant dense<0.000000e+00> : vector<16x16xf32>
    %147 = tpu.matmul %130, %138, %cst_60 {dimension_numbers = #tpu.dot_dimension_numbers<[1], [1], [0], [0], [0, 0, 1, 0], [], []>} : vector<16x8xbf16>, vector<16x8xbf16>, vector<16x16xf32> -> vector<16x16xf32>
    %148 = vector.broadcast %12 : vector<1x16xf32> to vector<16x16xf32>
    %149 = arith.addf %147, %148 : vector<16x16xf32>
    %cst_61 = arith.constant dense<0xFF800000> : vector<16xf32>
    %150 = vector.multi_reduction <maximumf>, %149, %cst_61 [1] : vector<16x16xf32> to vector<16xf32>
    %151 = vector.shape_cast %150 : vector<16xf32> to vector<16x1xf32>
    %152 = arith.maximumf %144, %151 : vector<16x1xf32>
    %153 = arith.subf %144, %152 : vector<16x1xf32>
    %154 = math.exp %153 : vector<16x1xf32>
    %155 = vector.broadcast %152 : vector<16x1xf32> to vector<16x16xf32>
    %156 = arith.subf %149, %155 : vector<16x16xf32>
    %157 = math.exp %156 : vector<16x16xf32>
    %158 = arith.mulf %154, %145 : vector<16x1xf32>
    %cst_62 = arith.constant dense<0.000000e+00> : vector<16xf32>
    %159 = vector.multi_reduction <add>, %157, %cst_62 [1] : vector<16x16xf32> to vector<16xf32>
    %160 = vector.shape_cast %159 : vector<16xf32> to vector<16x1xf32>
    %161 = arith.addf %158, %160 : vector<16x1xf32>
    %162 = vector.broadcast %154 : vector<16x1xf32> to vector<16x8xf32>
    %163 = arith.mulf %162, %146 : vector<16x8xf32>
    %164 = arith.truncf %157 : vector<16x16xf32> to vector<16x16xbf16>
    %cst_63 = arith.constant dense<0.000000e+00> : vector<16x8xf32>
    %165 = tpu.matmul %164, %143, %cst_63 {dimension_numbers = #tpu.dot_dimension_numbers<[1], [0], [0], [1], [0, 0, 1, 1], [], []>} : vector<16x16xbf16>, vector<16x8xbf16>, vector<16x8xf32> -> vector<16x8xf32>
    %166 = arith.addf %163, %165 : vector<16x8xf32>
    %167 = tpu.reciprocal %161 {approx = true} : vector<16x1xf32> -> vector<16x1xf32>
    %168 = vector.broadcast %167 : vector<16x1xf32> to vector<16x8xf32>
    %169 = arith.mulf %166, %168 : vector<16x8xf32>
    %170 = arith.truncf %169 : vector<16x8xf32> to vector<16x8xbf16>
    %c2_64 = arith.constant 2 : index
    %c0_65 = arith.constant 0 : index
    %c0_66 = arith.constant 0 : index
    %171 = vector.load %arg8[%c2_64, %c0_65, %c0_66] : memref<4x8x32xbf16, #tpu.memory_space<vmem>>, vector<1x8x32xbf16>
    %172 = vector.shape_cast %171 : vector<1x8x32xbf16> to vector<8x32xbf16>
    %cst_67 = arith.constant dense<0.000000e+00> : vector<16x32xf32>
    %173 = tpu.matmul %170, %172, %cst_67 {dimension_numbers = #tpu.dot_dimension_numbers<[1], [0], [0], [1], [0, 0, 1, 1], [], []>} : vector<16x8xbf16>, vector<8x32xbf16>, vector<16x32xf32> -> vector<16x32xf32>
    %174 = arith.addf %121, %173 : vector<16x32xf32>
    %c3 = arith.constant 3 : index
    %c0_68 = arith.constant 0 : index
    %c0_69 = arith.constant 0 : index
    %175 = vector.load %arg6[%c3, %c0_68, %c0_69] : memref<4x32x8xbf16, #tpu.memory_space<vmem>>, vector<1x32x8xbf16>
    %176 = vector.shape_cast %175 : vector<1x32x8xbf16> to vector<32x8xbf16>
    %cst_70 = arith.constant dense<0.000000e+00> : vector<16x8xf32>
    %177 = tpu.matmul %14, %176, %cst_70 {dimension_numbers = #tpu.dot_dimension_numbers<[1], [0], [0], [1], [0, 0, 1, 1], [], []>} : vector<16x32xbf16>, vector<32x8xbf16>, vector<16x8xf32> -> vector<16x8xf32>
    %178 = vector.extract_strided_slice %3 {offsets = [0, 24], sizes = [1, 8], strides = [1, 1]} : vector<1x32xf32> to vector<1x8xf32>
    %179 = vector.broadcast %178 : vector<1x8xf32> to vector<16x8xf32>
    %180 = arith.addf %177, %179 : vector<16x8xf32>
    %cst_71 = arith.constant 0.353553385 : f32
    %181 = vector.broadcast %cst_71 : f32 to vector<16x8xf32>
    %182 = arith.mulf %180, %181 : vector<16x8xf32>
    %183 = arith.truncf %182 : vector<16x8xf32> to vector<16x8xbf16>
    %c3_72 = arith.constant 3 : index
    %c0_73 = arith.constant 0 : index
    %c0_74 = arith.constant 0 : index
    %184 = vector.load %arg7[%c3_72, %c0_73, %c0_74] : memref<4x32x16xbf16, #tpu.memory_space<vmem>>, vector<1x32x16xbf16>
    %185 = vector.shape_cast %184 : vector<1x32x16xbf16> to vector<32x16xbf16>
    %cst_75 = arith.constant dense<0.000000e+00> : vector<16x16xf32>
    %186 = tpu.matmul %13, %185, %cst_75 {dimension_numbers = #tpu.dot_dimension_numbers<[1], [0], [0], [1], [0, 0, 1, 1], [], []>} : vector<16x32xbf16>, vector<32x16xbf16>, vector<16x16xf32> -> vector<16x16xf32>
    %187 = vector.extract_strided_slice %186 {offsets = [0, 0], sizes = [16, 8], strides = [1, 1]} : vector<16x16xf32> to vector<16x8xf32>
    %188 = vector.extract_strided_slice %4 {offsets = [0, 24], sizes = [1, 8], strides = [1, 1]} : vector<1x32xf32> to vector<1x8xf32>
    %189 = vector.broadcast %188 : vector<1x8xf32> to vector<16x8xf32>
    %190 = arith.addf %187, %189 : vector<16x8xf32>
    %191 = arith.truncf %190 : vector<16x8xf32> to vector<16x8xbf16>
    %192 = vector.extract_strided_slice %186 {offsets = [0, 8], sizes = [16, 8], strides = [1, 1]} : vector<16x16xf32> to vector<16x8xf32>
    %193 = vector.extract_strided_slice %5 {offsets = [0, 24], sizes = [1, 8], strides = [1, 1]} : vector<1x32xf32> to vector<1x8xf32>
    %194 = vector.broadcast %193 : vector<1x8xf32> to vector<16x8xf32>
    %195 = arith.addf %192, %194 : vector<16x8xf32>
    %196 = arith.truncf %195 : vector<16x8xf32> to vector<16x8xbf16>
    %cst_76 = arith.constant -1.000000e+30 : f32
    %197 = vector.broadcast %cst_76 : f32 to vector<16x1xf32>
    %cst_77 = arith.constant 0.000000e+00 : f32
    %198 = vector.broadcast %cst_77 : f32 to vector<16x1xf32>
    %cst_78 = arith.constant 0.000000e+00 : f32
    %199 = vector.broadcast %cst_78 : f32 to vector<16x8xf32>
    %cst_79 = arith.constant dense<0.000000e+00> : vector<16x16xf32>
    %200 = tpu.matmul %183, %191, %cst_79 {dimension_numbers = #tpu.dot_dimension_numbers<[1], [1], [0], [0], [0, 0, 1, 0], [], []>} : vector<16x8xbf16>, vector<16x8xbf16>, vector<16x16xf32> -> vector<16x16xf32>
    %201 = vector.broadcast %12 : vector<1x16xf32> to vector<16x16xf32>
    %202 = arith.addf %200, %201 : vector<16x16xf32>
    %cst_80 = arith.constant dense<0xFF800000> : vector<16xf32>
    %203 = vector.multi_reduction <maximumf>, %202, %cst_80 [1] : vector<16x16xf32> to vector<16xf32>
    %204 = vector.shape_cast %203 : vector<16xf32> to vector<16x1xf32>
    %205 = arith.maximumf %197, %204 : vector<16x1xf32>
    %206 = arith.subf %197, %205 : vector<16x1xf32>
    %207 = math.exp %206 : vector<16x1xf32>
    %208 = vector.broadcast %205 : vector<16x1xf32> to vector<16x16xf32>
    %209 = arith.subf %202, %208 : vector<16x16xf32>
    %210 = math.exp %209 : vector<16x16xf32>
    %211 = arith.mulf %207, %198 : vector<16x1xf32>
    %cst_81 = arith.constant dense<0.000000e+00> : vector<16xf32>
    %212 = vector.multi_reduction <add>, %210, %cst_81 [1] : vector<16x16xf32> to vector<16xf32>
    %213 = vector.shape_cast %212 : vector<16xf32> to vector<16x1xf32>
    %214 = arith.addf %211, %213 : vector<16x1xf32>
    %215 = vector.broadcast %207 : vector<16x1xf32> to vector<16x8xf32>
    %216 = arith.mulf %215, %199 : vector<16x8xf32>
    %217 = arith.truncf %210 : vector<16x16xf32> to vector<16x16xbf16>
    %cst_82 = arith.constant dense<0.000000e+00> : vector<16x8xf32>
    %218 = tpu.matmul %217, %196, %cst_82 {dimension_numbers = #tpu.dot_dimension_numbers<[1], [0], [0], [1], [0, 0, 1, 1], [], []>} : vector<16x16xbf16>, vector<16x8xbf16>, vector<16x8xf32> -> vector<16x8xf32>
    %219 = arith.addf %216, %218 : vector<16x8xf32>
    %220 = tpu.reciprocal %214 {approx = true} : vector<16x1xf32> -> vector<16x1xf32>
    %221 = vector.broadcast %220 : vector<16x1xf32> to vector<16x8xf32>
    %222 = arith.mulf %219, %221 : vector<16x8xf32>
    %223 = arith.truncf %222 : vector<16x8xf32> to vector<16x8xbf16>
    %c3_83 = arith.constant 3 : index
    %c0_84 = arith.constant 0 : index
    %c0_85 = arith.constant 0 : index
    %224 = vector.load %arg8[%c3_83, %c0_84, %c0_85] : memref<4x8x32xbf16, #tpu.memory_space<vmem>>, vector<1x8x32xbf16>
    %225 = vector.shape_cast %224 : vector<1x8x32xbf16> to vector<8x32xbf16>
    %cst_86 = arith.constant dense<0.000000e+00> : vector<16x32xf32>
    %226 = tpu.matmul %223, %225, %cst_86 {dimension_numbers = #tpu.dot_dimension_numbers<[1], [0], [0], [1], [0, 0, 1, 1], [], []>} : vector<16x8xbf16>, vector<8x32xbf16>, vector<16x32xf32> -> vector<16x32xf32>
    %227 = arith.addf %174, %226 : vector<16x32xf32>
    %228 = vector.broadcast %6 : vector<1x32xf32> to vector<16x32xf32>
    %229 = arith.addf %227, %228 : vector<16x32xf32>
    %230 = arith.addf %229, %10 : vector<16x32xf32>
    %cst_87 = arith.constant dense<0.000000e+00> : vector<16xf32>
    %231 = vector.multi_reduction <add>, %230, %cst_87 [1] : vector<16x32xf32> to vector<16xf32>
    %232 = vector.shape_cast %231 : vector<16xf32> to vector<16x1xf32>
    %cst_88 = arith.constant 3.200000e+01 : f32
    %233 = vector.broadcast %cst_88 : f32 to vector<16x1xf32>
    %234 = arith.divf %232, %233 : vector<16x1xf32>
    %235 = vector.broadcast %234 : vector<16x1xf32> to vector<16x32xf32>
    %236 = arith.subf %230, %235 : vector<16x32xf32>
    %237 = arith.mulf %236, %236 : vector<16x32xf32>
    %cst_89 = arith.constant dense<0.000000e+00> : vector<16xf32>
    %238 = vector.multi_reduction <add>, %237, %cst_89 [1] : vector<16x32xf32> to vector<16xf32>
    %239 = vector.shape_cast %238 : vector<16xf32> to vector<16x1xf32>
    %cst_90 = arith.constant 3.200000e+01 : f32
    %240 = vector.broadcast %cst_90 : f32 to vector<16x1xf32>
    %241 = arith.divf %239, %240 : vector<16x1xf32>
    %cst_91 = arith.constant 9.99999997E-7 : f32
    %242 = vector.broadcast %cst_91 : f32 to vector<16x1xf32>
    %243 = arith.addf %241, %242 : vector<16x1xf32>
    %244 = math.rsqrt %243 : vector<16x1xf32>
    %245 = vector.broadcast %244 : vector<16x1xf32> to vector<16x32xf32>
    %246 = arith.mulf %236, %245 : vector<16x32xf32>
    %247 = vector.broadcast %1 : vector<1x32xf32> to vector<16x32xf32>
    %248 = arith.mulf %246, %247 : vector<16x32xf32>
    %249 = vector.broadcast %2 : vector<1x32xf32> to vector<16x32xf32>
    %250 = arith.addf %248, %249 : vector<16x32xf32>
    %251 = arith.truncf %250 : vector<16x32xf32> to vector<16x32xbf16>
    %c0_92 = arith.constant 0 : index
    %c0_93 = arith.constant 0 : index
    %252 = vector.load %arg9[%c0_92, %c0_93] : memref<32x64xbf16, #tpu.memory_space<vmem>>, vector<32x64xbf16>
    %cst_94 = arith.constant dense<0.000000e+00> : vector<16x64xf32>
    %253 = tpu.matmul %251, %252, %cst_94 {dimension_numbers = #tpu.dot_dimension_numbers<[1], [0], [0], [1], [0, 0, 1, 1], [], []>} : vector<16x32xbf16>, vector<32x64xbf16>, vector<16x64xf32> -> vector<16x64xf32>
    %c0_95 = arith.constant 0 : index
    %c0_96 = arith.constant 0 : index
    %254 = vector.load %arg10[%c0_95, %c0_96] : memref<1x64xf32, #tpu.memory_space<vmem>>, vector<1x64xf32>
    %255 = vector.broadcast %254 : vector<1x64xf32> to vector<16x64xf32>
    %256 = arith.addf %253, %255 : vector<16x64xf32>
    %cst_97 = arith.constant 5.000000e-01 : f32
    %257 = vector.broadcast %cst_97 : f32 to vector<16x64xf32>
    %258 = arith.mulf %257, %256 : vector<16x64xf32>
    %cst_98 = arith.constant 4.471500e-02 : f32
    %259 = vector.broadcast %cst_98 : f32 to vector<16x64xf32>
    %260 = arith.mulf %259, %256 : vector<16x64xf32>
    %261 = arith.mulf %260, %256 : vector<16x64xf32>
    %262 = arith.mulf %261, %256 : vector<16x64xf32>
    %263 = arith.addf %256, %262 : vector<16x64xf32>
    %cst_99 = arith.constant 0.797884583 : f32
    %264 = vector.broadcast %cst_99 : f32 to vector<16x64xf32>
    %265 = arith.mulf %264, %263 : vector<16x64xf32>
    %266 = math.tanh %265 : vector<16x64xf32>
    %cst_100 = arith.constant 1.000000e+00 : f32
    %267 = vector.broadcast %cst_100 : f32 to vector<16x64xf32>
    %268 = arith.addf %267, %266 : vector<16x64xf32>
    %269 = arith.mulf %258, %268 : vector<16x64xf32>
    %270 = arith.truncf %269 : vector<16x64xf32> to vector<16x64xbf16>
    %c0_101 = arith.constant 0 : index
    %c0_102 = arith.constant 0 : index
    %271 = vector.load %arg11[%c0_101, %c0_102] : memref<64x32xbf16, #tpu.memory_space<vmem>>, vector<64x32xbf16>
    %cst_103 = arith.constant dense<0.000000e+00> : vector<16x32xf32>
    %272 = tpu.matmul %270, %271, %cst_103 {dimension_numbers = #tpu.dot_dimension_numbers<[1], [0], [0], [1], [0, 0, 1, 1], [], []>} : vector<16x64xbf16>, vector<64x32xbf16>, vector<16x32xf32> -> vector<16x32xf32>
    %c0_104 = arith.constant 0 : index
    %c0_105 = arith.constant 0 : index
    %273 = vector.load %arg12[%c0_104, %c0_105] : memref<1x32xf32, #tpu.memory_space<vmem>>, vector<1x32xf32>
    %274 = vector.broadcast %273 : vector<1x32xf32> to vector<16x32xf32>
    %275 = arith.addf %272, %274 : vector<16x32xf32>
    %276 = arith.addf %275, %230 : vector<16x32xf32>
    %c0_106 = arith.constant 0 : index
    %c0_107 = arith.constant 0 : index
    %c0_108 = arith.constant 0 : index
    %277 = vector.load %arg13[%c0_106, %c0_107, %c0_108] : memref<1x16x32xf32, #tpu.memory_space<vmem>>, vector<1x16x32xf32>
    %278 = vector.shape_cast %277 : vector<1x16x32xf32> to vector<16x32xf32>
    %279 = vector.shape_cast %276 : vector<16x32xf32> to vector<1x16x32xf32>
    tpu.vector_store %arg13[%c0_106, %c0_107, %c0_108], %279 {strides = array<i32>} : memref<1x16x32xf32, #tpu.memory_space<vmem>>, vector<1x16x32xf32>,
    return
  }
  func.func @transform_0(%arg0: i32, %arg1: i32) -> (i32, i32, i32) {
    %c0_i32 = arith.constant 0 : i32
    %c0_i32_0 = arith.constant 0 : i32
    %c0_i32_1 = arith.constant 0 : i32
    return %arg0, %c0_i32, %c0_i32_0 : i32, i32, i32
  }
  func.func @transform_1(%arg0: i32, %arg1: i32) -> (i32, i32, i32) {
    %c0_i32 = arith.constant 0 : i32
    %c0_i32_0 = arith.constant 0 : i32
    return %arg0, %arg1, %c0_i32 : i32, i32, i32
  }
  func.func @transform_2(%arg0: i32, %arg1: i32) -> (i32, i32, i32) {
    %c0_i32 = arith.constant 0 : i32
    %c0_i32_0 = arith.constant 0 : i32
    %c0_i32_1 = arith.constant 0 : i32
    return %arg0, %c0_i32, %c0_i32_0 : i32, i32, i32
  }
  func.func @transform_3(%arg0: i32, %arg1: i32) -> (i32, i32) {
    %c0_i32 = arith.constant 0 : i32
    %c0_i32_0 = arith.constant 0 : i32
    %c0_i32_1 = arith.constant 0 : i32
    return %c0_i32, %c0_i32_0 : i32, i32
  }
  func.func @transform_4(%arg0: i32, %arg1: i32) -> (i32, i32, i32) {
    %c0_i32 = arith.constant 0 : i32
    %c0_i32_0 = arith.constant 0 : i32
    %c0_i32_1 = arith.constant 0 : i32
    %c0_i32_2 = arith.constant 0 : i32
    return %c0_i32, %c0_i32_0, %c0_i32_1 : i32, i32, i32
  }
  func.func @transform_5(%arg0: i32, %arg1: i32) -> (i32, i32, i32) {
    %c0_i32 = arith.constant 0 : i32
    %c0_i32_0 = arith.constant 0 : i32
    %c0_i32_1 = arith.constant 0 : i32
    %c0_i32_2 = arith.constant 0 : i32
    return %c0_i32, %c0_i32_0, %c0_i32_1 : i32, i32, i32
  }
  func.func @transform_6(%arg0: i32, %arg1: i32) -> (i32, i32, i32) {
    %c0_i32 = arith.constant 0 : i32
    %c0_i32_0 = arith.constant 0 : i32
    %c0_i32_1 = arith.constant 0 : i32
    %c0_i32_2 = arith.constant 0 : i32
    return %c0_i32, %c0_i32_0, %c0_i32_1 : i32, i32, i32
  }
  func.func @transform_7(%arg0: i32, %arg1: i32) -> (i32, i32) {
    %c0_i32 = arith.constant 0 : i32
    %c0_i32_0 = arith.constant 0 : i32
    %c0_i32_1 = arith.constant 0 : i32
    return %c0_i32, %c0_i32_0 : i32, i32
  }
  func.func @transform_8(%arg0: i32, %arg1: i32) -> (i32, i32) {
    %c0_i32 = arith.constant 0 : i32
    %c0_i32_0 = arith.constant 0 : i32
    %c0_i32_1 = arith.constant 0 : i32
    return %c0_i32, %c0_i32_0 : i32, i32
  }
  func.func @transform_9(%arg0: i32, %arg1: i32) -> (i32, i32) {
    %c0_i32 = arith.constant 0 : i32
    %c0_i32_0 = arith.constant 0 : i32
    %c0_i32_1 = arith.constant 0 : i32
    return %c0_i32, %c0_i32_0 : i32, i32
  }
  func.func @transform_10(%arg0: i32, %arg1: i32) -> (i32, i32) {
    %c0_i32 = arith.constant 0 : i32
    %c0_i32_0 = arith.constant 0 : i32
    %c0_i32_1 = arith.constant 0 : i32
    return %c0_i32, %c0_i32_0 : i32, i32
  }
  func.func @transform_11(%arg0: i32, %arg1: i32) -> (i32, i32, i32) {
    %c0_i32 = arith.constant 0 : i32
    %c0_i32_0 = arith.constant 0 : i32
    return %arg0, %arg1, %c0_i32 : i32, i32, i32
  }
}

</mosaic_0001>

<bundles_post_ra>
// kernel: tpu_custom_call.1
= control target key start
LH: loop header
LB: loop body
LE: loop exit
PB: predicated region body
PF: predicated region fallthrough
CT: control target
= control target key end

     0   :  { %s3129_s0 = inlined_call_operand.vmem [shape: f32[2,16,32], index: 0, kind: input, shape index: {}]   ;;  %s3130_s1 = inlined_call_operand.vmem [shape: f32[2,16,32], index: 1, kind: input, shape index: {}]   ;;  %s3131_s2 = inlined_call_operand.vmem [shape: f32[2,1,16], index: 2, kind: input, shape index: {}]   ;;  %s3132_s3 = inlined_call_operand.vmem [shape: f32[8,32], index: 3, kind: input, shape index: {}]   ;;  %s3133_s4 = inlined_call_operand.vmem [shape: bf16[4,32,8], index: 4, kind: input, shape index: {}]   ;;  %s3134_s5 = inlined_call_operand.vmem [shape: bf16[4,32,16], index: 5, kind: input, shape index: {}]   ;;  %s3135_s6 = inlined_call_operand.vmem [shape: bf16[4,8,32], index: 6, kind: input, shape index: {}]   ;;  %s3136_s7 = inlined_call_operand.vmem [shape: bf16[32,64], index: 7, kind: input, shape index: {}]   ;;  %s3137_s8 = inlined_call_operand.vmem [shape: f32[1,64], index: 8, kind: input, shape index: {}]   ;;  %s3138_s9 = inlined_call_operand.vmem [shape: bf16[64,32], index: 9, kind: input, shape index: {}]   ;;  %s3139_s10 = inlined_call_operand.vmem [shape: f32[1,32], index: 10, kind: input, shape index: {}]   ;;  %s3140_s11 = inlined_call_operand.hbm [shape: f32[2,16,32], index: 11, kind: output, shape index: {}]  }
   0x1   :  { %3143 = sst [smem:[#allocation6_spill]] %s3129_s0 }
   0x2   :  { %16 = vsyncpa [#allocation3], 0 }
   0x3   :  { %18 = vsyncpa [#allocation3 + $0x1], 0  ;;  %s2677_s17 = smov 0   ;;  %s2679_s18 = smov 0  }
   0x4   :  { %s2681_s19 = smov 0   ;;  %s2683_s20 = smov 0  }
   0x5   :  { %s2685_s21 = smov 0   ;;  %s2687_s22 = smov 0  }
   0x6 LB: > { %s2084_s23 = sadd.s32 4294967295, %s2607_s22   ;;  %s2085_s24 = sadd.s32 4294967294, %s2607_s22   ;;  %s2607_s22 = sphi %s2687_s22, %s24_s22   ;;  %s2603_s21 = sphi %s2685_s21, %s3154_s21   ;;  %s2599_s20 = sphi %s2683_s20, %s3153_s20   ;;  %s2595_s19 = sphi %s2681_s19, %s3152_s19   ;;  %s2591_s18 = sphi %s2679_s18, %s3151_s18   ;;  %s2587_s17 = sphi %s2677_s17, %s3150_s17  }
   0x7   : > { %s36_s25 = sadd.s32 1, %s2603_s21  ;;  %s293_s26 = sadd.s32 1, %s2595_s19 }
   0x8   : > { %p38_p0 = scmp.ge.s32.totalorder %s36_s25, 2  ;;  %p303_p1 = scmp.ne.s32.totalorder %s2595_s19, %s2591_s18 }
   0x9   : > { %p304_p2 = scmp.eq.s32.totalorder %s2084_s23, 1  ;;  %p309_p3 = scmp.ne.s32.totalorder %s2591_s18, %s2587_s17 }
   0xa   : > { %s3156_s25 = smov (%p38_p0, %s36_s25), 0  ;;  %p310_p5 = scmp.eq.s32.totalorder %s2085_s24, 1 }
   0xb   : > { %3144 = sst [smem:[#allocation5_spill]] %s3156_s25  ;;  %p2717_p4 = por %p304_p2, %p303_p1 }
   0xc   : > { %s288_s28 = ssub.s32 %s2603_s21, %s3156_s25  ;;  %p2088_p6 = scmp.ge.s32.totalorder %s2607_s22, 1 }
   0xd   : > { %p291_p7 = scmp.eq.s32.totalorder %s288_s28, 0  ;;  %p2724_p8 = por %p310_p5, %p309_p3 }
   0xe   : > { %p379_p9 = scmp.lt.s32.totalorder %s2607_s22, 3 }
   0xf   : > { %s2730_s30 = scalar_select %p291_p7, %s2595_s19, %s293_s26  }
  0x10   : > { %p380_p10 = pnand %p2088_p6, %p379_p9 }
  0x11   : > { %v2450_v0 = vld [vmem:[%s3134_s5] sm:$0xff] (!%p380_p10)   ;;  %v463_v1 = vlaneseq (!%p380_p10)  ;;  %v2609_v2 = vmov (!%p380_p10), 0.0   ;;  %v2452_v4 = vld [vmem:[%s3134_s5 + $0x8] sm:$0xff] (!%p380_p10)   ;;  %vm2610_vm0 = vmmov (!%p380_p10), 0   ;;  %p431_p11 = scmp.lt.s32.totalorder (!%p380_p10), %s2599_s20, 1  ;;  %s3147_s0 = sld [smem:[#allocation6_spill]] (!%p380_p10) }
  0x12   : > { %383 = sbr.rel (%p380_p10) target bundleno = 4139 (0x102b), region = 64  ;;  %2240 = vmatprep.subr.bf16.mxu1 (!%p380_p10), %v2609_v2  ;;  %2232 = vmatprep.subr.bf16.mxu0 (!%p380_p10), %v2609_v2  ;;  %v2451_v3 = vld [vmem:[%s3133_s4] sm:$0xff] (!%p380_p10)   ;;  %v2453_v5 = vld [vmem:[%s3133_s4 + $0x8] sm:$0xff] (!%p380_p10)   ;;  %vm479_vm1 = vcmask (!%p380_p10), 261120   ;;  %s3142_s12 = smov (!%p380_p10), 8   ;;  %vm611_vm2 = vcmask (!%p380_p10), 64512  }
  0x13   : > { %2241 = vmatpush3.bf16.msra.mxu1 (!%p380_p10), %v2450_v0  ;;  %2244 = vmatprep.mubr.msk.bf16.mxu1 (!%p380_p10), %vm2610_vm0, %v2609_v2  ;;  %v2756_v6 = vshrl.u32 (!%p380_p10), %v463_v1, 7  ;;  %v451_v7 = vld [vmem:[%s3132_s3] sm:$0xff] (!%p380_p10)  ;;  %vm659_vm3 = vcmask (!%p380_p10), 130048   ;;  %s2612_s15 = smov (!%p380_p10), 120   ;;  %v2455_v50 = vld [vmem:[%s3133_s4 + $0x10] sm:$0xff] (!%p380_p10)   ;;  %v2457_v51 = vld [vmem:[%s3133_s4 + $0x18] sm:$0xff] (!%p380_p10)  }
  0x14   : > { %2233 = vmatpush3.bf16.msra.mxu0 (!%p380_p10), %v2451_v3  ;;  %2242 = vmatprep.subr.bf16.mxu1 (!%p380_p10), %v2609_v2  ;;  %v2454_v63 = vld [vmem:[%s3134_s5 + $0x10] sm:$0xff] (!%p380_p10)   ;;  %v2456_v1 = vld [vmem:[%s3134_s5 + $0x18] sm:$0xff] (!%p380_p10)   ;;  %vm1018_vm4 = vcmask (!%p380_p10), 1043456   ;;  %s2614_s26 = smov (!%p380_p10), 104   ;;  %vm1919_vm5 = vcmask (!%p380_p10), 523264   ;;  %s2615_s24 = smov (!%p380_p10), [#allocation2]  }
  0x15   : > { %2234 = vmatprep.subr.bf16.mxu0 (!%p380_p10), %v2609_v2  ;;  %2236 = vmatprep.mubr.msk.bf16.mxu0 (!%p380_p10), %vm2610_vm0, %v2609_v2  ;;  %v596_v8 = vsub.s32 (!%p380_p10), 6, %v2756_v6  ;;  %v465_v16 = vsub.s32 (!%p380_p10), 4, %v2756_v6  ;;  %v589_v17 = vsub.s32 (!%p380_p10), 5, %v2756_v6 }
  0x17   : > { %2243 = vmatpush3.bf16.msra.mxu1 (!%p380_p10), %v2452_v4  ;;  %v2772_v12 = vrot.slane (!%p380_p10), %v451_v7, %v596_v8  ;;  %v2795_v18 = vrot.slane (!%p380_p10), %v451_v7, %v465_v16  ;;  %v2797_v19 = vrot.slane (!%p380_p10), %v451_v7, %v589_v17 }
  0x18   : > { %2235 = vmatpush3.bf16.msra.mxu0 (!%p380_p10), %v2453_v5  ;;  %2254 = vmatprep.subr.bf16.mxu1 (!%p380_p10), %v2609_v2 }
  0x19   : > { %s2752_s28 = scalar_select %p431_p11, %s2599_s20, 1  ;;  %2248 = vmatprep.subr.bf16.mxu0 %v2609_v2  ;;  %599 = vrot.lane.b32.xlu0 %v2772_v12, %s3142_s12 }
  0x1a   : > { %s2533_s12 = sshll.u32 %s2615_s24, 4  ;;  %s2534_s12 = int_to_ptr.vmem [resolvable:$false] %s2533_s12 }
  0x1b   : > { %s2173_s14 = sshll.u32 %s2752_s28, 4 }
  0x1c   : > { %s435_s23 = scalar_lea.vmem %s3147_s0, %s2173_s14  ;;  %s444_s25 = scalar_lea.vmem %s3130_s1, %s2173_s14 }
  0x1d   : > { %v452_v9 = vld [vmem:[%s435_s23] sm:$0xff]  ;;  %v453_v10 = vld [vmem:[%s435_s23 + $0x8] sm:$0xff]  ;;  %s448_s14 = scalar_lea.vmem %s3131_s2, %s2752_s28  ;;  %s2613_s28 = smov 112  }
  0x1e   : > { %v2770_v11 = vld [vmem:[%s444_s25] sm:$0xff]  ;;  %v2775_v13 = vpack.c.bf16 %v453_v10, %v452_v9  ;;  %v2777_v14 = vld [vmem:[%s444_s25 + $0x8] sm:$0xff]  ;;  %s2175_s25 = sshll.u32 %s2599_s20, 8  ;;  %s2535_s0 = scalar_lea.vmem %s2534_s12, 512 }
  0x1f   : > { %v2781_v15 = vpack.c.bf16 %v2777_v14, %v2770_v11  ;;  %v2812_v41 = vld [vmem:[%s448_s14] ss:$0 sm:$0xff] }
  0x20   : > { %2245 = vmatmul.mubr.msk.bf16.vlgmr.msra.gmra.mrb[0].mxu1 %vm479_vm1, %v2775_v13 }
  0x21   : > { %2237 = vmatmul.mubr.msk.bf16.vlgmr.msra.gmra.mrb[0].mxu0 %vm479_vm1, %v2781_v15  ;;  %2256 = vmatprep.mubr.msk.bf16.mxu1 %vm2610_vm0, %v2609_v2 }
  0x22   : > { %2250 = vmatprep.mubr.msk.bf16.mxu0 %vm2610_vm0, %v2609_v2 }
  0x8b   : > { %v600_v20 = vpop.permute.xlu0 %599 }
  0xf3   : > { %v580_v21 = vpop.f32.mrb[0].mxu1 }
  0xf4   : > { %v2246_v22 = vpop.f32.mrb[1].mxu1  ;;  %v517_v23 = vpop.f32.mrb[0].mxu0  ;;  %v591_v27 = vadd.f32 %v2797_v19, %v580_v21  ;;  %v602_v28 = vadd.f32 %v600_v20, %v580_v21 }
  0xf5   : > { %v583_v24 = vpop.f32.mrb[2].mxu1  ;;  %v518_v25 = vadd.f32 %v517_v23, %v2795_v18  ;;  %v2238_v26 = vpop.f32.mrb[1].mxu0 }
  0xf6   : > { %v592_v29 = vadd.f32 %v2797_v19, %v583_v24  ;;  %v603_v30 = vadd.f32 %v600_v20, %v583_v24  ;;  %v2247_v31 = vpop.f32.mrb[3].mxu1  ;;  %v520_v32 = vpop.f32.mrb[2].mxu0 }
  0xf7   : > { %v524_v33 = vmul.f32 0.35355338, %v518_v25  ;;  %v521_v34 = vadd.f32 %v520_v32, %v2795_v18  ;;  %v2239_v35 = vpop.f32.mrb[3].mxu0 }
  0xf8   : > { %v593_v36 = vpack.c.bf16 %v592_v29, %v591_v27  ;;  %v604_v37 = vpack.c.bf16 %v603_v30, %v602_v28 }
  0xf9   : > { %v525_v38 = vmul.f32 0.35355338, %v521_v34 }
  0xfa   : > { %v616_v39 = vsel %vm611_vm2, %v593_v36, 0 }
  0xfb   : > { %v526_v40 = vpack.c.bf16 %v525_v38, %v524_v33  ;;  %2249 = vmatpush3.bf16.xpose.msra.mxu0 %v616_v39 }
  0xfc   : > { %2260 = vmatprep.subr.bf16.mxu0 %v2609_v2 }
 0x102   : > { %2251 = vmatmul.mubr.msk.bf16.vlgmr.msra.gmra.mrb[4].mxu0 %vm611_vm2, %v526_v40 }
 0x103   : > { %2264 = vmatprep.mubr.msk.bf16.mxu0 %vm2610_vm0, %v2609_v2  ;;  %2261 = vmatpush3.bf16.msra.mxu0 %v2455_v50 }
 0x104   : > { %2262 = vmatprep.subr.bf16.mxu0 %v2609_v2 }
 0x107   : > { %2263 = vmatpush3.bf16.msra.mxu0 %v2457_v51 }
 0x108   : > { %2276 = vmatprep.subr.bf16.mxu0 %v2609_v2 }
 0x10a   : > { %2265 = vmatmul.mubr.msk.bf16.vlgmr.msra.gmra.mrb[8].mxu0 %vm479_vm1, %v2781_v15 }
 0x10b   : > { %2278 = vmatprep.mubr.msk.bf16.mxu0 %vm2610_vm0, %v2609_v2 }
 0x1d5   : > { %v652_v42 = vpop.f32.mrb[4].mxu0 }
 0x1d6   : > { %v653_v43 = vadd.f32 %v2812_v41, %v652_v42  ;;  %v2252_v44 = vpop.f32.mrb[5].mxu0 }
 0x1d7   : > { %v655_v45 = vpop.f32.mrb[6].mxu0 }
 0x1d8   : > { %v656_v46 = vadd.f32 %v2812_v41, %v655_v45  ;;  %v2253_v47 = vpop.f32.mrb[7].mxu0  ;;  %v660_v48 = vsel %vm659_vm3, %v653_v43, -inf }
 0x1d9   : > { %661 = vmax.xlane.f32.xlu0 %v660_v48 }
 0x1da   : > { %v663_v49 = vsel %vm659_vm3, %v656_v46, -inf }
 0x1db   : > { %664 = vmax.xlane.f32.xlu1 %v663_v49 }
 0x1dd   : > { %v802_v4 = vpop.f32.mrb[8].mxu0 }
 0x1de   : > { %v2266_v5 = vpop.f32.mrb[9].mxu0 }
 0x1df   : > { %v805_v7 = vpop.f32.mrb[10].mxu0 }
 0x1e0   : > { %v2267_v16 = vpop.f32.mrb[11].mxu0 }
 0x1ec   : > { %692 = vrot.lane.b32.xlu1 %v604_v37, %s2612_s15 }
 0x1f0   : > { %871 = vrot.lane.b32.xlu1 %v2797_v19, %s2612_s15 }
 0x1f4   : > { %765 = vrot.lane.b32.xlu1 %v2795_v18, %s2612_s15 }
 0x266   : > { %v662_v52 = vpop.xlane.xlu0 %661 }
 0x267   : > { %v666_v53 = vmax.f32 %v662_v52, -1e+30 }
 0x268   : > { %v665_v54 = vpop.xlane.xlu1 %664 }
 0x269   : > { %v674_v55 = vsub.f32 %v653_v43, %v666_v53  ;;  %v667_v56 = vmax.f32 %v665_v54, -1e+30  ;;  %v668_v22 = vsub.f32 -1e+30, %v666_v53 }
 0x26b   : > { %v676_v57 = vmul.f32 1.442695, %v674_v55  ;;  %v675_v58 = vsub.f32 %v656_v46, %v667_v56  ;;  %v669_v23 = vsub.f32 -1e+30, %v667_v56  ;;  %v670_v24 = vmul.f32 1.442695, %v668_v22 }
 0x26c   : > { %v693_v59 = vpop.permute.xlu1 %692 }
 0x26d   : > { %v678_v60 = vmul.f32 1.442695, %v675_v58  ;;  %2255 = vmatpush3.bf16.msra.mxu1 %v693_v59  ;;  %2472 = vpow2.f32 %v676_v57  ;;  %v672_v25 = vmul.f32 1.442695, %v669_v23 }
 0x26e   : > { %2268 = vmatprep.subr.bf16.mxu1 %v2609_v2 }
 0x26f   : > { %2474 = vpow2.f32 %v678_v60 }
 0x270   : > { %v872_v3 = vpop.permute.xlu1 %871  ;;  %2476 = vpow2.f32 %v670_v24 }
 0x271   : > { %2478 = vpow2.f32 %v672_v25 }
 0x274   : > { %v766_v8 = vpop.permute.xlu1 %765 }
 0x275   : > { %v803_v9 = vadd.f32 %v802_v4, %v766_v8  ;;  %v806_v10 = vadd.f32 %v805_v7, %v766_v8 }
 0x277   : > { %v2836_v61 = vpop.eup %2472  ;;  %v809_v17 = vmul.f32 0.35355338, %v803_v9  ;;  %v810_v20 = vmul.f32 0.35355338, %v806_v10 }
 0x278   : > { %v682_v57 = vsel %vm659_vm3, %v2836_v61, 0.0 }
 0x279   : > { %v2838_v62 = vpop.eup %2474  ;;  %v811_v21 = vpack.c.bf16 %v810_v20, %v809_v17 }
 0x27a   : > { %v690_v0 = vpack.c.bf16 %v2838_v62, %v2836_v61  ;;  %v2477_v26 = vpop.eup %2476  ;;  %v685_v56 = vsel %vm659_vm3, %v2838_v62, 0.0  ;;  %v746_v61 = vld [vmem:[%s3135_s6] sm:$0xf] }
 0x27b   : > { %v2479_v27 = vpop.eup %2478  ;;  %v2857_v28 = vmul.f32 0.0, %v2477_v26  ;;  %v1067_v20 = vsel %vm1018_vm4, %v746_v61, 0 }
 0x27c   : > { %2257 = vmatmul.mubr.msk.bf16.vlgmr.msra.gmra.mrb[4].mxu1 %vm659_vm3, %v690_v0  ;;  %v681_v32 = vmul.f32 0.0, %v2479_v27 }
 0x27d   : > { %2269 = vmatpush3.bf16.msra.mxu1 %v2454_v63  ;;  %2272 = vmatprep.mubr.msk.bf16.mxu1 %vm2610_vm0, %v2609_v2 }
 0x27e   : > { %2270 = vmatprep.subr.bf16.mxu1 %v2609_v2 }
 0x281   : > { %2271 = vmatpush3.bf16.msra.mxu1 %v2456_v1 }
 0x282   : > { %2282 = vmatprep.subr.bf16.mxu1 %v2609_v2 }
 0x284   : > { %2273 = vmatmul.mubr.msk.bf16.vlgmr.msra.gmra.mrb[8].mxu1 %vm479_vm1, %v2775_v13 }
 0x285   : > { %2284 = vmatprep.mubr.msk.bf16.mxu1 %vm2610_vm0, %v2609_v2 }
 0x34f   : > { %v732_v29 = vpop.f32.mrb[4].mxu1 }
 0x350   : > { %v2860_v30 = vadd.f32 %v732_v29, %v2857_v28  ;;  %v2258_v31 = vpop.f32.mrb[5].mxu1  ;;  %v2458_v29 = vld [vmem:[%s3134_s5 + $0x20] sm:$0xff]  }
 0x351   : > { %v735_v33 = vpop.f32.mrb[6].mxu1 }
 0x352   : > { %v740_v34 = vadd.f32 %v735_v33, %v681_v32  ;;  %v2259_v35 = vpop.f32.mrb[7].mxu1 }
 0x357   : > { %v863_v36 = vpop.f32.mrb[8].mxu1 }
 0x358   : > { %v2274_v37 = vpop.f32.mrb[9].mxu1  ;;  %v874_v39 = vadd.f32 %v872_v3, %v863_v36  ;;  %v877_v40 = vadd.f32 %v863_v36, %v2772_v12 }
 0x359   : > { %v866_v38 = vpop.f32.mrb[10].mxu1 }
 0x35a   : > { %v875_v42 = vadd.f32 %v872_v3, %v866_v38  ;;  %v878_v43 = vadd.f32 %v866_v38, %v2772_v12  ;;  %v2275_v44 = vpop.f32.mrb[11].mxu1 }
 0x35c   : > { %v876_v45 = vpack.c.bf16 %v875_v42, %v874_v39  ;;  %v879_v46 = vpack.c.bf16 %v878_v43, %v877_v40 }
 0x35e   : > { %v884_v47 = vsel %vm611_vm2, %v876_v45, 0 }
 0x35f   : > { %2277 = vmatpush3.bf16.xpose.msra.mxu0 %v884_v47 }
 0x360   : > { %2288 = vmatprep.subr.bf16.mxu0 %v2609_v2 }
 0x366   : > { %2279 = vmatmul.mubr.msk.bf16.vlgmr.msra.gmra.mrb[12].mxu0 %vm611_vm2, %v811_v21 }
 0x367   : > { %2290 = vmatprep.mubr.msk.bf16.mxu0 %vm2610_vm0, %v2609_v2 }
 0x439   : > { %v920_v48 = vpop.f32.mrb[12].mxu0 }
 0x43a   : > { %v921_v49 = vadd.f32 %v2812_v41, %v920_v48  ;;  %v2280_v50 = vpop.f32.mrb[13].mxu0 }
 0x43b   : > { %v923_v51 = vpop.f32.mrb[14].mxu0 }
 0x43c   : > { %v924_v52 = vadd.f32 %v2812_v41, %v923_v51  ;;  %v2281_v53 = vpop.f32.mrb[15].mxu0  ;;  %v927_v54 = vsel %vm659_vm3, %v921_v49, -inf }
 0x43d   : > { %928 = vmax.xlane.f32.xlu1 %v927_v54 }
 0x43e   : > { %v930_v55 = vsel %vm659_vm3, %v924_v52, -inf }
 0x43f   : > { %931 = vmax.xlane.f32.xlu0 %v930_v55  ;;  %v2460_v55 = vld [vmem:[%s3133_s4 + $0x20] sm:$0xff]  }
 0x441   : > { %686 = vadd.xlane.f32.xlu1 %v685_v56 }
 0x455   : > { %959 = vrot.lane.b32.xlu0 %v879_v46, %s2612_s15 }
 0x474   : > { %683 = vadd.xlane.f32.xlu0 %v682_v57  ;;  %v2461_v57 = vld [vmem:[%s3133_s4 + $0x28] sm:$0xff]  }
 0x48a   : > { %1127 = vrot.lane.b32.xlu0 %v2795_v18, %s2613_s28 }
 0x4ca   : > { %v929_v58 = vpop.xlane.xlu1 %928 }
 0x4cb   : > { %v933_v59 = vmax.f32 %v929_v58, -1e+30 }
 0x4cc   : > { %v932_v60 = vpop.xlane.xlu0 %931 }
 0x4cd   : > { %v941_v63 = vsub.f32 %v921_v49, %v933_v59  ;;  %v934_v0 = vmax.f32 %v932_v60, -1e+30 }
 0x4ce   : > { %v687_v1 = vpop.xlane.xlu1 %686 }
 0x4cf   : > { %v943_v3 = vmul.f32 1.442695, %v941_v63  ;;  %v942_v4 = vsub.f32 %v924_v52, %v934_v0  ;;  %v689_v8 = vadd.f32 %v687_v1, %v681_v32  ;;  %v935_v32 = vsub.f32 -1e+30, %v933_v59 }
 0x4d0   : > { %v960_v5 = vpop.permute.xlu0 %959  ;;  %v936_v33 = vsub.f32 -1e+30, %v934_v0 }
 0x4d1   : > { %v945_v7 = vmul.f32 1.442695, %v942_v4  ;;  %2283 = vmatpush3.bf16.msra.mxu1 %v960_v5  ;;  %2480 = vpow2.f32 %v943_v3 }
 0x4d2   : > { %2294 = vmatprep.subr.bf16.mxu1 %v2609_v2  ;;  %v939_v35 = vmul.f32 1.442695, %v936_v33 }
 0x4d3   : > { %2482 = vpow2.f32 %v945_v7 }
 0x4d4   : > { %2484 = vrcp.f32 %v689_v8 }
 0x4db   : > { %v2481_v62 = vpop.eup %2480 }
 0x4dc   : > { %v949_v9 = vsel %vm659_vm3, %v2481_v62, 0.0 }
 0x4dd   : > { %v2483_v10 = vpop.eup %2482  ;;  %950 = vadd.xlane.f32.xlu1 %v949_v9 }
 0x4de   : > { %v2485_v16 = vpop.eup %2484  ;;  %v957_v17 = vpack.c.bf16 %v2483_v10, %v2481_v62  ;;  %v952_v22 = vsel %vm659_vm3, %v2483_v10, 0.0 }
 0x4df   : > { %v744_v21 = vmul.f32 %v2485_v16, %v740_v34  ;;  %v937_v34 = vmul.f32 1.442695, %v935_v32 }
 0x4e0   : > { %2285 = vmatmul.mubr.msk.bf16.vlgmr.msra.gmra.mrb[12].mxu1 %vm659_vm3, %v957_v17 }
 0x4e1   : > { %953 = vadd.xlane.f32.xlu1 %v952_v22  ;;  %2295 = vmatpush3.bf16.msra.mxu1 %v1067_v20 }
 0x4e2   : > { %2296 = vmatprep.mubr.msk.bf16.mxu1 %vm2610_vm0, %v2609_v2  ;;  %2308 = vmatprep.subr.bf16.mxu1 %v2609_v2 }
 0x4f2   : > { %1232 = vrot.lane.b32.xlu1 %v2797_v19, %s2613_s28 }
 0x4f6   : > { %1238 = vrot.lane.b32.xlu1 %v2772_v12, %s2612_s15 }
 0x501   : > { %v684_v23 = vpop.xlane.xlu0 %683 }
 0x502   : > { %v688_v24 = vadd.f32 %v684_v23, %v2857_v28  ;;  %v2459_v28 = vld [vmem:[%s3134_s5 + $0x28] sm:$0xff]  }
 0x504   : > { %2486 = vrcp.f32 %v688_v24 }
 0x505   : > { %2488 = vpow2.f32 %v937_v34 }
 0x506   : > { %2490 = vpow2.f32 %v939_v35 }
 0x50e   : > { %v2487_v25 = vpop.eup %2486 }
 0x50f   : > { %v743_v26 = vmul.f32 %v2487_v25, %v2860_v30  ;;  %v2119_v30 = vld [vmem:[%s3135_s6 + $0x4] sm:$0xf]  ;;  %v2489_v37 = vpop.eup %2488 }
 0x510   : > { %v1020_v31 = vsel %vm1018_vm4, %v2119_v30, 0  ;;  %v2491_v38 = vpop.eup %2490  ;;  %v947_v39 = vmul.f32 0.0, %v2489_v37 }
 0x511   : > { %v745_v27 = vpack.c.bf16 %v744_v21, %v743_v26  ;;  %2289 = vmatpush3.bf16.msra.mxu0 %v1020_v31  ;;  %v948_v43 = vmul.f32 0.0, %v2491_v38  ;;  %v1128_v26 = vpop.permute.xlu0 %1127 }
 0x512   : > { %2300 = vmatprep.subr.bf16.mxu0 %v2609_v2 }
 0x513   : > { %2297 = vmatmul.mubr.msk.bf16.vlgmr.msra.gmra.mrb[16].mxu1 %vm611_vm2, %v745_v27 }
 0x514   : > { %2312 = vmatprep.mubr.msk.bf16.mxu1 %vm2610_vm0, %v2609_v2  ;;  %2309 = vmatpush3.bf16.msra.mxu1 %v2458_v29 }
 0x515   : > { %2310 = vmatprep.subr.bf16.mxu1 %v2609_v2 }
 0x518   : > { %2311 = vmatpush3.bf16.msra.mxu1 %v2459_v28 }
 0x519   : > { %2322 = vmatprep.subr.bf16.mxu1 %v2609_v2 }
 0x51b   : > { %2313 = vmatmul.mubr.msk.bf16.vlgmr.msra.gmra.mrb[20].mxu1 %vm479_vm1, %v2775_v13 }
 0x51c   : > { %2324 = vmatprep.mubr.msk.bf16.mxu1 %vm2610_vm0, %v2609_v2 }
 0x56a   : > { %v951_v36 = vpop.xlane.xlu1 %950 }
 0x56b   : > { %v955_v42 = vadd.f32 %v951_v36, %v947_v39 }
 0x56d   : > { %2492 = vrcp.f32 %v955_v42 }
 0x56e   : > { %v954_v40 = vpop.xlane.xlu1 %953 }
 0x56f   : > { %v956_v44 = vadd.f32 %v954_v40, %v948_v43 }
 0x571   : > { %2494 = vrcp.f32 %v956_v44 }
 0x572   : > { %v1233_v0 = vpop.permute.xlu1 %1232 }
 0x576   : > { %v1239_v1 = vpop.permute.xlu1 %1238 }
 0x577   : > { %v2493_v48 = vpop.eup %2492 }
 0x57b   : > { %v2495_v53 = vpop.eup %2494 }
 0x5b3   : > { %v999_v45 = vpop.f32.mrb[12].mxu1 }
 0x5b4   : > { %v1006_v46 = vadd.f32 %v999_v45, %v947_v39  ;;  %v2286_v47 = vpop.f32.mrb[13].mxu1 }
 0x5b5   : > { %v1002_v49 = vpop.f32.mrb[14].mxu1 }
 0x5b6   : > { %v1010_v50 = vmul.f32 %v2493_v48, %v1006_v46  ;;  %v1007_v51 = vadd.f32 %v1002_v49, %v948_v43  ;;  %v2287_v52 = vpop.f32.mrb[15].mxu1 }
 0x5b8   : > { %v1011_v54 = vmul.f32 %v2495_v53, %v1007_v51 }
 0x5ba   : > { %v1012_v56 = vpack.c.bf16 %v1011_v54, %v1010_v50 }
 0x5bc   : > { %2291 = vmatmul.mubr.msk.bf16.vlgmr.msra.gmra.mrb[16].mxu0 %vm611_vm2, %v1012_v56 }
 0x5bd   : > { %2301 = vmatpush3.bf16.msra.mxu0 %v2460_v55  ;;  %2304 = vmatprep.mubr.msk.bf16.mxu0 %vm2610_vm0, %v2609_v2 }
 0x5be   : > { %2302 = vmatprep.subr.bf16.mxu0 %v2609_v2 }
 0x5c1   : > { %2303 = vmatpush3.bf16.msra.mxu0 %v2461_v57 }
 0x5c2   : > { %2316 = vmatprep.subr.bf16.mxu0 %v2609_v2 }
 0x5c4   : > { %2305 = vmatmul.mubr.msk.bf16.vlgmr.msra.gmra.mrb[20].mxu0 %vm479_vm1, %v2781_v15 }
 0x5c5   : > { %2318 = vmatprep.mubr.msk.bf16.mxu0 %vm2610_vm0, %v2609_v2 }
 0x5e6   : > { %v1103_v58 = vpop.f32.mrb[16].mxu1 }
 0x5e7   : > { %v2298_v59 = vpop.f32.mrb[17].mxu1 }
 0x5e8   : > { %v1106_v60 = vpop.f32.mrb[18].mxu1  ;;  %v2138_v59 = vld [vmem:[%s3135_s6 + $0x8] sm:$0xf] }
 0x5e9   : > { %v2299_v63 = vpop.f32.mrb[19].mxu1 }
 0x5ea   : > { %v2463_v63 = vld [vmem:[%s3133_s4 + $0x30] sm:$0xff]  }
 0x5ee   : > { %v1225_v3 = vpop.f32.mrb[20].mxu1 }
 0x5ef   : > { %v1235_v4 = vadd.f32 %v1233_v0, %v1225_v3  ;;  %v2314_v5 = vpop.f32.mrb[21].mxu1  ;;  %v1241_v7 = vadd.f32 %v1239_v1, %v1225_v3 }
 0x5f0   : > { %v1228_v8 = vpop.f32.mrb[22].mxu1 }
 0x5f1   : > { %v1236_v62 = vadd.f32 %v1233_v0, %v1228_v8  ;;  %v1242_v61 = vadd.f32 %v1239_v1, %v1228_v8  ;;  %v2315_v9 = vpop.f32.mrb[23].mxu1  ;;  %v2465_v0 = vld [vmem:[%s3133_s4 + $0x38] sm:$0xff]  }
 0x5f3   : > { %v1237_v10 = vpack.c.bf16 %v1236_v62, %v1235_v4  ;;  %v1243_v16 = vpack.c.bf16 %v1242_v61, %v1241_v7 }
 0x5f5   : > { %v1248_v17 = vsel %vm611_vm2, %v1237_v10, 0 }
 0x5f6   : > { %2317 = vmatpush3.bf16.xpose.msra.mxu0 %v1248_v17 }
 0x5f7   : > { %2328 = vmatprep.subr.bf16.mxu0 %v2609_v2 }
 0x68f   : > { %v1056_v20 = vpop.f32.mrb[16].mxu0 }
 0x690   : > { %v2934_v21 = vadd.f32 %v1103_v58, %v1056_v20  ;;  %v2292_v22 = vpop.f32.mrb[17].mxu0 }
 0x691   : > { %v1059_v23 = vpop.f32.mrb[18].mxu0 }
 0x692   : > { %v2936_v24 = vadd.f32 %v1106_v60, %v1059_v23  ;;  %v2293_v25 = vpop.f32.mrb[19].mxu0  ;;  %v1383_v60 = vsel %vm1018_vm4, %v2138_v59, 0 }
 0x697   : > { %v1164_v27 = vpop.f32.mrb[20].mxu0 }
 0x698   : > { %v1165_v29 = vadd.f32 %v1164_v27, %v1128_v26  ;;  %v2306_v28 = vpop.f32.mrb[21].mxu0 }
 0x699   : > { %v1167_v30 = vpop.f32.mrb[22].mxu0 }
 0x69a   : > { %v1168_v31 = vadd.f32 %v1167_v30, %v1128_v26  ;;  %v2307_v32 = vpop.f32.mrb[23].mxu0  ;;  %v1171_v33 = vmul.f32 0.35355338, %v1165_v29  ;;  %v2462_v29 = vld [vmem:[%s3134_s5 + $0x30] sm:$0xff]   ;;  %v2464_v30 = vld [vmem:[%s3134_s5 + $0x38] sm:$0xff]  }
 0x69c   : > { %v1172_v34 = vmul.f32 0.35355338, %v1168_v31 }
 0x69e   : > { %v1173_v35 = vpack.c.bf16 %v1172_v34, %v1171_v33 }
 0x6a0   : > { %2319 = vmatmul.mubr.msk.bf16.vlgmr.msra.gmra.mrb[24].mxu0 %vm611_vm2, %v1173_v35 }
 0x6a1   : > { %2330 = vmatprep.mubr.msk.bf16.mxu0 %vm2610_vm0, %v2609_v2  ;;  %2329 = vmatpush3.bf16.msra.mxu0 %v1383_v60 }
 0x6a2   : > { %2342 = vmatprep.subr.bf16.mxu0 %v2609_v2 }
 0x773   : > { %v1284_v36 = vpop.f32.mrb[24].mxu0 }
 0x774   : > { %v1285_v37 = vadd.f32 %v2812_v41, %v1284_v36  ;;  %v2320_v38 = vpop.f32.mrb[25].mxu0 }
 0x775   : > { %v1287_v39 = vpop.f32.mrb[26].mxu0 }
 0x776   : > { %v1288_v40 = vadd.f32 %v2812_v41, %v1287_v39  ;;  %v2321_v42 = vpop.f32.mrb[27].mxu0  ;;  %v1291_v43 = vsel %vm659_vm3, %v1285_v37, -inf }
 0x777   : > { %1292 = vmax.xlane.f32.xlu1 %v1291_v43 }
 0x778   : > { %v1294_v44 = vsel %vm659_vm3, %v1288_v40, -inf }
 0x779   : > { %1295 = vmax.xlane.f32.xlu0 %v1294_v44 }
 0x788   : > { %1323 = vrot.lane.b32.xlu1 %v1243_v16, %s2612_s15 }
 0x78c   : > { %1550 = vrot.lane.b32.xlu1 %v2797_v19, %s2614_s26 }
 0x790   : > { %1556 = vrot.lane.b32.xlu1 %v2772_v12, %s2613_s28 }
 0x804   : > { %v1293_v45 = vpop.xlane.xlu1 %1292 }
 0x805   : > { %v1297_v46 = vmax.f32 %v1293_v45, -1e+30 }
 0x806   : > { %v1296_v47 = vpop.xlane.xlu0 %1295 }
 0x807   : > { %v1305_v48 = vsub.f32 %v1285_v37, %v1297_v46  ;;  %v1298_v49 = vmax.f32 %v1296_v47, -1e+30  ;;  %v1299_v1 = vsub.f32 -1e+30, %v1297_v46 }
 0x808   : > { %v1324_v50 = vpop.permute.xlu1 %1323 }
 0x809   : > { %v1307_v51 = vmul.f32 1.442695, %v1305_v48  ;;  %v1306_v52 = vsub.f32 %v1288_v40, %v1298_v49  ;;  %2323 = vmatpush3.bf16.msra.mxu1 %v1324_v50  ;;  %v1300_v3 = vsub.f32 -1e+30, %v1298_v49  ;;  %v1301_v4 = vmul.f32 1.442695, %v1299_v1 }
 0x80a   : > { %2334 = vmatprep.subr.bf16.mxu1 %v2609_v2 }
 0x80b   : > { %v1309_v53 = vmul.f32 1.442695, %v1306_v52  ;;  %2496 = vpow2.f32 %v1307_v51  ;;  %v1303_v5 = vmul.f32 1.442695, %v1300_v3 }
 0x80d   : > { %2498 = vpow2.f32 %v1309_v53 }
 0x80e   : > { %2500 = vpow2.f32 %v1301_v4 }
 0x80f   : > { %2502 = vpow2.f32 %v1303_v5 }
 0x815   : > { %v2497_v54 = vpop.eup %2496 }
 0x816   : > { %v1313_v55 = vsel %vm659_vm3, %v2497_v54, 0.0 }
 0x817   : > { %v2499_v56 = vpop.eup %2498  ;;  %1314 = vadd.xlane.f32.xlu0 %v1313_v55 }
 0x818   : > { %v1321_v57 = vpack.c.bf16 %v2499_v56, %v2497_v54  ;;  %v1316_v58 = vsel %vm659_vm3, %v2499_v56, 0.0 }
 0x81a   : > { %2325 = vmatmul.mubr.msk.bf16.vlgmr.msra.gmra.mrb[24].mxu1 %vm659_vm3, %v1321_v57 }
 0x81b   : > { %1317 = vadd.xlane.f32.xlu0 %v1316_v58  ;;  %2338 = vmatprep.mubr.msk.bf16.mxu1 %vm2610_vm0, %v2609_v2 }
 0x81c   : > { %2335 = vmatpush3.bf16.msra.mxu1 %v2463_v63 }
 0x81d   : > { %2336 = vmatprep.subr.bf16.mxu1 %v2609_v2 }
 0x820   : > { %2337 = vmatpush3.bf16.msra.mxu1 %v2465_v0 }
 0x821   : > { %2350 = vmatprep.subr.bf16.mxu1 %v2609_v2 }
 0x823   : > { %2339 = vmatmul.mubr.msk.bf16.vlgmr.msra.gmra.mrb[28].mxu1 %vm479_vm1, %v2781_v15 }
 0x824   : > { %2352 = vmatprep.mubr.msk.bf16.mxu1 %vm2610_vm0, %v2609_v2 }
 0x831   : > { %1445 = vrot.lane.b32.xlu0 %v2795_v18, %s2614_s26  ;;  %v2501_v18 = vpop.eup %2500 }
 0x832   : > { %v2503_v7 = vpop.eup %2502  ;;  %v1311_v8 = vmul.f32 0.0, %v2501_v18 }
 0x833   : > { %v1312_v9 = vmul.f32 0.0, %v2503_v7 }
 0x8a4   : > { %v1315_v19 = vpop.xlane.xlu0 %1314 }
 0x8a5   : > { %v1319_v61 = vadd.f32 %v1315_v19, %v1311_v8 }
 0x8a7   : > { %2504 = vrcp.f32 %v1319_v61 }
 0x8a8   : > { %v1318_v62 = vpop.xlane.xlu0 %1317 }
 0x8a9   : > { %v1320_v15 = vadd.f32 %v1318_v62, %v1312_v9 }
 0x8ab   : > { %2506 = vrcp.f32 %v1320_v15 }
 0x8ac   : > { %v1446_v32 = vpop.permute.xlu0 %1445 }
 0x8b1   : > { %v2505_v17 = vpop.eup %2504 }
 0x8b5   : > { %v2507_v26 = vpop.eup %2506 }
 0x8ed   : > { %v1363_v12 = vpop.f32.mrb[24].mxu1 }
 0x8ee   : > { %v1370_v10 = vadd.f32 %v1363_v12, %v1311_v8  ;;  %v2326_v16 = vpop.f32.mrb[25].mxu1 }
 0x8ef   : > { %v1366_v20 = vpop.f32.mrb[26].mxu1 }
 0x8f0   : > { %v1374_v22 = vmul.f32 %v2505_v17, %v1370_v10  ;;  %v1371_v23 = vadd.f32 %v1366_v20, %v1312_v9  ;;  %v2327_v25 = vpop.f32.mrb[27].mxu1  ;;  %v2156_v20 = vld [vmem:[%s3135_s6 + $0xc] sm:$0xf] }
 0x8f2   : > { %v1375_v27 = vmul.f32 %v2507_v26, %v1371_v23 }
 0x8f4   : > { %v1376_v28 = vpack.c.bf16 %v1375_v27, %v1374_v22  ;;  %v1701_v22 = vsel %vm1018_vm4, %v2156_v20, 0  ;;  %v1789_v20 = vsub.s32 3, %v2756_v6 }
 0x8f6   : > { %2331 = vmatmul.mubr.msk.bf16.vlgmr.msra.gmra.mrb[28].mxu0 %vm611_vm2, %v1376_v28  ;;  %v1482_v31 = vpop.f32.mrb[28].mxu1 }
 0x8f7   : > { %2343 = vmatpush3.bf16.msra.mxu0 %v2462_v29  ;;  %2346 = vmatprep.mubr.msk.bf16.mxu0 %vm2610_vm0, %v2609_v2  ;;  %v2340_v33 = vpop.f32.mrb[29].mxu1  ;;  %v1483_v34 = vadd.f32 %v1482_v31, %v1446_v32 }
 0x8f8   : > { %2344 = vmatprep.subr.bf16.mxu0 %v2609_v2  ;;  %v1485_v35 = vpop.f32.mrb[30].mxu1 }
 0x8f9   : > { %v1486_v36 = vadd.f32 %v1485_v35, %v1446_v32  ;;  %v1489_v37 = vmul.f32 0.35355338, %v1483_v34  ;;  %v2341_v38 = vpop.f32.mrb[31].mxu1 }
 0x8fb   : > { %2345 = vmatpush3.bf16.msra.mxu0 %v2464_v30  ;;  %v1490_v39 = vmul.f32 0.35355338, %v1486_v36 }
 0x8fc   : > { %2356 = vmatprep.subr.bf16.mxu0 %v2609_v2 }
 0x8fd   : > { %v1491_v40 = vpack.c.bf16 %v1490_v39, %v1489_v37 }
 0x8fe   : > { %2347 = vmatmul.mubr.msk.bf16.vlgmr.msra.gmra.mrb[32].mxu0 %vm479_vm1, %v2775_v13  ;;  %v1551_v13 = vpop.permute.xlu1 %1550 }
 0x8ff   : > { %2358 = vmatprep.mubr.msk.bf16.mxu0 %vm2610_vm0, %v2609_v2 }
 0x902   : > { %v1557_v48 = vpop.permute.xlu1 %1556 }
 0x9c9   : > { %v1419_v42 = vpop.f32.mrb[28].mxu0 }
 0x9ca   : > { %v2989_v43 = vadd.f32 %v1419_v42, %v2934_v21  ;;  %v2332_v44 = vpop.f32.mrb[29].mxu0 }
 0x9cb   : > { %v1422_v45 = vpop.f32.mrb[30].mxu0 }
 0x9cc   : > { %v2992_v46 = vadd.f32 %v1422_v45, %v2936_v24  ;;  %v2333_v47 = vpop.f32.mrb[31].mxu0 }
 0x9d1   : > { %v1543_v49 = vpop.f32.mrb[32].mxu0 }
 0x9d2   : > { %v2348_v50 = vpop.f32.mrb[33].mxu0  ;;  %v1553_v52 = vadd.f32 %v1551_v13, %v1543_v49  ;;  %v1559_v53 = vadd.f32 %v1557_v48, %v1543_v49  ;;  %v1748_v49 = vsub.s32 7, %v2756_v6 }
 0x9d3   : > { %v1546_v51 = vpop.f32.mrb[34].mxu0  ;;  %v2528_v50 = vld [vmem:[%s3132_s3] sm:$0xff] }
 0x9d4   : > { %v1554_v54 = vadd.f32 %v1551_v13, %v1546_v51  ;;  %v1560_v55 = vadd.f32 %v1557_v48, %v1546_v51  ;;  %v2349_v56 = vpop.f32.mrb[35].mxu0  ;;  %v1749_v51 = vrot.slane %v2528_v50, %v1748_v49 }
 0x9d6   : > { %v1555_v57 = vpack.c.bf16 %v1554_v54, %v1553_v52  ;;  %v1561_v58 = vpack.c.bf16 %v1560_v55, %v1559_v53 }
 0x9d8   : > { %v1566_v21 = vsel %vm611_vm2, %v1555_v57, 0 }
 0x9d9   : > { %2351 = vmatpush3.bf16.xpose.msra.mxu1 %v1566_v21 }
 0x9da   : > { %2362 = vmatprep.subr.bf16.mxu1 %v2609_v2 }
 0x9e0   : > { %2353 = vmatmul.mubr.msk.bf16.vlgmr.msra.gmra.mrb[32].mxu1 %vm611_vm2, %v1491_v40 }
 0x9e1   : > { %2364 = vmatprep.mubr.msk.bf16.mxu1 %vm2610_vm0, %v2609_v2  ;;  %2363 = vmatpush3.bf16.msra.mxu1 %v1701_v22 }
 0x9e2   : > { %2376 = vmatprep.subr.bf16.mxu1 %v2609_v2 }
 0xab3   : > { %v1602_v24 = vpop.f32.mrb[32].mxu1 }
 0xab4   : > { %v1603_v59 = vadd.f32 %v2812_v41, %v1602_v24  ;;  %v2354_v60 = vpop.f32.mrb[33].mxu1 }
 0xab5   : > { %v1605_v63 = vpop.f32.mrb[34].mxu1 }
 0xab6   : > { %v1606_v0 = vadd.f32 %v2812_v41, %v1605_v63  ;;  %v2355_v1 = vpop.f32.mrb[35].mxu1  ;;  %v1609_v3 = vsel %vm659_vm3, %v1603_v59, -inf }
 0xab7   : > { %1610 = vmax.xlane.f32.xlu1 %v1609_v3 }
 0xab8   : > { %v1612_v4 = vsel %vm659_vm3, %v1606_v0, -inf }
 0xab9   : > { %1613 = vmax.xlane.f32.xlu0 %v1612_v4 }
 0xac8   : > { %1641 = vrot.lane.b32.xlu1 %v1561_v58, %s2612_s15  ;;  %s428_s15 = sand.u32 1, %s2591_s18  }
 0xac9   : > { %s2089_s16 = sshll.u32 %s428_s15, 4  ;;  %s3082_s20 = scalar_lea.sflag [#allocation3], %s428_s15 }
 0xaca   : > { %s430_s26 = scalar_lea.vmem [#allocation2], %s2089_s16  ;;  %s3079_s16 = scalar_lea.hbm %s3140_s11, %s2175_s25 }
 0xacb   : > { %s1984_s28 = sshll.u32 %s430_s26, 4  ;;  %s3072_s28 = int_to_ptr.vmem [resolvable:$true] %s1984_s28 }
 0xacc   : > { %s2529_s23 = scalar_lea.vmem %s3072_s28, 256  ;;  %p2536_p1 = scmp.lt.s32.totalorder %s3072_s28, %s2534_s12 }
 0xacd   : > { %p2530_p12 = scmp.ne.s32.totalorder %s3072_s28, %s2529_s23  ;;  %p2537_p2 = scmp.lt.s32.totalorder %s2535_s0, %s2529_s23 }
 0xacf   : > { %p2531_p13 = pnand %p2530_p12, %p2717_p4  ;;  %p2538_p3 = por %p2537_p2, %p2536_p1 }
 0xad1   : > { %p2532_p0 = pneg %p2531_p13 }
 0xad3   : > { %p2539_p5 = pnand %p2538_p3, %p2532_p0 }
 0xb44   : > { %v1611_v5 = vpop.xlane.xlu1 %1610 }
 0xb45   : > { %v1615_v19 = vmax.f32 %v1611_v5, -1e+30 }
 0xb46   : > { %v1614_v18 = vpop.xlane.xlu0 %1613 }
 0xb47   : > { %v1623_v7 = vsub.f32 %v1603_v59, %v1615_v19  ;;  %v1616_v8 = vmax.f32 %v1614_v18, -1e+30  ;;  %v1617_v23 = vsub.f32 -1e+30, %v1615_v19  ;;  %v2466_v18 = vld [vmem:[%s3136_s7] sm:$0xff]  }
 0xb48   : > { %v1642_v62 = vpop.permute.xlu1 %1641 }
 0xb49   : > { %v1625_v61 = vmul.f32 1.442695, %v1623_v7  ;;  %v1624_v9 = vsub.f32 %v1606_v0, %v1616_v8  ;;  %2357 = vmatpush3.bf16.msra.mxu0 %v1642_v62  ;;  %v1618_v25 = vsub.f32 -1e+30, %v1616_v8  ;;  %v1619_v26 = vmul.f32 1.442695, %v1617_v23 }
 0xb4a   : > { %2368 = vmatprep.subr.bf16.mxu0 %v2609_v2  ;;  %v2467_v7 = vld [vmem:[%s3136_s7 + $0x8] sm:$0xff]  }
 0xb4b   : > { %v1627_v41 = vmul.f32 1.442695, %v1624_v9  ;;  %2508 = vpow2.f32 %v1625_v61  ;;  %v1621_v27 = vmul.f32 1.442695, %v1618_v25 }
 0xb4d   : > { %2510 = vpow2.f32 %v1627_v41 }
 0xb4e   : > { %2512 = vpow2.f32 %v1619_v26  ;;  %v1790_v26 = vrot.slane %v2528_v50, %v1789_v20 }
 0xb4f   : > { %2514 = vpow2.f32 %v1621_v27 }
 0xb55   : > { %v2509_v15 = vpop.eup %2508 }
 0xb56   : > { %v1631_v12 = vsel %vm659_vm3, %v2509_v15, 0.0 }
 0xb57   : > { %v2511_v10 = vpop.eup %2510  ;;  %1632 = vadd.xlane.f32.xlu0 %v1631_v12  ;;  %v1783_v12 = vsub.s32 2, %v2756_v6  ;;  %v2470_v6 = vld [vmem:[%s3138_s9 + $0x10] sm:$0xff]  }
 0xb58   : > { %v1639_v16 = vpack.c.bf16 %v2511_v10, %v2509_v15  ;;  %v1634_v17 = vsel %vm659_vm3, %v2511_v10, 0.0  ;;  %v2513_v28 = vpop.eup %2512 }
 0xb59   : > { %v2515_v30 = vpop.eup %2514  ;;  %v1629_v31 = vmul.f32 0.0, %v2513_v28 }
 0xb5a   : > { %2359 = vmatmul.mubr.msk.bf16.vlgmr.msra.gmra.mrb[36].mxu0 %vm659_vm3, %v1639_v16  ;;  %v1630_v34 = vmul.f32 0.0, %v2515_v30  ;;  %v1784_v16 = vrot.slane %v2528_v50, %v1783_v12 }
 0xb5b   : > { %1635 = vadd.xlane.f32.xlu0 %v1634_v17  ;;  %2372 = vmatprep.mubr.msk.bf16.mxu0 %vm2610_vm0, %v2609_v2 }
 0xb5c   : > { %2369 = vmatpush3.bf16.msra.mxu0 %v2466_v18 }
 0xb5d   : > { %2370 = vmatprep.subr.bf16.mxu0 %v2609_v2 }
 0xb60   : > { %2371 = vmatpush3.bf16.msra.mxu0 %v2467_v7 }
 0xbe4   : > { %v1633_v29 = vpop.xlane.xlu0 %1632 }
 0xbe5   : > { %v1637_v33 = vadd.f32 %v1633_v29, %v1629_v31 }
 0xbe7   : > { %2516 = vrcp.f32 %v1637_v33  ;;  %v2471_v33 = vld [vmem:[%s3138_s9 + $0x18] sm:$0xff]  }
 0xbe8   : > { %v1636_v32 = vpop.xlane.xlu0 %1635 }
 0xbe9   : > { %v1638_v35 = vadd.f32 %v1636_v32, %v1630_v34  ;;  %v2469_v32 = vld [vmem:[%s3138_s9 + $0x8] sm:$0xff]  }
 0xbeb   : > { %2518 = vrcp.f32 %v1638_v35 }
 0xbf1   : > { %v2517_v39 = vpop.eup %2516 }
 0xbf5   : > { %v2519_v13 = vpop.eup %2518 }
 0xc2d   : > { %v1681_v36 = vpop.f32.mrb[36].mxu0 }
 0xc2e   : > { %v1688_v37 = vadd.f32 %v1681_v36, %v1629_v31  ;;  %v2360_v38 = vpop.f32.mrb[37].mxu0  ;;  %v2468_v31 = vld [vmem:[%s3138_s9] sm:$0xff]  }
 0xc2f   : > { %v1684_v40 = vpop.f32.mrb[38].mxu0 }
 0xc30   : > { %v1692_v42 = vmul.f32 %v2517_v39, %v1688_v37  ;;  %v1689_v44 = vadd.f32 %v1684_v40, %v1630_v34  ;;  %v2361_v45 = vpop.f32.mrb[39].mxu0  ;;  %v2158_v34 = vld [vmem:[%s3137_s8] ss:$0 sm:$0xff] }
 0xc32   : > { %v1693_v47 = vmul.f32 %v2519_v13, %v1689_v44 }
 0xc34   : > { %v1694_v48 = vpack.c.bf16 %v1693_v47, %v1692_v42 }
 0xc36   : > { %2365 = vmatmul.mubr.msk.bf16.vlgmr.msra.gmra.mrb[36].mxu1 %vm611_vm2, %v1694_v48 }
 0xc37   : > { %2384 = vmatprep.mubr.msk.bf16.mxu1 %vm2610_vm0, %v2609_v2  ;;  %2377 = vmatpush3.bf16.msra.mxu1 %v2468_v31 }
 0xc38   : > { %2378 = vmatprep.subr.bf16.mxu1 %v2609_v2 }
 0xc3b   : > { %2379 = vmatpush3.bf16.msra.mxu1 %v2469_v32 }
 0xc3c   : > { %2380 = vmatprep.subr.bf16.mxu1 %v2609_v2 }
 0xc3f   : > { %2381 = vmatpush3.bf16.msra.mxu1 %v2470_v6 }
 0xc40   : > { %2382 = vmatprep.subr.bf16.mxu1 %v2609_v2 }
 0xc43   : > { %2383 = vmatpush3.bf16.msra.mxu1 %v2471_v33 }
 0xd09   : > { %v1737_v52 = vpop.f32.mrb[36].mxu1 }
 0xd0a   : > { %v1744_v53 = vadd.f32 %v1737_v52, %v2989_v43  ;;  %v2366_v54 = vpop.f32.mrb[37].mxu1 }
 0xd0b   : > { %v1740_v55 = vpop.f32.mrb[38].mxu1 }
 0xd0c   : > { %v1750_v56 = vadd.f32 %v1749_v51, %v1744_v53  ;;  %v1745_v57 = vadd.f32 %v1740_v55, %v2992_v46  ;;  %v2367_v58 = vpop.f32.mrb[39].mxu1 }
 0xd0e   : > { %v3025_v21 = vadd.f32 %v1750_v56, %v2770_v11  ;;  %v1751_v24 = vadd.f32 %v1749_v51, %v1745_v57 }
 0xd10   : > { %v3028_v59 = vadd.f32 %v1751_v24, %v2777_v14  ;;  %v1754_v60 = vsel %vm479_vm1, %v3025_v21, 0.0 }
 0xd11   : > { %1755 = vadd.xlane.f32.xlu1 %v1754_v60 }
 0xd12   : > { %v1757_v43 = vsel %vm479_vm1, %v3028_v59, 0.0 }
 0xd13   : > { %1758 = vadd.xlane.f32.xlu0 %v1757_v43  ;;  %v2162_v43 = vld [vmem:[%s3139_s10] ss:$0 sm:$0xff] }
 0xd9e   : > { %v1756_v63 = vpop.xlane.xlu1 %1755 }
 0xd9f   : > { %v1761_v0 = vmul.f32 0.03125, %v1756_v63 }
 0xda0   : > { %v1759_v1 = vpop.xlane.xlu0 %1758 }
 0xda1   : > { %v1763_v46 = vsub.f32 %v3025_v21, %v1761_v0  ;;  %v1762_v3 = vmul.f32 0.03125, %v1759_v1 }
 0xda3   : > { %v1764_v11 = vsub.f32 %v3028_v59, %v1762_v3  ;;  %v1765_v4 = vmul.f32 %v1763_v46, %v1763_v46 }
 0xda5   : > { %v1767_v14 = vsel %vm479_vm1, %v1765_v4, 0.0  ;;  %v1766_v5 = vmul.f32 %v1764_v11, %v1764_v11 }
 0xda6   : > { %1768 = vadd.xlane.f32.xlu0 %v1767_v14 }
 0xda7   : > { %v1770_v19 = vsel %vm479_vm1, %v1766_v5, 0.0 }
 0xdaa   : > { %1771 = vadd.xlane.f32.xlu0 %v1770_v19 }
 0xe33   : > { %v1769_v8 = vpop.xlane.xlu0 %1768 }
 0xe34   : > { %v1773_v62 = vmul.f32 0.03125, %v1769_v8 }
 0xe36   : > { %v1775_v61 = vadd.f32 1e-06, %v1773_v62 }
 0xe37   : > { %v1772_v9 = vpop.xlane.xlu0 %1771 }
 0xe38   : > { %2520 = vrsqrt.f32 %v1775_v61  ;;  %v1774_v41 = vmul.f32 0.03125, %v1772_v9 }
 0xe3a   : > { %v1776_v15 = vadd.f32 1e-06, %v1774_v41 }
 0xe3c   : > { %2522 = vrsqrt.f32 %v1776_v15 }
 0xe42   : > { %v2521_v10 = vpop.eup %2520 }
 0xe43   : > { %v1779_v17 = vmul.f32 %v2521_v10, %v1763_v46 }
 0xe45   : > { %v1785_v23 = vmul.f32 %v1784_v16, %v1779_v17 }
 0xe46   : > { %v2523_v22 = vpop.eup %2522 }
 0xe47   : > { %v1780_v25 = vmul.f32 %v2523_v22, %v1764_v11  ;;  %v1791_v29 = vadd.f32 %v1790_v26, %v1785_v23 }
 0xe49   : > { %v1786_v27 = vmul.f32 %v1784_v16, %v1780_v25 }
 0xe4b   : > { %v1792_v28 = vadd.f32 %v1790_v26, %v1786_v27 }
 0xe4d   : > { %v1793_v30 = vpack.c.bf16 %v1792_v28, %v1791_v29 }
 0xe4f   : > { %2373 = vmatmul.mubr.msk.bf16.vlgmr.msra.gmra.mrb[40].mxu0 %vm479_vm1, %v1793_v30 }
 0xf22   : > { %v1854_v35 = vpop.f32.mrb[40].mxu0 }
 0xf23   : > { %v1855_v36 = vadd.f32 %v2158_v34, %v1854_v35  ;;  %v2374_v37 = vpop.f32.mrb[41].mxu0 }
 0xf24   : > { %v1857_v38 = vpop.f32.mrb[42].mxu0 }
 0xf25   : > { %v1863_v39 = vmul.f32 0.044715, %v1855_v36  ;;  %v1858_v40 = vadd.f32 %v2158_v34, %v1857_v38  ;;  %v2375_v42 = vpop.f32.mrb[43].mxu0  ;;  %v1861_v55 = vmul.f32 0.5, %v1855_v36 }
 0xf27   : > { %v1865_v44 = vmul.f32 %v1863_v39, %v1855_v36  ;;  %v1864_v45 = vmul.f32 0.044715, %v1858_v40  ;;  %v1862_v56 = vmul.f32 0.5, %v1858_v40 }
 0xf29   : > { %v1867_v13 = vmul.f32 %v1865_v44, %v1855_v36  ;;  %v1866_v47 = vmul.f32 %v1864_v45, %v1858_v40 }
 0xf2b   : > { %v1869_v48 = vadd.f32 %v1867_v13, %v1855_v36  ;;  %v1868_v49 = vmul.f32 %v1866_v47, %v1858_v40 }
 0xf2d   : > { %v1871_v50 = vmul.f32 0.7978846, %v1869_v48  ;;  %v1870_v2 = vadd.f32 %v1868_v49, %v1858_v40 }
 0xf2f   : > { %2524 = vtanh.f32 %v1871_v50  ;;  %v1872_v51 = vmul.f32 0.7978846, %v1870_v2 }
 0xf31   : > { %2526 = vtanh.f32 %v1872_v51 }
 0xf39   : > { %v2525_v52 = vpop.eup %2524 }
 0xf3a   : > { %v1875_v53 = vadd.f32 1.0, %v2525_v52 }
 0xf3b   : > { %v2527_v54 = vpop.eup %2526 }
 0xf3c   : > { %v1876_v57 = vadd.f32 1.0, %v2527_v54  ;;  %v1877_v58 = vmul.f32 %v1875_v53, %v1861_v55 }
 0xf3e   : > { %v1878_v24 = vmul.f32 %v1876_v57, %v1862_v56 }
 0xf40   : > { %v1879_v60 = vpack.c.bf16 %v1878_v24, %v1877_v58 }
 0xf42   : > { %2385 = vmatmul.mubr.msk.bf16.vlgmr.msra.gmra.mrb[40].mxu1 %vm1919_vm5, %v1879_v60 }
0x1015   : > { %v1957_v63 = vpop.f32.mrb[40].mxu1 }
0x1016   : > { %v1958_v0 = vadd.f32 %v2162_v43, %v1957_v63  ;;  %v2386_v1 = vpop.f32.mrb[41].mxu1 }
0x1017   : > { %v1960_v46 = vpop.f32.mrb[42].mxu1 }
0x1018   : > { %v1964_v3 = vadd.f32 %v1958_v0, %v3025_v21  ;;  %v1961_v11 = vadd.f32 %v2162_v43, %v1960_v46  ;;  %v2387_v4 = vpop.f32.mrb[43].mxu1 }
0x101a   : > { %1966 = vst.msk [vmem:[%s430_s26] sm:$0xff] %vm479_vm1, %v1964_v3  ;;  %v1965_v14 = vadd.f32 %v1961_v11, %v3028_v59 }
0x101c   : > { %1967 = vst.msk [vmem:[%s430_s26 + $0x8] sm:$0xff] %vm479_vm1, %v1965_v14 }
0x101d   : > { %2542 = shalt.err (!%p2539_p5)
}
0x101e   : > { %s2543_s15 = scalar_lea.hbm %s3079_s16, 256  ;;  %s2547_s13 = scalar_lea.hbm %s3140_s11, 512 }
0x101f   : > { %p2544_p6 = scmp.ne.s32.totalorder %s3079_s16, %s2543_s15  ;;  %p2548_p10 = scmp.lt.u32.totalorder %s3079_s16, %s3140_s11 }
0x1020   : > { %p2549_p11 = scmp.lt.u32.totalorder %s2547_s13, %s2543_s15  ;;  %p2551_p13 = scmp.lt.u32.totalorder %s2543_s15, %s3079_s16 }
0x1021   : > { %p2545_p7 = pnand %p2544_p6, %p2717_p4 }
0x1022   : > { %p2550_p12 = por %p2549_p11, %p2548_p10 }
0x1023   : > { %p2546_p9 = pneg %p2545_p7 }
0x1024   : > { %p2552_p0 = por %p2551_p13, %p2550_p12 }
0x1026   : > { %p2553_p1 = pnand %p2552_p0, %p2546_p9 }
0x1028   : > { %2556 = shalt.err (!%p2553_p1)
}
0x1029   : > { %s2616_s0 = smov 128   ;;  %s3148_s23 = smov 8  }
0x102a   : > { %2388 = dma.vmem_to_hbm [thread:$0]  (%p2717_p4), %s3072_s28, 256, %s3079_s16, %s3082_s20, %s2616_s0, %s2616_s0, %s3148_s23  }
0x102b PF: > { %p2394_p2 = scmp.ge.s32.totalorder %s2607_s22, 2  ;;  %s1999_s24 = sand.u32 1, %s2587_s17  }
0x102c   : > { %s2000_s15 = scalar_lea.sflag [#allocation3], %s1999_s24 }
0x102d   : > { %p2391_p3 = pnand %p2394_p2, %p2724_p8 }
0x102f   : > { %2582 = dma.done.wait (!%p2391_p3), %s2000_s15, 256  }
0x1030   : > { %2584 = vsyncadd (!%p2391_p3), %s2000_s15, 4294967040  ;;  %s24_s22 = sadd.s32 1, %s2607_s22   ;;  %s3149_s27 = sld [smem:[#allocation5_spill]] }
0x1031   : > { %p21_p5 = scmp.ge.s32.totalorder %s24_s22, 4   ;;  %s3150_s17 = smov %s2591_s18 }
0x1032   : > { %s3151_s18 = smov %s2595_s19  ;;  %s3152_s19 = smov %s2730_s30 }
0x1033   : > { %s3153_s20 = smov %s2603_s21  ;;  %23 = sbr.rel (!%p21_p5) target bundleno = 6 (0x6), region = 114 }
0x1036   : > { %s3154_s21 = smov %s3149_s27 }
0x103a   :  { %2005 = vsyncpa [#allocation3], 1 }
0x103b   :  { %2007 = vsyncpa [#allocation3 + $0x1], 1 }

// kernel: tpu_custom_call.1
= control target key start
LH: loop header
LB: loop body
LE: loop exit
PB: predicated region body
PF: predicated region fallthrough
CT: control target
= control target key end

     0   :  { %s3129_s0 = inlined_call_operand.vmem [shape: f32[2,16,32], index: 0, kind: input, shape index: {}]   ;;  %s3130_s1 = inlined_call_operand.vmem [shape: f32[2,16,32], index: 1, kind: input, shape index: {}]   ;;  %s3131_s2 = inlined_call_operand.vmem [shape: f32[2,1,16], index: 2, kind: input, shape index: {}]   ;;  %s3132_s3 = inlined_call_operand.vmem [shape: f32[8,32], index: 3, kind: input, shape index: {}]   ;;  %s3133_s4 = inlined_call_operand.vmem [shape: bf16[4,32,8], index: 4, kind: input, shape index: {}]   ;;  %s3134_s5 = inlined_call_operand.vmem [shape: bf16[4,32,16], index: 5, kind: input, shape index: {}]   ;;  %s3135_s6 = inlined_call_operand.vmem [shape: bf16[4,8,32], index: 6, kind: input, shape index: {}]   ;;  %s3136_s7 = inlined_call_operand.vmem [shape: bf16[32,64], index: 7, kind: input, shape index: {}]   ;;  %s3137_s8 = inlined_call_operand.vmem [shape: f32[1,64], index: 8, kind: input, shape index: {}]   ;;  %s3138_s9 = inlined_call_operand.vmem [shape: bf16[64,32], index: 9, kind: input, shape index: {}]   ;;  %s3139_s10 = inlined_call_operand.vmem [shape: f32[1,32], index: 10, kind: input, shape index: {}]   ;;  %s3140_s11 = inlined_call_operand.hbm [shape: f32[2,16,32], index: 11, kind: output, shape index: {}]  }
   0x1   :  { %3143 = sst [smem:[#allocation6_spill]] %s3129_s0 }
   0x2   :  { %16 = vsyncpa [#allocation3], 0 }
   0x3   :  { %18 = vsyncpa [#allocation3 + $0x1], 0  ;;  %s2677_s17 = smov 0   ;;  %s2679_s18 = smov 0  }
   0x4   :  { %s2681_s19 = smov 0   ;;  %s2683_s20 = smov 0  }
   0x5   :  { %s2685_s21 = smov 0   ;;  %s2687_s22 = smov 0  }
   0x6 LB: > { %s2084_s23 = sadd.s32 4294967295, %s2607_s22   ;;  %s2085_s24 = sadd.s32 4294967294, %s2607_s22   ;;  %s2607_s22 = sphi %s2687_s22, %s24_s22   ;;  %s2603_s21 = sphi %s2685_s21, %s3154_s21   ;;  %s2599_s20 = sphi %s2683_s20, %s3153_s20   ;;  %s2595_s19 = sphi %s2681_s19, %s3152_s19   ;;  %s2591_s18 = sphi %s2679_s18, %s3151_s18   ;;  %s2587_s17 = sphi %s2677_s17, %s3150_s17  }
   0x7   : > { %s36_s25 = sadd.s32 1, %s2603_s21  ;;  %s293_s26 = sadd.s32 1, %s2595_s19 }
   0x8   : > { %p38_p0 = scmp.ge.s32.totalorder %s36_s25, 2  ;;  %p303_p1 = scmp.ne.s32.totalorder %s2595_s19, %s2591_s18 }
   0x9   : > { %p304_p2 = scmp.eq.s32.totalorder %s2084_s23, 1  ;;  %p309_p3 = scmp.ne.s32.totalorder %s2591_s18, %s2587_s17 }
   0xa   : > { %s3156_s25 = smov (%p38_p0, %s36_s25), 0  ;;  %p310_p5 = scmp.eq.s32.totalorder %s2085_s24, 1 }
   0xb   : > { %3144 = sst [smem:[#allocation5_spill]] %s3156_s25  ;;  %p2717_p4 = por %p304_p2, %p303_p1 }
   0xc   : > { %s288_s28 = ssub.s32 %s2603_s21, %s3156_s25  ;;  %p2088_p6 = scmp.ge.s32.totalorder %s2607_s22, 1 }
   0xd   : > { %p291_p7 = scmp.eq.s32.totalorder %s288_s28, 0  ;;  %p2724_p8 = por %p310_p5, %p309_p3 }
   0xe   : > { %p379_p9 = scmp.lt.s32.totalorder %s2607_s22, 3 }
   0xf   : > { %s2730_s30 = scalar_select %p291_p7, %s2595_s19, %s293_s26  }
  0x10   : > { %p380_p10 = pnand %p2088_p6, %p379_p9 }
  0x11   : > { %v2450_v0 = vld [vmem:[%s3134_s5] sm:$0xff] (!%p380_p10)   ;;  %v463_v1 = vlaneseq (!%p380_p10)  ;;  %v2609_v2 = vmov (!%p380_p10), 0.0   ;;  %v2452_v4 = vld [vmem:[%s3134_s5 + $0x8] sm:$0xff] (!%p380_p10)   ;;  %vm2610_vm0 = vmmov (!%p380_p10), 0   ;;  %p431_p11 = scmp.lt.s32.totalorder (!%p380_p10), %s2599_s20, 1  ;;  %s3147_s0 = sld [smem:[#allocation6_spill]] (!%p380_p10) }
  0x12   : > { %383 = sbr.rel (%p380_p10) target bundleno = 4139 (0x102b), region = 64  ;;  %2240 = vmatprep.subr.bf16.mxu1 (!%p380_p10), %v2609_v2  ;;  %2232 = vmatprep.subr.bf16.mxu0 (!%p380_p10), %v2609_v2  ;;  %v2451_v3 = vld [vmem:[%s3133_s4] sm:$0xff] (!%p380_p10)   ;;  %v2453_v5 = vld [vmem:[%s3133_s4 + $0x8] sm:$0xff] (!%p380_p10)   ;;  %vm479_vm1 = vcmask (!%p380_p10), 261120   ;;  %s3142_s12 = smov (!%p380_p10), 8   ;;  %vm611_vm2 = vcmask (!%p380_p10), 64512  }
  0x13   : > { %2241 = vmatpush3.bf16.msra.mxu1 (!%p380_p10), %v2450_v0  ;;  %2244 = vmatprep.mubr.msk.bf16.mxu1 (!%p380_p10), %vm2610_vm0, %v2609_v2  ;;  %v2756_v6 = vshrl.u32 (!%p380_p10), %v463_v1, 7  ;;  %v451_v7 = vld [vmem:[%s3132_s3] sm:$0xff] (!%p380_p10)  ;;  %vm659_vm3 = vcmask (!%p380_p10), 130048   ;;  %s2612_s15 = smov (!%p380_p10), 120   ;;  %v2455_v50 = vld [vmem:[%s3133_s4 + $0x10] sm:$0xff] (!%p380_p10)   ;;  %v2457_v51 = vld [vmem:[%s3133_s4 + $0x18] sm:$0xff] (!%p380_p10)  }
  0x14   : > { %2233 = vmatpush3.bf16.msra.mxu0 (!%p380_p10), %v2451_v3  ;;  %2242 = vmatprep.subr.bf16.mxu1 (!%p380_p10), %v2609_v2  ;;  %v2454_v63 = vld [vmem:[%s3134_s5 + $0x10] sm:$0xff] (!%p380_p10)   ;;  %v2456_v1 = vld [vmem:[%s3134_s5 + $0x18] sm:$0xff] (!%p380_p10)   ;;  %vm1018_vm4 = vcmask (!%p380_p10), 1043456   ;;  %s2614_s26 = smov (!%p380_p10), 104   ;;  %vm1919_vm5 = vcmask (!%p380_p10), 523264   ;;  %s2615_s24 = smov (!%p380_p10), [#allocation2]  }
  0x15   : > { %2234 = vmatprep.subr.bf16.mxu0 (!%p380_p10), %v2609_v2  ;;  %2236 = vmatprep.mubr.msk.bf16.mxu0 (!%p380_p10), %vm2610_vm0, %v2609_v2  ;;  %v596_v8 = vsub.s32 (!%p380_p10), 6, %v2756_v6  ;;  %v465_v16 = vsub.s32 (!%p380_p10), 4, %v2756_v6  ;;  %v589_v17 = vsub.s32 (!%p380_p10), 5, %v2756_v6 }
  0x17   : > { %2243 = vmatpush3.bf16.msra.mxu1 (!%p380_p10), %v2452_v4  ;;  %v2772_v12 = vrot.slane (!%p380_p10), %v451_v7, %v596_v8  ;;  %v2795_v18 = vrot.slane (!%p380_p10), %v451_v7, %v465_v16  ;;  %v2797_v19 = vrot.slane (!%p380_p10), %v451_v7, %v589_v17 }
  0x18   : > { %2235 = vmatpush3.bf16.msra.mxu0 (!%p380_p10), %v2453_v5  ;;  %2254 = vmatprep.subr.bf16.mxu1 (!%p380_p10), %v2609_v2 }
  0x19   : > { %s2752_s28 = scalar_select %p431_p11, %s2599_s20, 1  ;;  %2248 = vmatprep.subr.bf16.mxu0 %v2609_v2  ;;  %599 = vrot.lane.b32.xlu0 %v2772_v12, %s3142_s12 }
  0x1a   : > { %s2533_s12 = sshll.u32 %s2615_s24, 4  ;;  %s2534_s12 = int_to_ptr.vmem [resolvable:$false] %s2533_s12 }
  0x1b   : > { %s2173_s14 = sshll.u32 %s2752_s28, 4 }
  0x1c   : > { %s435_s23 = scalar_lea.vmem %s3147_s0, %s2173_s14  ;;  %s444_s25 = scalar_lea.vmem %s3130_s1, %s2173_s14 }
  0x1d   : > { %v452_v9 = vld [vmem:[%s435_s23] sm:$0xff]  ;;  %v453_v10 = vld [vmem:[%s435_s23 + $0x8] sm:$0xff]  ;;  %s448_s14 = scalar_lea.vmem %s3131_s2, %s2752_s28  ;;  %s2613_s28 = smov 112  }
  0x1e   : > { %v2770_v11 = vld [vmem:[%s444_s25] sm:$0xff]  ;;  %v2775_v13 = vpack.c.bf16 %v453_v10, %v452_v9  ;;  %v2777_v14 = vld [vmem:[%s444_s25 + $0x8] sm:$0xff]  ;;  %s2175_s25 = sshll.u32 %s2599_s20, 8  ;;  %s2535_s0 = scalar_lea.vmem %s2534_s12, 512 }
  0x1f   : > { %v2781_v15 = vpack.c.bf16 %v2777_v14, %v2770_v11  ;;  %v2812_v41 = vld [vmem:[%s448_s14] ss:$0 sm:$0xff] }
  0x20   : > { %2245 = vmatmul.mubr.msk.bf16.vlgmr.msra.gmra.mrb[0].mxu1 %vm479_vm1, %v2775_v13 }
  0x21   : > { %2237 = vmatmul.mubr.msk.bf16.vlgmr.msra.gmra.mrb[0].mxu0 %vm479_vm1, %v2781_v15  ;;  %2256 = vmatprep.mubr.msk.bf16.mxu1 %vm2610_vm0, %v2609_v2 }
  0x22   : > { %2250 = vmatprep.mubr.msk.bf16.mxu0 %vm2610_vm0, %v2609_v2 }
  0x8b   : > { %v600_v20 = vpop.permute.xlu0 %599 }
  0xf3   : > { %v580_v21 = vpop.f32.mrb[0].mxu1 }
  0xf4   : > { %v2246_v22 = vpop.f32.mrb[1].mxu1  ;;  %v517_v23 = vpop.f32.mrb[0].mxu0  ;;  %v591_v27 = vadd.f32 %v2797_v19, %v580_v21  ;;  %v602_v28 = vadd.f32 %v600_v20, %v580_v21 }
  0xf5   : > { %v583_v24 = vpop.f32.mrb[2].mxu1  ;;  %v518_v25 = vadd.f32 %v517_v23, %v2795_v18  ;;  %v2238_v26 = vpop.f32.mrb[1].mxu0 }
  0xf6   : > { %v592_v29 = vadd.f32 %v2797_v19, %v583_v24  ;;  %v603_v30 = vadd.f32 %v600_v20, %v583_v24  ;;  %v2247_v31 = vpop.f32.mrb[3].mxu1  ;;  %v520_v32 = vpop.f32.mrb[2].mxu0 }
  0xf7   : > { %v524_v33 = vmul.f32 0.35355338, %v518_v25  ;;  %v521_v34 = vadd.f32 %v520_v32, %v2795_v18  ;;  %v2239_v35 = vpop.f32.mrb[3].mxu0 }
  0xf8   : > { %v593_v36 = vpack.c.bf16 %v592_v29, %v591_v27  ;;  %v604_v37 = vpack.c.bf16 %v603_v30, %v602_v28 }
  0xf9   : > { %v525_v38 = vmul.f32 0.35355338, %v521_v34 }
  0xfa   : > { %v616_v39 = vsel %vm611_vm2, %v593_v36, 0 }
  0xfb   : > { %v526_v40 = vpack.c.bf16 %v525_v38, %v524_v33  ;;  %2249 = vmatpush3.bf16.xpose.msra.mxu0 %v616_v39 }
  0xfc   : > { %2260 = vmatprep.subr.bf16.mxu0 %v2609_v2 }
 0x102   : > { %2251 = vmatmul.mubr.msk.bf16.vlgmr.msra.gmra.mrb[4].mxu0 %vm611_vm2, %v526_v40 }
 0x103   : > { %2264 = vmatprep.mubr.msk.bf16.mxu0 %vm2610_vm0, %v2609_v2  ;;  %2261 = vmatpush3.bf16.msra.mxu0 %v2455_v50 }
 0x104   : > { %2262 = vmatprep.subr.bf16.mxu0 %v2609_v2 }
 0x107   : > { %2263 = vmatpush3.bf16.msra.mxu0 %v2457_v51 }
 0x108   : > { %2276 = vmatprep.subr.bf16.mxu0 %v2609_v2 }
 0x10a   : > { %2265 = vmatmul.mubr.msk.bf16.vlgmr.msra.gmra.mrb[8].mxu0 %vm479_vm1, %v2781_v15 }
 0x10b   : > { %2278 = vmatprep.mubr.msk.bf16.mxu0 %vm2610_vm0, %v2609_v2 }
 0x1d5   : > { %v652_v42 = vpop.f32.mrb[4].mxu0 }
 0x1d6   : > { %v653_v43 = vadd.f32 %v2812_v41, %v652_v42  ;;  %v2252_v44 = vpop.f32.mrb[5].mxu0 }
 0x1d7   : > { %v655_v45 = vpop.f32.mrb[6].mxu0 }
 0x1d8   : > { %v656_v46 = vadd.f32 %v2812_v41, %v655_v45  ;;  %v2253_v47 = vpop.f32.mrb[7].mxu0  ;;  %v660_v48 = vsel %vm659_vm3, %v653_v43, -inf }
 0x1d9   : > { %661 = vmax.xlane.f32.xlu0 %v660_v48 }
 0x1da   : > { %v663_v49 = vsel %vm659_vm3, %v656_v46, -inf }
 0x1db   : > { %664 = vmax.xlane.f32.xlu1 %v663_v49 }
 0x1dd   : > { %v802_v4 = vpop.f32.mrb[8].mxu0 }
 0x1de   : > { %v2266_v5 = vpop.f32.mrb[9].mxu0 }
 0x1df   : > { %v805_v7 = vpop.f32.mrb[10].mxu0 }
 0x1e0   : > { %v2267_v16 = vpop.f32.mrb[11].mxu0 }
 0x1ec   : > { %692 = vrot.lane.b32.xlu1 %v604_v37, %s2612_s15 }
 0x1f0   : > { %871 = vrot.lane.b32.xlu1 %v2797_v19, %s2612_s15 }
 0x1f4   : > { %765 = vrot.lane.b32.xlu1 %v2795_v18, %s2612_s15 }
 0x266   : > { %v662_v52 = vpop.xlane.xlu0 %661 }
 0x267   : > { %v666_v53 = vmax.f32 %v662_v52, -1e+30 }
 0x268   : > { %v665_v54 = vpop.xlane.xlu1 %664 }
 0x269   : > { %v674_v55 = vsub.f32 %v653_v43, %v666_v53  ;;  %v667_v56 = vmax.f32 %v665_v54, -1e+30  ;;  %v668_v22 = vsub.f32 -1e+30, %v666_v53 }
 0x26b   : > { %v676_v57 = vmul.f32 1.442695, %v674_v55  ;;  %v675_v58 = vsub.f32 %v656_v46, %v667_v56  ;;  %v669_v23 = vsub.f32 -1e+30, %v667_v56  ;;  %v670_v24 = vmul.f32 1.442695, %v668_v22 }
 0x26c   : > { %v693_v59 = vpop.permute.xlu1 %692 }
 0x26d   : > { %v678_v60 = vmul.f32 1.442695, %v675_v58  ;;  %2255 = vmatpush3.bf16.msra.mxu1 %v693_v59  ;;  %2472 = vpow2.f32 %v676_v57  ;;  %v672_v25 = vmul.f32 1.442695, %v669_v23 }
 0x26e   : > { %2268 = vmatprep.subr.bf16.mxu1 %v2609_v2 }
 0x26f   : > { %2474 = vpow2.f32 %v678_v60 }
 0x270   : > { %v872_v3 = vpop.permute.xlu1 %871  ;;  %2476 = vpow2.f32 %v670_v24 }
 0x271   : > { %2478 = vpow2.f32 %v672_v25 }
 0x274   : > { %v766_v8 = vpop.permute.xlu1 %765 }
 0x275   : > { %v803_v9 = vadd.f32 %v802_v4, %v766_v8  ;;  %v806_v10 = vadd.f32 %v805_v7, %v766_v8 }
 0x277   : > { %v2836_v61 = vpop.eup %2472  ;;  %v809_v17 = vmul.f32 0.35355338, %v803_v9  ;;  %v810_v20 = vmul.f32 0.35355338, %v806_v10 }
 0x278   : > { %v682_v57 = vsel %vm659_vm3, %v2836_v61, 0.0 }
 0x279   : > { %v2838_v62 = vpop.eup %2474  ;;  %v811_v21 = vpack.c.bf16 %v810_v20, %v809_v17 }
 0x27a   : > { %v690_v0 = vpack.c.bf16 %v2838_v62, %v2836_v61  ;;  %v2477_v26 = vpop.eup %2476  ;;  %v685_v56 = vsel %vm659_vm3, %v2838_v62, 0.0  ;;  %v746_v61 = vld [vmem:[%s3135_s6] sm:$0xf] }
 0x27b   : > { %v2479_v27 = vpop.eup %2478  ;;  %v2857_v28 = vmul.f32 0.0, %v2477_v26  ;;  %v1067_v20 = vsel %vm1018_vm4, %v746_v61, 0 }
 0x27c   : > { %2257 = vmatmul.mubr.msk.bf16.vlgmr.msra.gmra.mrb[4].mxu1 %vm659_vm3, %v690_v0  ;;  %v681_v32 = vmul.f32 0.0, %v2479_v27 }
 0x27d   : > { %2269 = vmatpush3.bf16.msra.mxu1 %v2454_v63  ;;  %2272 = vmatprep.mubr.msk.bf16.mxu1 %vm2610_vm0, %v2609_v2 }
 0x27e   : > { %2270 = vmatprep.subr.bf16.mxu1 %v2609_v2 }
 0x281   : > { %2271 = vmatpush3.bf16.msra.mxu1 %v2456_v1 }
 0x282   : > { %2282 = vmatprep.subr.bf16.mxu1 %v2609_v2 }
 0x284   : > { %2273 = vmatmul.mubr.msk.bf16.vlgmr.msra.gmra.mrb[8].mxu1 %vm479_vm1, %v2775_v13 }
 0x285   : > { %2284 = vmatprep.mubr.msk.bf16.mxu1 %vm2610_vm0, %v2609_v2 }
 0x34f   : > { %v732_v29 = vpop.f32.mrb[4].mxu1 }
 0x350   : > { %v2860_v30 = vadd.f32 %v732_v29, %v2857_v28  ;;  %v2258_v31 = vpop.f32.mrb[5].mxu1  ;;  %v2458_v29 = vld [vmem:[%s3134_s5 + $0x20] sm:$0xff]  }
 0x351   : > { %v735_v33 = vpop.f32.mrb[6].mxu1 }
 0x352   : > { %v740_v34 = vadd.f32 %v735_v33, %v681_v32  ;;  %v2259_v35 = vpop.f32.mrb[7].mxu1 }
 0x357   : > { %v863_v36 = vpop.f32.mrb[8].mxu1 }
 0x358   : > { %v2274_v37 = vpop.f32.mrb[9].mxu1  ;;  %v874_v39 = vadd.f32 %v872_v3, %v863_v36  ;;  %v877_v40 = vadd.f32 %v863_v36, %v2772_v12 }
 0x359   : > { %v866_v38 = vpop.f32.mrb[10].mxu1 }
 0x35a   : > { %v875_v42 = vadd.f32 %v872_v3, %v866_v38  ;;  %v878_v43 = vadd.f32 %v866_v38, %v2772_v12  ;;  %v2275_v44 = vpop.f32.mrb[11].mxu1 }
 0x35c   : > { %v876_v45 = vpack.c.bf16 %v875_v42, %v874_v39  ;;  %v879_v46 = vpack.c.bf16 %v878_v43, %v877_v40 }
 0x35e   : > { %v884_v47 = vsel %vm611_vm2, %v876_v45, 0 }
 0x35f   : > { %2277 = vmatpush3.bf16.xpose.msra.mxu0 %v884_v47 }
 0x360   : > { %2288 = vmatprep.subr.bf16.mxu0 %v2609_v2 }
 0x366   : > { %2279 = vmatmul.mubr.msk.bf16.vlgmr.msra.gmra.mrb[12].mxu0 %vm611_vm2, %v811_v21 }
 0x367   : > { %2290 = vmatprep.mubr.msk.bf16.mxu0 %vm2610_vm0, %v2609_v2 }
 0x439   : > { %v920_v48 = vpop.f32.mrb[12].mxu0 }
 0x43a   : > { %v921_v49 = vadd.f32 %v2812_v41, %v920_v48  ;;  %v2280_v50 = vpop.f32.mrb[13].mxu0 }
 0x43b   : > { %v923_v51 = vpop.f32.mrb[14].mxu0 }
 0x43c   : > { %v924_v52 = vadd.f32 %v2812_v41, %v923_v51  ;;  %v2281_v53 = vpop.f32.mrb[15].mxu0  ;;  %v927_v54 = vsel %vm659_vm3, %v921_v49, -inf }
 0x43d   : > { %928 = vmax.xlane.f32.xlu1 %v927_v54 }
 0x43e   : > { %v930_v55 = vsel %vm659_vm3, %v924_v52, -inf }
 0x43f   : > { %931 = vmax.xlane.f32.xlu0 %v930_v55  ;;  %v2460_v55 = vld [vmem:[%s3133_s4 + $0x20] sm:$0xff]  }
 0x441   : > { %686 = vadd.xlane.f32.xlu1 %v685_v56 }
 0x455   : > { %959 = vrot.lane.b32.xlu0 %v879_v46, %s2612_s15 }
 0x474   : > { %683 = vadd.xlane.f32.xlu0 %v682_v57  ;;  %v2461_v57 = vld [vmem:[%s3133_s4 + $0x28] sm:$0xff]  }
 0x48a   : > { %1127 = vrot.lane.b32.xlu0 %v2795_v18, %s2613_s28 }
 0x4ca   : > { %v929_v58 = vpop.xlane.xlu1 %928 }
 0x4cb   : > { %v933_v59 = vmax.f32 %v929_v58, -1e+30 }
 0x4cc   : > { %v932_v60 = vpop.xlane.xlu0 %931 }
 0x4cd   : > { %v941_v63 = vsub.f32 %v921_v49, %v933_v59  ;;  %v934_v0 = vmax.f32 %v932_v60, -1e+30 }
 0x4ce   : > { %v687_v1 = vpop.xlane.xlu1 %686 }
 0x4cf   : > { %v943_v3 = vmul.f32 1.442695, %v941_v63  ;;  %v942_v4 = vsub.f32 %v924_v52, %v934_v0  ;;  %v689_v8 = vadd.f32 %v687_v1, %v681_v32  ;;  %v935_v32 = vsub.f32 -1e+30, %v933_v59 }
 0x4d0   : > { %v960_v5 = vpop.permute.xlu0 %959  ;;  %v936_v33 = vsub.f32 -1e+30, %v934_v0 }
 0x4d1   : > { %v945_v7 = vmul.f32 1.442695, %v942_v4  ;;  %2283 = vmatpush3.bf16.msra.mxu1 %v960_v5  ;;  %2480 = vpow2.f32 %v943_v3 }
 0x4d2   : > { %2294 = vmatprep.subr.bf16.mxu1 %v2609_v2  ;;  %v939_v35 = vmul.f32 1.442695, %v936_v33 }
 0x4d3   : > { %2482 = vpow2.f32 %v945_v7 }
 0x4d4   : > { %2484 = vrcp.f32 %v689_v8 }
 0x4db   : > { %v2481_v62 = vpop.eup %2480 }
 0x4dc   : > { %v949_v9 = vsel %vm659_vm3, %v2481_v62, 0.0 }
 0x4dd   : > { %v2483_v10 = vpop.eup %2482  ;;  %950 = vadd.xlane.f32.xlu1 %v949_v9 }
 0x4de   : > { %v2485_v16 = vpop.eup %2484  ;;  %v957_v17 = vpack.c.bf16 %v2483_v10, %v2481_v62  ;;  %v952_v22 = vsel %vm659_vm3, %v2483_v10, 0.0 }
 0x4df   : > { %v744_v21 = vmul.f32 %v2485_v16, %v740_v34  ;;  %v937_v34 = vmul.f32 1.442695, %v935_v32 }
 0x4e0   : > { %2285 = vmatmul.mubr.msk.bf16.vlgmr.msra.gmra.mrb[12].mxu1 %vm659_vm3, %v957_v17 }
 0x4e1   : > { %953 = vadd.xlane.f32.xlu1 %v952_v22  ;;  %2295 = vmatpush3.bf16.msra.mxu1 %v1067_v20 }
 0x4e2   : > { %2296 = vmatprep.mubr.msk.bf16.mxu1 %vm2610_vm0, %v2609_v2  ;;  %2308 = vmatprep.subr.bf16.mxu1 %v2609_v2 }
 0x4f2   : > { %1232 = vrot.lane.b32.xlu1 %v2797_v19, %s2613_s28 }
 0x4f6   : > { %1238 = vrot.lane.b32.xlu1 %v2772_v12, %s2612_s15 }
 0x501   : > { %v684_v23 = vpop.xlane.xlu0 %683 }
 0x502   : > { %v688_v24 = vadd.f32 %v684_v23, %v2857_v28  ;;  %v2459_v28 = vld [vmem:[%s3134_s5 + $0x28] sm:$0xff]  }
 0x504   : > { %2486 = vrcp.f32 %v688_v24 }
 0x505   : > { %2488 = vpow2.f32 %v937_v34 }
 0x506   : > { %2490 = vpow2.f32 %v939_v35 }
 0x50e   : > { %v2487_v25 = vpop.eup %2486 }
 0x50f   : > { %v743_v26 = vmul.f32 %v2487_v25, %v2860_v30  ;;  %v2119_v30 = vld [vmem:[%s3135_s6 + $0x4] sm:$0xf]  ;;  %v2489_v37 = vpop.eup %2488 }
 0x510   : > { %v1020_v31 = vsel %vm1018_vm4, %v2119_v30, 0  ;;  %v2491_v38 = vpop.eup %2490  ;;  %v947_v39 = vmul.f32 0.0, %v2489_v37 }
 0x511   : > { %v745_v27 = vpack.c.bf16 %v744_v21, %v743_v26  ;;  %2289 = vmatpush3.bf16.msra.mxu0 %v1020_v31  ;;  %v948_v43 = vmul.f32 0.0, %v2491_v38  ;;  %v1128_v26 = vpop.permute.xlu0 %1127 }
 0x512   : > { %2300 = vmatprep.subr.bf16.mxu0 %v2609_v2 }
 0x513   : > { %2297 = vmatmul.mubr.msk.bf16.vlgmr.msra.gmra.mrb[16].mxu1 %vm611_vm2, %v745_v27 }
 0x514   : > { %2312 = vmatprep.mubr.msk.bf16.mxu1 %vm2610_vm0, %v2609_v2  ;;  %2309 = vmatpush3.bf16.msra.mxu1 %v2458_v29 }
 0x515   : > { %2310 = vmatprep.subr.bf16.mxu1 %v2609_v2 }
 0x518   : > { %2311 = vmatpush3.bf16.msra.mxu1 %v2459_v28 }
 0x519   : > { %2322 = vmatprep.subr.bf16.mxu1 %v2609_v2 }
 0x51b   : > { %2313 = vmatmul.mubr.msk.bf16.vlgmr.msra.gmra.mrb[20].mxu1 %vm479_vm1, %v2775_v13 }
 0x51c   : > { %2324 = vmatprep.mubr.msk.bf16.mxu1 %vm2610_vm0, %v2609_v2 }
 0x56a   : > { %v951_v36 = vpop.xlane.xlu1 %950 }
 0x56b   : > { %v955_v42 = vadd.f32 %v951_v36, %v947_v39 }
 0x56d   : > { %2492 = vrcp.f32 %v955_v42 }
 0x56e   : > { %v954_v40 = vpop.xlane.xlu1 %953 }
 0x56f   : > { %v956_v44 = vadd.f32 %v954_v40, %v948_v43 }
 0x571   : > { %2494 = vrcp.f32 %v956_v44 }
 0x572   : > { %v1233_v0 = vpop.permute.xlu1 %1232 }
 0x576   : > { %v1239_v1 = vpop.permute.xlu1 %1238 }
 0x577   : > { %v2493_v48 = vpop.eup %2492 }
 0x57b   : > { %v2495_v53 = vpop.eup %2494 }
 0x5b3   : > { %v999_v45 = vpop.f32.mrb[12].mxu1 }
 0x5b4   : > { %v1006_v46 = vadd.f32 %v999_v45, %v947_v39  ;;  %v2286_v47 = vpop.f32.mrb[13].mxu1 }
 0x5b5   : > { %v1002_v49 = vpop.f32.mrb[14].mxu1 }
 0x5b6   : > { %v1010_v50 = vmul.f32 %v2493_v48, %v1006_v46  ;;  %v1007_v51 = vadd.f32 %v1002_v49, %v948_v43  ;;  %v2287_v52 = vpop.f32.mrb[15].mxu1 }
 0x5b8   : > { %v1011_v54 = vmul.f32 %v2495_v53, %v1007_v51 }
 0x5ba   : > { %v1012_v56 = vpack.c.bf16 %v1011_v54, %v1010_v50 }
 0x5bc   : > { %2291 = vmatmul.mubr.msk.bf16.vlgmr.msra.gmra.mrb[16].mxu0 %vm611_vm2, %v1012_v56 }
 0x5bd   : > { %2301 = vmatpush3.bf16.msra.mxu0 %v2460_v55  ;;  %2304 = vmatprep.mubr.msk.bf16.mxu0 %vm2610_vm0, %v2609_v2 }
 0x5be   : > { %2302 = vmatprep.subr.bf16.mxu0 %v2609_v2 }
 0x5c1   : > { %2303 = vmatpush3.bf16.msra.mxu0 %v2461_v57 }
 0x5c2   : > { %2316 = vmatprep.subr.bf16.mxu0 %v2609_v2 }
 0x5c4   : > { %2305 = vmatmul.mubr.msk.bf16.vlgmr.msra.gmra.mrb[20].mxu0 %vm479_vm1, %v2781_v15 }
 0x5c5   : > { %2318 = vmatprep.mubr.msk.bf16.mxu0 %vm2610_vm0, %v2609_v2 }
 0x5e6   : > { %v1103_v58 = vpop.f32.mrb[16].mxu1 }
 0x5e7   : > { %v2298_v59 = vpop.f32.mrb[17].mxu1 }
 0x5e8   : > { %v1106_v60 = vpop.f32.mrb[18].mxu1  ;;  %v2138_v59 = vld [vmem:[%s3135_s6 + $0x8] sm:$0xf] }
 0x5e9   : > { %v2299_v63 = vpop.f32.mrb[19].mxu1 }
 0x5ea   : > { %v2463_v63 = vld [vmem:[%s3133_s4 + $0x30] sm:$0xff]  }
 0x5ee   : > { %v1225_v3 = vpop.f32.mrb[20].mxu1 }
 0x5ef   : > { %v1235_v4 = vadd.f32 %v1233_v0, %v1225_v3  ;;  %v2314_v5 = vpop.f32.mrb[21].mxu1  ;;  %v1241_v7 = vadd.f32 %v1239_v1, %v1225_v3 }
 0x5f0   : > { %v1228_v8 = vpop.f32.mrb[22].mxu1 }
 0x5f1   : > { %v1236_v62 = vadd.f32 %v1233_v0, %v1228_v8  ;;  %v1242_v61 = vadd.f32 %v1239_v1, %v1228_v8  ;;  %v2315_v9 = vpop.f32.mrb[23].mxu1  ;;  %v2465_v0 = vld [vmem:[%s3133_s4 + $0x38] sm:$0xff]  }
 0x5f3   : > { %v1237_v10 = vpack.c.bf16 %v1236_v62, %v1235_v4  ;;  %v1243_v16 = vpack.c.bf16 %v1242_v61, %v1241_v7 }
 0x5f5   : > { %v1248_v17 = vsel %vm611_vm2, %v1237_v10, 0 }
 0x5f6   : > { %2317 = vmatpush3.bf16.xpose.msra.mxu0 %v1248_v17 }
 0x5f7   : > { %2328 = vmatprep.subr.bf16.mxu0 %v2609_v2 }
 0x68f   : > { %v1056_v20 = vpop.f32.mrb[16].mxu0 }
 0x690   : > { %v2934_v21 = vadd.f32 %v1103_v58, %v1056_v20  ;;  %v2292_v22 = vpop.f32.mrb[17].mxu0 }
 0x691   : > { %v1059_v23 = vpop.f32.mrb[18].mxu0 }
 0x692   : > { %v2936_v24 = vadd.f32 %v1106_v60, %v1059_v23  ;;  %v2293_v25 = vpop.f32.mrb[19].mxu0  ;;  %v1383_v60 = vsel %vm1018_vm4, %v2138_v59, 0 }
 0x697   : > { %v1164_v27 = vpop.f32.mrb[20].mxu0 }
 0x698   : > { %v1165_v29 = vadd.f32 %v1164_v27, %v1128_v26  ;;  %v2306_v28 = vpop.f32.mrb[21].mxu0 }
 0x699   : > { %v1167_v30 = vpop.f32.mrb[22].mxu0 }
 0x69a   : > { %v1168_v31 = vadd.f32 %v1167_v30, %v1128_v26  ;;  %v2307_v32 = vpop.f32.mrb[23].mxu0  ;;  %v1171_v33 = vmul.f32 0.35355338, %v1165_v29  ;;  %v2462_v29 = vld [vmem:[%s3134_s5 + $0x30] sm:$0xff]   ;;  %v2464_v30 = vld [vmem:[%s3134_s5 + $0x38] sm:$0xff]  }
 0x69c   : > { %v1172_v34 = vmul.f32 0.35355338, %v1168_v31 }
 0x69e   : > { %v1173_v35 = vpack.c.bf16 %v1172_v34, %v1171_v33 }
 0x6a0   : > { %2319 = vmatmul.mubr.msk.bf16.vlgmr.msra.gmra.mrb[24].mxu0 %vm611_vm2, %v1173_v35 }
 0x6a1   : > { %2330 = vmatprep.mubr.msk.bf16.mxu0 %vm2610_vm0, %v2609_v2  ;;  %2329 = vmatpush3.bf16.msra.mxu0 %v1383_v60 }
 0x6a2   : > { %2342 = vmatprep.subr.bf16.mxu0 %v2609_v2 }
 0x773   : > { %v1284_v36 = vpop.f32.mrb[24].mxu0 }
 0x774   : > { %v1285_v37 = vadd.f32 %v2812_v41, %v1284_v36  ;;  %v2320_v38 = vpop.f32.mrb[25].mxu0 }
 0x775   : > { %v1287_v39 = vpop.f32.mrb[26].mxu0 }
 0x776   : > { %v1288_v40 = vadd.f32 %v2812_v41, %v1287_v39  ;;  %v2321_v42 = vpop.f32.mrb[27].mxu0  ;;  %v1291_v43 = vsel %vm659_vm3, %v1285_v37, -inf }
 0x777   : > { %1292 = vmax.xlane.f32.xlu1 %v1291_v43 }
 0x778   : > { %v1294_v44 = vsel %vm659_vm3, %v1288_v40, -inf }
 0x779   : > { %1295 = vmax.xlane.f32.xlu0 %v1294_v44 }
 0x788   : > { %1323 = vrot.lane.b32.xlu1 %v1243_v16, %s2612_s15 }
 0x78c   : > { %1550 = vrot.lane.b32.xlu1 %v2797_v19, %s2614_s26 }
 0x790   : > { %1556 = vrot.lane.b32.xlu1 %v2772_v12, %s2613_s28 }
 0x804   : > { %v1293_v45 = vpop.xlane.xlu1 %1292 }
 0x805   : > { %v1297_v46 = vmax.f32 %v1293_v45, -1e+30 }
 0x806   : > { %v1296_v47 = vpop.xlane.xlu0 %1295 }
 0x807   : > { %v1305_v48 = vsub.f32 %v1285_v37, %v1297_v46  ;;  %v1298_v49 = vmax.f32 %v1296_v47, -1e+30  ;;  %v1299_v1 = vsub.f32 -1e+30, %v1297_v46 }
 0x808   : > { %v1324_v50 = vpop.permute.xlu1 %1323 }
 0x809   : > { %v1307_v51 = vmul.f32 1.442695, %v1305_v48  ;;  %v1306_v52 = vsub.f32 %v1288_v40, %v1298_v49  ;;  %2323 = vmatpush3.bf16.msra.mxu1 %v1324_v50  ;;  %v1300_v3 = vsub.f32 -1e+30, %v1298_v49  ;;  %v1301_v4 = vmul.f32 1.442695, %v1299_v1 }
 0x80a   : > { %2334 = vmatprep.subr.bf16.mxu1 %v2609_v2 }
 0x80b   : > { %v1309_v53 = vmul.f32 1.442695, %v1306_v52  ;;  %2496 = vpow2.f32 %v1307_v51  ;;  %v1303_v5 = vmul.f32 1.442695, %v1300_v3 }
 0x80d   : > { %2498 = vpow2.f32 %v1309_v53 }
 0x80e   : > { %2500 = vpow2.f32 %v1301_v4 }
 0x80f   : > { %2502 = vpow2.f32 %v1303_v5 }
 0x815   : > { %v2497_v54 = vpop.eup %2496 }
 0x816   : > { %v1313_v55 = vsel %vm659_vm3, %v2497_v54, 0.0 }
 0x817   : > { %v2499_v56 = vpop.eup %2498  ;;  %1314 = vadd.xlane.f32.xlu0 %v1313_v55 }
 0x818   : > { %v1321_v57 = vpack.c.bf16 %v2499_v56, %v2497_v54  ;;  %v1316_v58 = vsel %vm659_vm3, %v2499_v56, 0.0 }
 0x81a   : > { %2325 = vmatmul.mubr.msk.bf16.vlgmr.msra.gmra.mrb[24].mxu1 %vm659_vm3, %v1321_v57 }
 0x81b   : > { %1317 = vadd.xlane.f32.xlu0 %v1316_v58  ;;  %2338 = vmatprep.mubr.msk.bf16.mxu1 %vm2610_vm0, %v2609_v2 }
 0x81c   : > { %2335 = vmatpush3.bf16.msra.mxu1 %v2463_v63 }
 0x81d   : > { %2336 = vmatprep.subr.bf16.mxu1 %v2609_v2 }
 0x820   : > { %2337 = vmatpush3.bf16.msra.mxu1 %v2465_v0 }
 0x821   : > { %2350 = vmatprep.subr.bf16.mxu1 %v2609_v2 }
 0x823   : > { %2339 = vmatmul.mubr.msk.bf16.vlgmr.msra.gmra.mrb[28].mxu1 %vm479_vm1, %v2781_v15 }
 0x824   : > { %2352 = vmatprep.mubr.msk.bf16.mxu1 %vm2610_vm0, %v2609_v2 }
 0x831   : > { %1445 = vrot.lane.b32.xlu0 %v2795_v18, %s2614_s26  ;;  %v2501_v18 = vpop.eup %2500 }
 0x832   : > { %v2503_v7 = vpop.eup %2502  ;;  %v1311_v8 = vmul.f32 0.0, %v2501_v18 }
 0x833   : > { %v1312_v9 = vmul.f32 0.0, %v2503_v7 }
 0x8a4   : > { %v1315_v19 = vpop.xlane.xlu0 %1314 }
 0x8a5   : > { %v1319_v61 = vadd.f32 %v1315_v19, %v1311_v8 }
 0x8a7   : > { %2504 = vrcp.f32 %v1319_v61 }
 0x8a8   : > { %v1318_v62 = vpop.xlane.xlu0 %1317 }
 0x8a9   : > { %v1320_v15 = vadd.f32 %v1318_v62, %v1312_v9 }
 0x8ab   : > { %2506 = vrcp.f32 %v1320_v15 }
 0x8ac   : > { %v1446_v32 = vpop.permute.xlu0 %1445 }
 0x8b1   : > { %v2505_v17 = vpop.eup %2504 }
 0x8b5   : > { %v2507_v26 = vpop.eup %2506 }
 0x8ed   : > { %v1363_v12 = vpop.f32.mrb[24].mxu1 }
 0x8ee   : > { %v1370_v10 = vadd.f32 %v1363_v12, %v1311_v8  ;;  %v2326_v16 = vpop.f32.mrb[25].mxu1 }
 0x8ef   : > { %v1366_v20 = vpop.f32.mrb[26].mxu1 }
 0x8f0   : > { %v1374_v22 = vmul.f32 %v2505_v17, %v1370_v10  ;;  %v1371_v23 = vadd.f32 %v1366_v20, %v1312_v9  ;;  %v2327_v25 = vpop.f32.mrb[27].mxu1  ;;  %v2156_v20 = vld [vmem:[%s3135_s6 + $0xc] sm:$0xf] }
 0x8f2   : > { %v1375_v27 = vmul.f32 %v2507_v26, %v1371_v23 }
 0x8f4   : > { %v1376_v28 = vpack.c.bf16 %v1375_v27, %v1374_v22  ;;  %v1701_v22 = vsel %vm1018_vm4, %v2156_v20, 0  ;;  %v1789_v20 = vsub.s32 3, %v2756_v6 }
 0x8f6   : > { %2331 = vmatmul.mubr.msk.bf16.vlgmr.msra.gmra.mrb[28].mxu0 %vm611_vm2, %v1376_v28  ;;  %v1482_v31 = vpop.f32.mrb[28].mxu1 }
 0x8f7   : > { %2343 = vmatpush3.bf16.msra.mxu0 %v2462_v29  ;;  %2346 = vmatprep.mubr.msk.bf16.mxu0 %vm2610_vm0, %v2609_v2  ;;  %v2340_v33 = vpop.f32.mrb[29].mxu1  ;;  %v1483_v34 = vadd.f32 %v1482_v31, %v1446_v32 }
 0x8f8   : > { %2344 = vmatprep.subr.bf16.mxu0 %v2609_v2  ;;  %v1485_v35 = vpop.f32.mrb[30].mxu1 }
 0x8f9   : > { %v1486_v36 = vadd.f32 %v1485_v35, %v1446_v32  ;;  %v1489_v37 = vmul.f32 0.35355338, %v1483_v34  ;;  %v2341_v38 = vpop.f32.mrb[31].mxu1 }
 0x8fb   : > { %2345 = vmatpush3.bf16.msra.mxu0 %v2464_v30  ;;  %v1490_v39 = vmul.f32 0.35355338, %v1486_v36 }
 0x8fc   : > { %2356 = vmatprep.subr.bf16.mxu0 %v2609_v2 }
 0x8fd   : > { %v1491_v40 = vpack.c.bf16 %v1490_v39, %v1489_v37 }
 0x8fe   : > { %2347 = vmatmul.mubr.msk.bf16.vlgmr.msra.gmra.mrb[32].mxu0 %vm479_vm1, %v2775_v13  ;;  %v1551_v13 = vpop.permute.xlu1 %1550 }
 0x8ff   : > { %2358 = vmatprep.mubr.msk.bf16.mxu0 %vm2610_vm0, %v2609_v2 }
 0x902   : > { %v1557_v48 = vpop.permute.xlu1 %1556 }
 0x9c9   : > { %v1419_v42 = vpop.f32.mrb[28].mxu0 }
 0x9ca   : > { %v2989_v43 = vadd.f32 %v1419_v42, %v2934_v21  ;;  %v2332_v44 = vpop.f32.mrb[29].mxu0 }
 0x9cb   : > { %v1422_v45 = vpop.f32.mrb[30].mxu0 }
 0x9cc   : > { %v2992_v46 = vadd.f32 %v1422_v45, %v2936_v24  ;;  %v2333_v47 = vpop.f32.mrb[31].mxu0 }
 0x9d1   : > { %v1543_v49 = vpop.f32.mrb[32].mxu0 }
 0x9d2   : > { %v2348_v50 = vpop.f32.mrb[33].mxu0  ;;  %v1553_v52 = vadd.f32 %v1551_v13, %v1543_v49  ;;  %v1559_v53 = vadd.f32 %v1557_v48, %v1543_v49  ;;  %v1748_v49 = vsub.s32 7, %v2756_v6 }
 0x9d3   : > { %v1546_v51 = vpop.f32.mrb[34].mxu0  ;;  %v2528_v50 = vld [vmem:[%s3132_s3] sm:$0xff] }
 0x9d4   : > { %v1554_v54 = vadd.f32 %v1551_v13, %v1546_v51  ;;  %v1560_v55 = vadd.f32 %v1557_v48, %v1546_v51  ;;  %v2349_v56 = vpop.f32.mrb[35].mxu0  ;;  %v1749_v51 = vrot.slane %v2528_v50, %v1748_v49 }
 0x9d6   : > { %v1555_v57 = vpack.c.bf16 %v1554_v54, %v1553_v52  ;;  %v1561_v58 = vpack.c.bf16 %v1560_v55, %v1559_v53 }
 0x9d8   : > { %v1566_v21 = vsel %vm611_vm2, %v1555_v57, 0 }
 0x9d9   : > { %2351 = vmatpush3.bf16.xpose.msra.mxu1 %v1566_v21 }
 0x9da   : > { %2362 = vmatprep.subr.bf16.mxu1 %v2609_v2 }
 0x9e0   : > { %2353 = vmatmul.mubr.msk.bf16.vlgmr.msra.gmra.mrb[32].mxu1 %vm611_vm2, %v1491_v40 }
 0x9e1   : > { %2364 = vmatprep.mubr.msk.bf16.mxu1 %vm2610_vm0, %v2609_v2  ;;  %2363 = vmatpush3.bf16.msra.mxu1 %v1701_v22 }
 0x9e2   : > { %2376 = vmatprep.subr.bf16.mxu1 %v2609_v2 }
 0xab3   : > { %v1602_v24 = vpop.f32.mrb[32].mxu1 }
 0xab4   : > { %v1603_v59 = vadd.f32 %v2812_v41, %v1602_v24  ;;  %v2354_v60 = vpop.f32.mrb[33].mxu1 }
 0xab5   : > { %v1605_v63 = vpop.f32.mrb[34].mxu1 }
 0xab6   : > { %v1606_v0 = vadd.f32 %v2812_v41, %v1605_v63  ;;  %v2355_v1 = vpop.f32.mrb[35].mxu1  ;;  %v1609_v3 = vsel %vm659_vm3, %v1603_v59, -inf }
 0xab7   : > { %1610 = vmax.xlane.f32.xlu1 %v1609_v3 }
 0xab8   : > { %v1612_v4 = vsel %vm659_vm3, %v1606_v0, -inf }
 0xab9   : > { %1613 = vmax.xlane.f32.xlu0 %v1612_v4 }
 0xac8   : > { %1641 = vrot.lane.b32.xlu1 %v1561_v58, %s2612_s15  ;;  %s428_s15 = sand.u32 1, %s2591_s18  }
 0xac9   : > { %s2089_s16 = sshll.u32 %s428_s15, 4  ;;  %s3082_s20 = scalar_lea.sflag [#allocation3], %s428_s15 }
 0xaca   : > { %s430_s26 = scalar_lea.vmem [#allocation2], %s2089_s16  ;;  %s3079_s16 = scalar_lea.hbm %s3140_s11, %s2175_s25 }
 0xacb   : > { %s1984_s28 = sshll.u32 %s430_s26, 4  ;;  %s3072_s28 = int_to_ptr.vmem [resolvable:$true] %s1984_s28 }
 0xacc   : > { %s2529_s23 = scalar_lea.vmem %s3072_s28, 256  ;;  %p2536_p1 = scmp.lt.s32.totalorder %s3072_s28, %s2534_s12 }
 0xacd   : > { %p2530_p12 = scmp.ne.s32.totalorder %s3072_s28, %s2529_s23  ;;  %p2537_p2 = scmp.lt.s32.totalorder %s2535_s0, %s2529_s23 }
 0xacf   : > { %p2531_p13 = pnand %p2530_p12, %p2717_p4  ;;  %p2538_p3 = por %p2537_p2, %p2536_p1 }
 0xad1   : > { %p2532_p0 = pneg %p2531_p13 }
 0xad3   : > { %p2539_p5 = pnand %p2538_p3, %p2532_p0 }
 0xb44   : > { %v1611_v5 = vpop.xlane.xlu1 %1610 }
 0xb45   : > { %v1615_v19 = vmax.f32 %v1611_v5, -1e+30 }
 0xb46   : > { %v1614_v18 = vpop.xlane.xlu0 %1613 }
 0xb47   : > { %v1623_v7 = vsub.f32 %v1603_v59, %v1615_v19  ;;  %v1616_v8 = vmax.f32 %v1614_v18, -1e+30  ;;  %v1617_v23 = vsub.f32 -1e+30, %v1615_v19  ;;  %v2466_v18 = vld [vmem:[%s3136_s7] sm:$0xff]  }
 0xb48   : > { %v1642_v62 = vpop.permute.xlu1 %1641 }
 0xb49   : > { %v1625_v61 = vmul.f32 1.442695, %v1623_v7  ;;  %v1624_v9 = vsub.f32 %v1606_v0, %v1616_v8  ;;  %2357 = vmatpush3.bf16.msra.mxu0 %v1642_v62  ;;  %v1618_v25 = vsub.f32 -1e+30, %v1616_v8  ;;  %v1619_v26 = vmul.f32 1.442695, %v1617_v23 }
 0xb4a   : > { %2368 = vmatprep.subr.bf16.mxu0 %v2609_v2  ;;  %v2467_v7 = vld [vmem:[%s3136_s7 + $0x8] sm:$0xff]  }
 0xb4b   : > { %v1627_v41 = vmul.f32 1.442695, %v1624_v9  ;;  %2508 = vpow2.f32 %v1625_v61  ;;  %v1621_v27 = vmul.f32 1.442695, %v1618_v25 }
 0xb4d   : > { %2510 = vpow2.f32 %v1627_v41 }
 0xb4e   : > { %2512 = vpow2.f32 %v1619_v26  ;;  %v1790_v26 = vrot.slane %v2528_v50, %v1789_v20 }
 0xb4f   : > { %2514 = vpow2.f32 %v1621_v27 }
 0xb55   : > { %v2509_v15 = vpop.eup %2508 }
 0xb56   : > { %v1631_v12 = vsel %vm659_vm3, %v2509_v15, 0.0 }
 0xb57   : > { %v2511_v10 = vpop.eup %2510  ;;  %1632 = vadd.xlane.f32.xlu0 %v1631_v12  ;;  %v1783_v12 = vsub.s32 2, %v2756_v6  ;;  %v2470_v6 = vld [vmem:[%s3138_s9 + $0x10] sm:$0xff]  }
 0xb58   : > { %v1639_v16 = vpack.c.bf16 %v2511_v10, %v2509_v15  ;;  %v1634_v17 = vsel %vm659_vm3, %v2511_v10, 0.0  ;;  %v2513_v28 = vpop.eup %2512 }
 0xb59   : > { %v2515_v30 = vpop.eup %2514  ;;  %v1629_v31 = vmul.f32 0.0, %v2513_v28 }
 0xb5a   : > { %2359 = vmatmul.mubr.msk.bf16.vlgmr.msra.gmra.mrb[36].mxu0 %vm659_vm3, %v1639_v16  ;;  %v1630_v34 = vmul.f32 0.0, %v2515_v30  ;;  %v1784_v16 = vrot.slane %v2528_v50, %v1783_v12 }
 0xb5b   : > { %1635 = vadd.xlane.f32.xlu0 %v1634_v17  ;;  %2372 = vmatprep.mubr.msk.bf16.mxu0 %vm2610_vm0, %v2609_v2 }
 0xb5c   : > { %2369 = vmatpush3.bf16.msra.mxu0 %v2466_v18 }
 0xb5d   : > { %2370 = vmatprep.subr.bf16.mxu0 %v2609_v2 }
 0xb60   : > { %2371 = vmatpush3.bf16.msra.mxu0 %v2467_v7 }
 0xbe4   : > { %v1633_v29 = vpop.xlane.xlu0 %1632 }
 0xbe5   : > { %v1637_v33 = vadd.f32 %v1633_v29, %v1629_v31 }
 0xbe7   : > { %2516 = vrcp.f32 %v1637_v33  ;;  %v2471_v33 = vld [vmem:[%s3138_s9 + $0x18] sm:$0xff]  }
 0xbe8   : > { %v1636_v32 = vpop.xlane.xlu0 %1635 }
 0xbe9   : > { %v1638_v35 = vadd.f32 %v1636_v32, %v1630_v34  ;;  %v2469_v32 = vld [vmem:[%s3138_s9 + $0x8] sm:$0xff]  }
 0xbeb   : > { %2518 = vrcp.f32 %v1638_v35 }
 0xbf1   : > { %v2517_v39 = vpop.eup %2516 }
 0xbf5   : > { %v2519_v13 = vpop.eup %2518 }
 0xc2d   : > { %v1681_v36 = vpop.f32.mrb[36].mxu0 }
 0xc2e   : > { %v1688_v37 = vadd.f32 %v1681_v36, %v1629_v31  ;;  %v2360_v38 = vpop.f32.mrb[37].mxu0  ;;  %v2468_v31 = vld [vmem:[%s3138_s9] sm:$0xff]  }
 0xc2f   : > { %v1684_v40 = vpop.f32.mrb[38].mxu0 }
 0xc30   : > { %v1692_v42 = vmul.f32 %v2517_v39, %v1688_v37  ;;  %v1689_v44 = vadd.f32 %v1684_v40, %v1630_v34  ;;  %v2361_v45 = vpop.f32.mrb[39].mxu0  ;;  %v2158_v34 = vld [vmem:[%s3137_s8] ss:$0 sm:$0xff] }
 0xc32   : > { %v1693_v47 = vmul.f32 %v2519_v13, %v1689_v44 }
 0xc34   : > { %v1694_v48 = vpack.c.bf16 %v1693_v47, %v1692_v42 }
 0xc36   : > { %2365 = vmatmul.mubr.msk.bf16.vlgmr.msra.gmra.mrb[36].mxu1 %vm611_vm2, %v1694_v48 }
 0xc37   : > { %2384 = vmatprep.mubr.msk.bf16.mxu1 %vm2610_vm0, %v2609_v2  ;;  %2377 = vmatpush3.bf16.msra.mxu1 %v2468_v31 }
 0xc38   : > { %2378 = vmatprep.subr.bf16.mxu1 %v2609_v2 }
 0xc3b   : > { %2379 = vmatpush3.bf16.msra.mxu1 %v2469_v32 }
 0xc3c   : > { %2380 = vmatprep.subr.bf16.mxu1 %v2609_v2 }
 0xc3f   : > { %2381 = vmatpush3.bf16.msra.mxu1 %v2470_v6 }
 0xc40   : > { %2382 = vmatprep.subr.bf16.mxu1 %v2609_v2 }
 0xc43   : > { %2383 = vmatpush3.bf16.msra.mxu1 %v2471_v33 }
 0xd09   : > { %v1737_v52 = vpop.f32.mrb[36].mxu1 }
 0xd0a   : > { %v1744_v53 = vadd.f32 %v1737_v52, %v2989_v43  ;;  %v2366_v54 = vpop.f32.mrb[37].mxu1 }
 0xd0b   : > { %v1740_v55 = vpop.f32.mrb[38].mxu1 }
 0xd0c   : > { %v1750_v56 = vadd.f32 %v1749_v51, %v1744_v53  ;;  %v1745_v57 = vadd.f32 %v1740_v55, %v2992_v46  ;;  %v2367_v58 = vpop.f32.mrb[39].mxu1 }
 0xd0e   : > { %v3025_v21 = vadd.f32 %v1750_v56, %v2770_v11  ;;  %v1751_v24 = vadd.f32 %v1749_v51, %v1745_v57 }
 0xd10   : > { %v3028_v59 = vadd.f32 %v1751_v24, %v2777_v14  ;;  %v1754_v60 = vsel %vm479_vm1, %v3025_v21, 0.0 }
 0xd11   : > { %1755 = vadd.xlane.f32.xlu1 %v1754_v60 }
 0xd12   : > { %v1757_v43 = vsel %vm479_vm1, %v3028_v59, 0.0 }
 0xd13   : > { %1758 = vadd.xlane.f32.xlu0 %v1757_v43  ;;  %v2162_v43 = vld [vmem:[%s3139_s10] ss:$0 sm:$0xff] }
 0xd9e   : > { %v1756_v63 = vpop.xlane.xlu1 %1755 }
 0xd9f   : > { %v1761_v0 = vmul.f32 0.03125, %v1756_v63 }
 0xda0   : > { %v1759_v1 = vpop.xlane.xlu0 %1758 }
 0xda1   : > { %v1763_v46 = vsub.f32 %v3025_v21, %v1761_v0  ;;  %v1762_v3 = vmul.f32 0.03125, %v1759_v1 }
 0xda3   : > { %v1764_v11 = vsub.f32 %v3028_v59, %v1762_v3  ;;  %v1765_v4 = vmul.f32 %v1763_v46, %v1763_v46 }
 0xda5   : > { %v1767_v14 = vsel %vm479_vm1, %v1765_v4, 0.0  ;;  %v1766_v5 = vmul.f32 %v1764_v11, %v1764_v11 }
 0xda6   : > { %1768 = vadd.xlane.f32.xlu0 %v1767_v14 }
 0xda7   : > { %v1770_v19 = vsel %vm479_vm1, %v1766_v5, 0.0 }
 0xdaa   : > { %1771 = vadd.xlane.f32.xlu0 %v1770_v19 }
 0xe33   : > { %v1769_v8 = vpop.xlane.xlu0 %1768 }
 0xe34   : > { %v1773_v62 = vmul.f32 0.03125, %v1769_v8 }
 0xe36   : > { %v1775_v61 = vadd.f32 1e-06, %v1773_v62 }
 0xe37   : > { %v1772_v9 = vpop.xlane.xlu0 %1771 }
 0xe38   : > { %2520 = vrsqrt.f32 %v1775_v61  ;;  %v1774_v41 = vmul.f32 0.03125, %v1772_v9 }
 0xe3a   : > { %v1776_v15 = vadd.f32 1e-06, %v1774_v41 }
 0xe3c   : > { %2522 = vrsqrt.f32 %v1776_v15 }
 0xe42   : > { %v2521_v10 = vpop.eup %2520 }
 0xe43   : > { %v1779_v17 = vmul.f32 %v2521_v10, %v1763_v46 }
 0xe45   : > { %v1785_v23 = vmul.f32 %v1784_v16, %v1779_v17 }
 0xe46   : > { %v2523_v22 = vpop.eup %2522 }
 0xe47   : > { %v1780_v25 = vmul.f32 %v2523_v22, %v1764_v11  ;;  %v1791_v29 = vadd.f32 %v1790_v26, %v1785_v23 }
 0xe49   : > { %v1786_v27 = vmul.f32 %v1784_v16, %v1780_v25 }
 0xe4b   : > { %v1792_v28 = vadd.f32 %v1790_v26, %v1786_v27 }
 0xe4d   : > { %v1793_v30 = vpack.c.bf16 %v1792_v28, %v1791_v29 }
 0xe4f   : > { %2373 = vmatmul.mubr.msk.bf16.vlgmr.msra.gmra.mrb[40].mxu0 %vm479_vm1, %v1793_v30 }
 0xf22   : > { %v1854_v35 = vpop.f32.mrb[40].mxu0 }
 0xf23   : > { %v1855_v36 = vadd.f32 %v2158_v34, %v1854_v35  ;;  %v2374_v37 = vpop.f32.mrb[41].mxu0 }
 0xf24   : > { %v1857_v38 = vpop.f32.mrb[42].mxu0 }
 0xf25   : > { %v1863_v39 = vmul.f32 0.044715, %v1855_v36  ;;  %v1858_v40 = vadd.f32 %v2158_v34, %v1857_v38  ;;  %v2375_v42 = vpop.f32.mrb[43].mxu0  ;;  %v1861_v55 = vmul.f32 0.5, %v1855_v36 }
 0xf27   : > { %v1865_v44 = vmul.f32 %v1863_v39, %v1855_v36  ;;  %v1864_v45 = vmul.f32 0.044715, %v1858_v40  ;;  %v1862_v56 = vmul.f32 0.5, %v1858_v40 }
 0xf29   : > { %v1867_v13 = vmul.f32 %v1865_v44, %v1855_v36  ;;  %v1866_v47 = vmul.f32 %v1864_v45, %v1858_v40 }
 0xf2b   : > { %v1869_v48 = vadd.f32 %v1867_v13, %v1855_v36  ;;  %v1868_v49 = vmul.f32 %v1866_v47, %v1858_v40 }
 0xf2d   : > { %v1871_v50 = vmul.f32 0.7978846, %v1869_v48  ;;  %v1870_v2 = vadd.f32 %v1868_v49, %v1858_v40 }
 0xf2f   : > { %2524 = vtanh.f32 %v1871_v50  ;;  %v1872_v51 = vmul.f32 0.7978846, %v1870_v2 }
 0xf31   : > { %2526 = vtanh.f32 %v1872_v51 }
 0xf39   : > { %v2525_v52 = vpop.eup %2524 }
 0xf3a   : > { %v1875_v53 = vadd.f32 1.0, %v2525_v52 }
 0xf3b   : > { %v2527_v54 = vpop.eup %2526 }
 0xf3c   : > { %v1876_v57 = vadd.f32 1.0, %v2527_v54  ;;  %v1877_v58 = vmul.f32 %v1875_v53, %v1861_v55 }
 0xf3e   : > { %v1878_v24 = vmul.f32 %v1876_v57, %v1862_v56 }
 0xf40   : > { %v1879_v60 = vpack.c.bf16 %v1878_v24, %v1877_v58 }
 0xf42   : > { %2385 = vmatmul.mubr.msk.bf16.vlgmr.msra.gmra.mrb[40].mxu1 %vm1919_vm5, %v1879_v60 }
0x1015   : > { %v1957_v63 = vpop.f32.mrb[40].mxu1 }
0x1016   : > { %v1958_v0 = vadd.f32 %v2162_v43, %v1957_v63  ;;  %v2386_v1 = vpop.f32.mrb[41].mxu1 }
0x1017   : > { %v1960_v46 = vpop.f32.mrb[42].mxu1 }
0x1018   : > { %v1964_v3 = vadd.f32 %v1958_v0, %v3025_v21  ;;  %v1961_v11 = vadd.f32 %v2162_v43, %v1960_v46  ;;  %v2387_v4 = vpop.f32.mrb[43].mxu1 }
0x101a   : > { %1966 = vst.msk [vmem:[%s430_s26] sm:$0xff] %vm479_vm1, %v1964_v3  ;;  %v1965_v14 = vadd.f32 %v1961_v11, %v3028_v59 }
0x101c   : > { %1967 = vst.msk [vmem:[%s430_s26 + $0x8] sm:$0xff] %vm479_vm1, %v1965_v14 }
0x101d   : > { %2542 = shalt.err (!%p2539_p5)
}
0x101e   : > { %s2543_s15 = scalar_lea.hbm %s3079_s16, 256  ;;  %s2547_s13 = scalar_lea.hbm %s3140_s11, 512 }
0x101f   : > { %p2544_p6 = scmp.ne.s32.totalorder %s3079_s16, %s2543_s15  ;;  %p2548_p10 = scmp.lt.u32.totalorder %s3079_s16, %s3140_s11 }
0x1020   : > { %p2549_p11 = scmp.lt.u32.totalorder %s2547_s13, %s2543_s15  ;;  %p2551_p13 = scmp.lt.u32.totalorder %s2543_s15, %s3079_s16 }
0x1021   : > { %p2545_p7 = pnand %p2544_p6, %p2717_p4 }
0x1022   : > { %p2550_p12 = por %p2549_p11, %p2548_p10 }
0x1023   : > { %p2546_p9 = pneg %p2545_p7 }
0x1024   : > { %p2552_p0 = por %p2551_p13, %p2550_p12 }
0x1026   : > { %p2553_p1 = pnand %p2552_p0, %p2546_p9 }
0x1028   : > { %2556 = shalt.err (!%p2553_p1)
}
0x1029   : > { %s2616_s0 = smov 128   ;;  %s3148_s23 = smov 8  }
0x102a   : > { %2388 = dma.vmem_to_hbm [thread:$0]  (%p2717_p4), %s3072_s28, 256, %s3079_s16, %s3082_s20, %s2616_s0, %s2616_s0, %s3148_s23  }
0x102b PF: > { %p2394_p2 = scmp.ge.s32.totalorder %s2607_s22, 2  ;;  %s1999_s24 = sand.u32 1, %s2587_s17  }
0x102c   : > { %s2000_s15 = scalar_lea.sflag [#allocation3], %s1999_s24 }
0x102d   : > { %p2391_p3 = pnand %p2394_p2, %p2724_p8 }
0x102f   : > { %2582 = dma.done.wait (!%p2391_p3), %s2000_s15, 256  }
0x1030   : > { %2584 = vsyncadd (!%p2391_p3), %s2000_s15, 4294967040  ;;  %s24_s22 = sadd.s32 1, %s2607_s22   ;;  %s3149_s27 = sld [smem:[#allocation5_spill]] }
0x1031   : > { %p21_p5 = scmp.ge.s32.totalorder %s24_s22, 4   ;;  %s3150_s17 = smov %s2591_s18 }
0x1032   : > { %s3151_s18 = smov %s2595_s19  ;;  %s3152_s19 = smov %s2730_s30 }
0x1033   : > { %s3153_s20 = smov %s2603_s21  ;;  %23 = sbr.rel (!%p21_p5) target bundleno = 6 (0x6), region = 114 }
0x1036   : > { %s3154_s21 = smov %s3149_s27 }
0x103a   :  { %2005 = vsyncpa [#allocation3], 1 }
0x103b   :  { %2007 = vsyncpa [#allocation3 + $0x1], 1 }

</bundles_post_ra>
